<compile_context>
chip_gen: v6e
topology: v6e:2x2x1
jax: 0.10.0
libtpu: 0.0.40
codegen_flags: <defaults>
</compile_context>

<pallas_src>
import functools
import math

import numpy as np
import jax
import jax.numpy as jnp
from jax.experimental import pallas as pl
from jax.experimental.pallas import tpu as pltpu

# ----------------------- small synthetic model config -----------------------
D_MODEL = 32
D_FFN = 64
N_HEADS = 4
N_LEVELS = 2
N_POINTS = 2
NUM_LAYERS = 2
QUERY_DIM = 4
HEAD_DIM = D_MODEL // N_HEADS
N_M = N_HEADS * N_LEVELS * N_POINTS          # sampling points per query
GROUP = N_LEVELS * N_POINTS                  # softmax group size per head
LN_EPS = 1e-5

# --------------------- bias/LayerNorm slab row layout (lane-dense) ---------------------
R_BQ = 0                      # nh rows: q bias per head          (cols 0:HEAD_DIM)
R_BK = R_BQ + N_HEADS         # nh rows: k bias per head
R_BV = R_BK + N_HEADS         # nh rows: v bias per head
R_BSAO = R_BV + N_HEADS       # self-attn out-proj bias           (cols 0:D_MODEL)
R_N2G = R_BSAO + 1            # norm2 gamma
R_N2B = R_N2G + 1             # norm2 beta
R_BVAL = R_N2B + 1            # nh rows: value-proj bias per head (cols 0:HEAD_DIM)
R_BOFFX = R_BVAL + N_HEADS    # sampling-offset-x bias            (cols 0:N_M)
R_BOFFY = R_BOFFX + 1         # sampling-offset-y bias
R_BLOG = R_BOFFY + 1          # attention-weight logit bias
R_BOUT = R_BLOG + 1           # cross-attn out-proj bias          (cols 0:D_MODEL)
R_N1G = R_BOUT + 1
R_N1B = R_N1G + 1
R_BF1 = R_N1B + 1             # ffn bias 1                        (cols 0:D_FFN)
R_BF2 = R_BF1 + 1
R_N3G = R_BF2 + 1
R_N3B = R_N3G + 1
N_BIAS_ROWS = R_N3B + 1
BIAS_ROWS_PAD = 32
BIAS_COLS = 128


# ================================ fused decoder kernel ================================
def _decoder_kernel(
    # layer-invariant inputs (DMA'd once: constant block index across the grid)
    tgt0_ref, qpos_ref, mask_ref, mem_ref, keep_ref, geom_ref, gxy_ref, ind_ref, fn_ref,
    # per-layer weights (stacked along the leading layer axis)
    wproj_ref, woproj_ref, woff_ref, wf1_ref, wf2_ref, bias_ref,
    # outputs
    normed_ref,
    # scratch (carried across grid steps)
    tgt_ref,
    *, bs, nq, S, nh, hd, nl, npt, d_ffn, eps,
):
    f32 = jnp.float32
    d = nh * hd
    n_m = nh * nl * npt
    group = nl * npt
    rows = bs * nq
    scale = 1.0 / math.sqrt(hd)

    @pl.when(pl.program_id(0) == 0)
    def _init():
        tgt_ref[...] = tgt0_ref[...]

    tgt = tgt_ref[...]                     # (rows, d), batch-major rows
    qpos = qpos_ref[...]                   # (rows, d)
    mask = mask_ref[...]                   # (nq, nq) additive self-attn mask
    bias = bias_ref[...]                   # (BIAS_ROWS_PAD, 128) lane-dense slab

    def rln(x, res, g, b):
        y = x + res
        mu = jnp.mean(y, axis=-1, keepdims=True)
        var = jnp.mean((y - mu) ** 2, axis=-1, keepdims=True)
        return (y - mu) * jax.lax.rsqrt(var + eps) * g + b

    # ------------------------------ self attention ------------------------------
    qk_in = tgt + qpos
    sa = jnp.zeros((rows, d), f32)
    for h in range(nh):
        qh = (jnp.dot(qk_in, wproj_ref[0, h], preferred_element_type=f32)
              + bias[R_BQ + h:R_BQ + h + 1, 0:hd]).reshape(bs, nq, hd)
        kh = (jnp.dot(qk_in, wproj_ref[1, h], preferred_element_type=f32)
              + bias[R_BK + h:R_BK + h + 1, 0:hd]).reshape(bs, nq, hd)
        vh = (jnp.dot(tgt, wproj_ref[2, h], preferred_element_type=f32)
              + bias[R_BV + h:R_BV + h + 1, 0:hd]).reshape(bs, nq, hd)
        s = jnp.einsum('bqd,bkd->bqk', qh, kh, preferred_element_type=f32) * scale + mask
        s = s - jnp.max(s, axis=-1, keepdims=True)
        p = jnp.exp(s)
        p = p * pl.reciprocal(jnp.sum(p, axis=-1, keepdims=True), approx=True)
        oh = jnp.einsum('bqk,bkd->bqd', p, vh, preferred_element_type=f32).reshape(rows, hd)
        sa = sa + jnp.dot(oh, woproj_ref[0, h], preferred_element_type=f32)
    sa = sa + bias[R_BSAO:R_BSAO + 1, 0:d]
    tgt = rln(tgt, sa, bias[R_N2G:R_N2G + 1, 0:d], bias[R_N2B:R_N2B + 1, 0:d])     # norm2

    # ------------------ multi-scale deformable cross attention ------------------
    q_cross = tgt + qpos
    off_x = jnp.dot(q_cross, woff_ref[0], preferred_element_type=f32) \
        + bias[R_BOFFX:R_BOFFX + 1, 0:n_m]
    off_y = jnp.dot(q_cross, woff_ref[1], preferred_element_type=f32) \
        + bias[R_BOFFY:R_BOFFY + 1, 0:n_m]
    logits = jnp.dot(q_cross, woff_ref[2], preferred_element_type=f32) \
        + bias[R_BLOG:R_BLOG + 1, 0:n_m]

    geom = geom_ref[...]                   # (4, rows, n_m): base_x | base_y | scale_x | scale_y
    x_pix = geom[0] + off_x * geom[2]      # pixel-space sampling coords, (rows, n_m)
    y_pix = geom[1] + off_y * geom[3]

    # grouped (per-head) softmax, numerically-safe per-group max via indicator matmuls
    ind = ind_ref[...]                     # (nh, n_m) {0,1} group membership
    neg = (1.0 - ind) * (-1e30)
    gmax_h = jnp.max(logits[:, None, :] + neg[None, :, :], axis=-1)   # (rows, nh)
    gmax = jnp.dot(gmax_h, ind, preferred_element_type=f32)           # (rows, n_m)
    e = jnp.exp(logits - gmax)
    gsum_h = jax.lax.dot_general(e, ind, (((1,), (1,)), ((), ())),
                                 preferred_element_type=f32)          # (rows, nh)
    gsum = jnp.dot(gsum_h, ind, preferred_element_type=f32)           # (rows, n_m), >= 1
    attw = e * pl.reciprocal(gsum, approx=True)                       # softmax per head group

    # dense bilinear "tent" weights, vectorized over all n_m samples at once.
    # off-level pixels carry a -1e6 sentinel coordinate -> zero weight, exactly
    # reproducing grid_sample(bilinear, zeros padding, align_corners=False).
    gx = gxy_ref[0]                        # (n_m, S)
    gy = gxy_ref[1]
    tri = (jnp.maximum(0.0, 1.0 - jnp.abs(x_pix[:, :, None] - gx[None, :, :]))
           * jnp.maximum(0.0, 1.0 - jnp.abs(y_pix[:, :, None] - gy[None, :, :])))
    wt = attw[:, :, None] * tri            # (rows, n_m, S)

    mem = mem_ref[...]                     # (bs*S, d)
    keep = keep_ref[...]                   # (bs, S): 1 - key_padding_mask
    cross = jnp.zeros((rows, d), f32)
    for h in range(nh):
        wt_h = jnp.sum(wt[:, h * group:(h + 1) * group, :], axis=1)   # (rows, S)
        v_h = (jnp.dot(mem, wproj_ref[3, h], preferred_element_type=f32)
               + bias[R_BVAL + h:R_BVAL + h + 1, 0:hd]).reshape(bs, S, hd) * keep[:, :, None]
        o_h = jnp.einsum('bqs,bsd->bqd', wt_h.reshape(bs, nq, S), v_h,
                         preferred_element_type=f32).reshape(rows, hd)
        cross = cross + jnp.dot(o_h, woproj_ref[1, h], preferred_element_type=f32)
    cross = cross + bias[R_BOUT:R_BOUT + 1, 0:d]
    tgt = rln(tgt, cross, bias[R_N1G:R_N1G + 1, 0:d], bias[R_N1B:R_N1B + 1, 0:d])  # norm1

    # ----------------------------------- FFN -----------------------------------
    h1 = jnp.maximum(jnp.dot(tgt, wf1_ref[...], preferred_element_type=f32)
                     + bias[R_BF1:R_BF1 + 1, 0:d_ffn], 0.0)
    ff = jnp.dot(h1, wf2_ref[...], preferred_element_type=f32) + bias[R_BF2:R_BF2 + 1, 0:d]
    tgt = rln(tgt, ff, bias[R_N3G:R_N3G + 1, 0:d], bias[R_N3B:R_N3B + 1, 0:d])     # norm3

    tgt_ref[...] = tgt                     # carry to next layer

    # decoder-level output norm (self.norm), fused per layer
    fn = fn_ref[...]                       # (2, d): gamma | beta
    mu = jnp.mean(tgt, axis=-1, keepdims=True)
    var = jnp.mean((tgt - mu) ** 2, axis=-1, keepdims=True)
    normed_ref[...] = ((tgt - mu) * jax.lax.rsqrt(var + eps) * fn[0:1, :] + fn[1:2, :]
                       ).astype(normed_ref.dtype)


# --------------------------------- BlockSpec helpers ---------------------------------
def _const_spec(shape):
    zeros = (0,) * len(shape)
    return pl.BlockSpec(tuple(shape), lambda l: zeros)


def _layer_spec(shape):
    zeros = (0,) * len(shape)
    return pl.BlockSpec((None,) + tuple(shape), lambda l: (l,) + zeros)


# ------------------------------------ JAX glue ------------------------------------
def gen_sineembed_for_position(pos, d_model):
    """pos: (nq, bs, 4) in [0,1] -> (nq, bs, 2*d_model); half-dim = d_model//2 per coord."""
    half = d_model // 2
    scale = 2.0 * math.pi
    dim_t = jnp.arange(half, dtype=jnp.float32)
    dim_t = 10000.0 ** (2.0 * jnp.floor(dim_t / 2.0) / half)

    def embed(coord):  # (nq, bs)
        e = coord[..., None] * scale / dim_t
        return jnp.stack((jnp.sin(e[..., 0::2]), jnp.cos(e[..., 1::2])),
                         axis=-1).reshape(coord.shape + (half,))

    pos_x = embed(pos[..., 0])
    pos_y = embed(pos[..., 1])
    pos_w = embed(pos[..., 2])
    pos_h = embed(pos[..., 3])
    return jnp.concatenate((pos_y, pos_x, pos_w, pos_h), axis=-1)


def _build_sample_grid(spatial_shapes):
    """(2, n_m, S): per-sample pixel-center coordinates of its level, -1e6 elsewhere."""
    S = sum(h * w for h, w in spatial_shapes)
    nl = len(spatial_shapes)
    gx_l = np.full((nl, S), -1e6, np.float32)
    gy_l = np.full((nl, S), -1e6, np.float32)
    off = 0
    for lvl, (h, w) in enumerate(spatial_shapes):
        n = h * w
        idx = np.arange(n)
        gx_l[lvl, off:off + n] = idx % w
        gy_l[lvl, off:off + n] = idx // w
        off += n
    lvl_of_m = np.tile(np.repeat(np.arange(nl), N_POINTS), N_HEADS)   # m = (head, level, point)
    return jnp.asarray(np.stack([gx_l[lvl_of_m], gy_l[lvl_of_m]], axis=0))


def _build_group_indicator():
    """(nh, n_m) one-hot head-group membership."""
    head_of_m = np.arange(N_M) // GROUP
    return jnp.asarray((head_of_m[None, :] == np.arange(N_HEADS)[:, None]).astype(np.float32))


def _build_geom(rp_b, spatial_shapes):
    """(4, bs*nq, n_m) pixel-space affine coeffs [base_x | base_y | scale_x | scale_y]."""
    bs, nq, nl, _ = rp_b.shape
    ws = jnp.array([float(w) for (_h, w) in spatial_shapes], jnp.float32)
    hs = jnp.array([float(h) for (h, _w) in spatial_shapes], jnp.float32)
    base_x = rp_b[..., 0] * ws - 0.5
    base_y = rp_b[..., 1] * hs - 0.5
    scale_x = rp_b[..., 2] * ws * 0.5 / N_POINTS
    scale_y = rp_b[..., 3] * hs * 0.5 / N_POINTS

    def to_m(a):  # (bs, nq, nl) -> (bs*nq, nh*nl*npt)
        a = jnp.broadcast_to(a[:, :, None, :, None], (bs, nq, N_HEADS, nl, N_POINTS))
        return a.reshape(bs * nq, N_M)

    return jnp.stack([to_m(base_x), to_m(base_y), to_m(scale_x), to_m(scale_y)], axis=0)


def decoder_forward(packed, tgt, memory, tgt_mask, memory_key_padding_mask,
                    refpoints_unsigmoid, spatial_shapes, valid_ratios):
    nq, bs, d = tgt.shape
    S = memory.shape[0]
    rows = bs * nq
    num_layers = packed["wproj"].shape[0]

    reference_points = jax.nn.sigmoid(refpoints_unsigmoid)              # (nq, bs, 4)

    # ---- loop-invariant precomputation (bbox_embed is None -> reference points,
    #      query pos and sampling geometry are identical every layer) ----
    vr = jnp.concatenate([valid_ratios, valid_ratios], axis=-1)         # (bs, nl, 4)
    rp_input = reference_points[:, :, None, :] * vr[None]               # (nq, bs, nl, 4)
    qse = gen_sineembed_for_position(rp_input[:, :, 0, :], d)           # (nq, bs, 2d)
    qse_b = qse.transpose(1, 0, 2).reshape(rows, 2 * d)
    # ref_point_head: tiny MLP in plain jnp (XLA fuses it — not worth a kernel launch)
    hmid = jnp.maximum(qse_b @ packed["rph_w1"] + packed["rph_b1"], 0.0)
    qpos = hmid @ packed["rph_w2"] + packed["rph_b2"]                   # (rows, d)

    rp_b = rp_input.transpose(1, 0, 2, 3)                               # (bs, nq, nl, 4)
    geom = _build_geom(rp_b, spatial_shapes)                            # (4, rows, n_m)
    gxy = _build_sample_grid(spatial_shapes)                            # (2, n_m, S)  const
    ind = _build_group_indicator()                                      # (nh, n_m)    const

    mem_flat = memory.transpose(1, 0, 2).reshape(bs * S, d)
    keep = 1.0 - memory_key_padding_mask.astype(jnp.float32)            # (bs, S)
    attn_mask = tgt_mask.astype(jnp.float32)
    tgt0 = tgt.transpose(1, 0, 2).reshape(rows, d)

    kernel = functools.partial(
        _decoder_kernel, bs=bs, nq=nq, S=S, nh=N_HEADS, hd=HEAD_DIM,
        nl=N_LEVELS, npt=N_POINTS, d_ffn=D_FFN, eps=LN_EPS)

    in_specs = [
        _const_spec((rows, d)),                       # tgt0
        _const_spec((rows, d)),                       # qpos
        _const_spec((nq, nq)),                        # self-attn mask
        _const_spec((bs * S, d)),                     # memory
        _const_spec((bs, S)),                         # keep = 1 - key_padding
        _const_spec((4, rows, N_M)),                  # sampling geometry
        _const_spec((2, N_M, S)),                     # pixel grid (+ sentinels)
        _const_spec((N_HEADS, N_M)),                  # group indicator
        _const_spec((2, d)),                          # final norm gamma/beta
        _layer_spec((4, N_HEADS, d, HEAD_DIM)),       # q/k/v/value per-head proj
        _layer_spec((2, N_HEADS, HEAD_DIM, d)),       # self/cross out-proj per head
        _layer_spec((3, d, N_M)),                     # off_x / off_y / logit proj
        _layer_spec((d, D_FFN)),                      # ffn w1
        _layer_spec((D_FFN, d)),                      # ffn w2
        _layer_spec((BIAS_ROWS_PAD, BIAS_COLS)),      # bias / LayerNorm slab
    ]

    normed = pl.pallas_call(
        kernel,
        grid=(num_layers,),
        in_specs=in_specs,
        out_specs=pl.BlockSpec((None, rows, d), lambda l: (l, 0, 0)),
        out_shape=jax.ShapeDtypeStruct((num_layers, rows, d), jnp.float32),
        scratch_shapes=[pltpu.VMEM((rows, d), jnp.float32)],
        compiler_params=pltpu.CompilerParams(dimension_semantics=("arbitrary",)),
    )(tgt0, qpos, attn_mask, mem_flat, keep, geom, gxy, ind, packed["fn"],
      packed["wproj"], packed["woproj"], packed["woff"],
      packed["wf1"], packed["wf2"], packed["bias"])

    intermediate = [normed[i].reshape(bs, nq, d) for i in range(num_layers)]
    # self.bbox_embed is None in the reference module -> no reference refinement
    ref_points = [reference_points.transpose(1, 0, 2)]
    return intermediate, ref_points


# ------------------------- one-time parameter packing (host side) -------------------------
def pack_decoder_params(params):
    d, nh, hd = D_MODEL, N_HEADS, HEAD_DIM

    def split_in(w):   # (d, d) -> (nh, d, hd): output columns per head
        return jnp.stack([w[:, h * hd:(h + 1) * hd] for h in range(nh)], axis=0)

    def split_out(w):  # (d, d) -> (nh, hd, d): input rows per head
        return jnp.stack([w[h * hd:(h + 1) * hd, :] for h in range(nh)], axis=0)

    def pad_row(v):
        v = jnp.asarray(v, jnp.float32).reshape(-1)
        return jnp.pad(v, (0, BIAS_COLS - v.shape[0]))

    wproj, woproj, woff, wf1, wf2, bias = [], [], [], [], [], []
    for p in params["layers"]:
        wq = p["in_proj_w"][:, 0:d]
        wk = p["in_proj_w"][:, d:2 * d]
        wv = p["in_proj_w"][:, 2 * d:3 * d]
        wproj.append(jnp.stack([split_in(wq), split_in(wk), split_in(wv),
                                split_in(p["value_proj_w"])], axis=0))
        woproj.append(jnp.stack([split_out(p["sa_out_w"]), split_out(p["out_proj_w"])], axis=0))
        w_off3 = p["samp_off_w"].reshape(d, N_M, 2)
        woff.append(jnp.stack([w_off3[:, :, 0], w_off3[:, :, 1], p["attn_w_w"]], axis=0))
        wf1.append(p["ffn_w1"])
        wf2.append(p["ffn_w2"])

        bq = p["in_proj_b"][0:d].reshape(nh, hd)
        bk = p["in_proj_b"][d:2 * d].reshape(nh, hd)
        bv = p["in_proj_b"][2 * d:3 * d].reshape(nh, hd)
        bval = p["value_proj_b"].reshape(nh, hd)
        off_b = p["samp_off_b"].reshape(N_M, 2)
        rows = []
        rows += [pad_row(bq[h]) for h in range(nh)]
        rows += [pad_row(bk[h]) for h in range(nh)]
        rows += [pad_row(bv[h]) for h in range(nh)]
        rows += [pad_row(p["sa_out_b"]), pad_row(p["norm2_g"]), pad_row(p["norm2_b"])]
        rows += [pad_row(bval[h]) for h in range(nh)]
        rows += [pad_row(off_b[:, 0]), pad_row(off_b[:, 1]), pad_row(p["attn_w_b"])]
        rows += [pad_row(p["out_proj_b"]), pad_row(p["norm1_g"]), pad_row(p["norm1_b"])]
        rows += [pad_row(p["ffn_b1"]), pad_row(p["ffn_b2"]),
                 pad_row(p["norm3_g"]), pad_row(p["norm3_b"])]
        assert len(rows) == N_BIAS_ROWS
        while len(rows) < BIAS_ROWS_PAD:
            rows.append(jnp.zeros((BIAS_COLS,), jnp.float32))
        bias.append(jnp.stack(rows, axis=0))

    return dict(
        wproj=jnp.stack(wproj), woproj=jnp.stack(woproj), woff=jnp.stack(woff),
        wf1=jnp.stack(wf1), wf2=jnp.stack(wf2), bias=jnp.stack(bias),
        rph_w1=params["rph_w1"], rph_b1=params["rph_b1"],
        rph_w2=params["rph_w2"], rph_b2=params["rph_b2"],
        fn=jnp.stack([params["norm_g"], params["norm_b"]], axis=0),
    )


# ------------------------- deterministic parameter init -------------------------
def init_params(key):
    keys = jax.random.split(key, 64)
    it = iter(keys)

    def w(shape, scale=0.1):
        return jax.random.normal(next(it), shape, jnp.float32) * scale

    layers = []
    for _ in range(NUM_LAYERS):
        layers.append(dict(
            # MSDeformableAttention
            samp_off_w=w((D_MODEL, N_M * 2), 0.02),
            samp_off_b=w((N_M * 2,), 0.02),
            attn_w_w=w((D_MODEL, N_M), 0.02),
            attn_w_b=jnp.zeros((N_M,), jnp.float32),
            value_proj_w=w((D_MODEL, D_MODEL)),
            value_proj_b=jnp.zeros((D_MODEL,), jnp.float32),
            out_proj_w=w((D_MODEL, D_MODEL)),
            out_proj_b=jnp.zeros((D_MODEL,), jnp.float32),
            norm1_g=jnp.ones((D_MODEL,), jnp.float32),
            norm1_b=jnp.zeros((D_MODEL,), jnp.float32),
            # nn.MultiheadAttention (x @ W convention, columns = q|k|v)
            in_proj_w=w((D_MODEL, 3 * D_MODEL)),
            in_proj_b=jnp.zeros((3 * D_MODEL,), jnp.float32),
            sa_out_w=w((D_MODEL, D_MODEL)),
            sa_out_b=jnp.zeros((D_MODEL,), jnp.float32),
            norm2_g=jnp.ones((D_MODEL,), jnp.float32),
            norm2_b=jnp.zeros((D_MODEL,), jnp.float32),
            # FFN
            ffn_w1=w((D_MODEL, D_FFN)),
            ffn_b1=jnp.zeros((D_FFN,), jnp.float32),
            ffn_w2=w((D_FFN, D_MODEL)),
            ffn_b2=jnp.zeros((D_MODEL,), jnp.float32),
            norm3_g=jnp.ones((D_MODEL,), jnp.float32),
            norm3_b=jnp.zeros((D_MODEL,), jnp.float32),
        ))
    return dict(
        layers=layers,
        rph_w1=w((QUERY_DIM // 2 * D_MODEL, D_MODEL)),
        rph_b1=jnp.zeros((D_MODEL,), jnp.float32),
        rph_w2=w((D_MODEL, D_MODEL)),
        rph_b2=jnp.zeros((D_MODEL,), jnp.float32),
        norm_g=jnp.ones((D_MODEL,), jnp.float32),
        norm_b=jnp.zeros((D_MODEL,), jnp.float32),
    )


# ------------------------------------- main -------------------------------------
if __name__ == "__main__":
    key = jax.random.PRNGKey(0)
    kp, kt, km, kr, kv = jax.random.split(key, 5)
    params = init_params(kp)
    packed = pack_decoder_params(params)          # one-time weight packing (not traced)

    nq, bs = 8, 2
    spatial_shapes = ((8, 8), (4, 4))             # static (n_levels, (H, W))
    S = sum(h * w for h, w in spatial_shapes)     # 80

    tgt = jax.random.normal(kt, (nq, bs, D_MODEL), jnp.float32)
    memory = jax.random.normal(km, (S, bs, D_MODEL), jnp.float32)
    refpoints_unsigmoid = jax.random.normal(kr, (nq, bs, QUERY_DIM), jnp.float32)
    valid_ratios = jax.random.uniform(kv, (bs, N_LEVELS, 2), jnp.float32, 0.5, 1.0)
    tgt_mask = jnp.zeros((nq, nq), jnp.float32)                # additive self-attn mask
    memory_key_padding_mask = jnp.zeros((bs, S), dtype=bool)   # no padding

    fwd = jax.jit(decoder_forward, static_argnums=(6,))
    intermediate, ref_points = fwd(packed, tgt, memory, tgt_mask,
                                   memory_key_padding_mask, refpoints_unsigmoid,
                                   spatial_shapes, valid_ratios)

    jax.block_until_ready(intermediate)
    jax.block_until_ready(ref_points)
    assert len(intermediate) == NUM_LAYERS
    assert intermediate[0].shape == (bs, nq, D_MODEL)
    assert ref_points[0].shape == (bs, nq, QUERY_DIM)
    assert all(bool(jnp.all(jnp.isfinite(x))) for x in intermediate)
    print("KERNEL_OK")
</pallas_src>

<mosaic_0001>
module attributes {stable_mosaic.version = 11 : i64} {
  func.func @_decoder_kernel(%arg0: i32, %arg1: memref<16x32xf32, #tpu.memory_space<vmem>>, %arg2: memref<16x32xf32, #tpu.memory_space<vmem>>, %arg3: memref<8x8xf32, #tpu.memory_space<vmem>>, %arg4: memref<160x32xf32, #tpu.memory_space<vmem>>, %arg5: memref<2x80xf32, #tpu.memory_space<vmem>>, %arg6: memref<4x16x16xf32, #tpu.memory_space<vmem>>, %arg7: memref<2x16x80xf32, #tpu.memory_space<vmem>>, %arg8: memref<4x16xf32, #tpu.memory_space<vmem>>, %arg9: memref<2x32xf32, #tpu.memory_space<vmem>>, %arg10: memref<1x4x4x32x8xf32, #tpu.memory_space<vmem>>, %arg11: memref<1x2x4x8x32xf32, #tpu.memory_space<vmem>>, %arg12: memref<1x3x32x16xf32, #tpu.memory_space<vmem>>, %arg13: memref<1x32x64xf32, #tpu.memory_space<vmem>>, %arg14: memref<1x64x32xf32, #tpu.memory_space<vmem>>, %arg15: memref<1x32x128xf32, #tpu.memory_space<vmem>>, %arg16: memref<1x16x32xf32, #tpu.memory_space<vmem>>, %arg17: memref<16x32xf32, #tpu.memory_space<vmem>>) attributes {dimension_semantics = [#tpu.dimension_semantics<arbitrary>], iteration_bounds = array<i64: 2>, scalar_prefetch = 0 : i64, scratch_operands = 1 : i64, tpu.core_type = #tpu.core_type<tc>, window_params = [{pipeline_mode = #tpu.pipeline_mode<synchronous>, transform_indices = @transform_0, window_bounds = array<i64: 16, 32>}, {pipeline_mode = #tpu.pipeline_mode<synchronous>, transform_indices = @transform_1, window_bounds = array<i64: 16, 32>}, {pipeline_mode = #tpu.pipeline_mode<synchronous>, transform_indices = @transform_2, window_bounds = array<i64: 8, 8>}, {pipeline_mode = #tpu.pipeline_mode<synchronous>, transform_indices = @transform_3, window_bounds = array<i64: 160, 32>}, {pipeline_mode = #tpu.pipeline_mode<synchronous>, transform_indices = @transform_4, window_bounds = array<i64: 2, 80>}, {pipeline_mode = #tpu.pipeline_mode<synchronous>, transform_indices = @transform_5, window_bounds = array<i64: 4, 16, 16>}, {pipeline_mode = #tpu.pipeline_mode<synchronous>, transform_indices = @transform_6, window_bounds = array<i64: 2, 16, 80>}, {pipeline_mode = #tpu.pipeline_mode<synchronous>, transform_indices = @transform_7, window_bounds = array<i64: 4, 16>}, {pipeline_mode = #tpu.pipeline_mode<synchronous>, transform_indices = @transform_8, window_bounds = array<i64: 2, 32>}, {transform_indices = @transform_9, window_bounds = array<i64: 1, 4, 4, 32, 8>}, {transform_indices = @transform_10, window_bounds = array<i64: 1, 2, 4, 8, 32>}, {transform_indices = @transform_11, window_bounds = array<i64: 1, 3, 32, 16>}, {transform_indices = @transform_12, window_bounds = array<i64: 1, 32, 64>}, {transform_indices = @transform_13, window_bounds = array<i64: 1, 64, 32>}, {transform_indices = @transform_14, window_bounds = array<i64: 1, 32, 128>}, {transform_indices = @transform_15, window_bounds = array<i64: 1, 16, 32>}]} {
    %c0_i32 = arith.constant 0 : i32
    %0 = arith.cmpi eq, %arg0, %c0_i32 : i32
    %1 = arith.extui %0 : i1 to i32
    %c0_i32_0 = arith.constant 0 : i32
    %2 = arith.cmpi ne, %1, %c0_i32_0 : i32
    scf.if %2 {
      %c0_255 = arith.constant 0 : index
      %c0_256 = arith.constant 0 : index
      %463 = vector.load %arg1[%c0_255, %c0_256] : memref<16x32xf32, #tpu.memory_space<vmem>>, vector<16x32xf32>
      %c0_257 = arith.constant 0 : index
      %c0_258 = arith.constant 0 : index
      %464 = vector.load %arg17[%c0_257, %c0_258] : memref<16x32xf32, #tpu.memory_space<vmem>>, vector<16x32xf32>
      tpu.vector_store %arg17[%c0_257, %c0_258], %463 {strides = array<i32>} : memref<16x32xf32, #tpu.memory_space<vmem>>, vector<16x32xf32>,
    } else {
    }
    %c0 = arith.constant 0 : index
    %c0_1 = arith.constant 0 : index
    %3 = vector.load %arg17[%c0, %c0_1] : memref<16x32xf32, #tpu.memory_space<vmem>>, vector<16x32xf32>
    %c0_2 = arith.constant 0 : index
    %c0_3 = arith.constant 0 : index
    %4 = vector.load %arg2[%c0_2, %c0_3] : memref<16x32xf32, #tpu.memory_space<vmem>>, vector<16x32xf32>
    %c0_4 = arith.constant 0 : index
    %c0_5 = arith.constant 0 : index
    %5 = vector.load %arg3[%c0_4, %c0_5] : memref<8x8xf32, #tpu.memory_space<vmem>>, vector<8x8xf32>
    %c0_6 = arith.constant 0 : index
    %c0_7 = arith.constant 0 : index
    %c0_8 = arith.constant 0 : index
    %6 = vector.load %arg15[%c0_6, %c0_7, %c0_8] : memref<1x32x128xf32, #tpu.memory_space<vmem>>, vector<1x32x128xf32>
    %7 = vector.shape_cast %6 : vector<1x32x128xf32> to vector<32x128xf32>
    %8 = arith.addf %3, %4 : vector<16x32xf32>
    %cst = arith.constant 0.000000e+00 : f32
    %9 = vector.broadcast %cst : f32 to vector<16x32xf32>
    %c0_9 = arith.constant 0 : index
    %c0_10 = arith.constant 0 : index
    %c0_11 = arith.constant 0 : index
    %c0_12 = arith.constant 0 : index
    %c0_13 = arith.constant 0 : index
    %10 = vector.load %arg10[%c0_9, %c0_10, %c0_11, %c0_12, %c0_13] : memref<1x4x4x32x8xf32, #tpu.memory_space<vmem>>, vector<1x1x1x32x8xf32>
    %11 = vector.shape_cast %10 : vector<1x1x1x32x8xf32> to vector<32x8xf32>
    %cst_14 = arith.constant dense<0.000000e+00> : vector<16x8xf32>
    %12 = tpu.matmul %8, %11, %cst_14 {dimension_numbers = #tpu.dot_dimension_numbers<[1], [0], [0], [1], [0, 0, 1, 1], [], []>} : vector<16x32xf32>, vector<32x8xf32>, vector<16x8xf32> -> vector<16x8xf32>
    %13 = vector.extract_strided_slice %7 {offsets = [0, 0], sizes = [1, 8], strides = [1, 1]} : vector<32x128xf32> to vector<1x8xf32>
    %14 = vector.broadcast %13 : vector<1x8xf32> to vector<16x8xf32>
    %15 = arith.addf %12, %14 : vector<16x8xf32>
    %16 = vector.shape_cast %15 : vector<16x8xf32> to vector<2x8x8xf32>
    %c0_15 = arith.constant 0 : index
    %c1 = arith.constant 1 : index
    %c0_16 = arith.constant 0 : index
    %c0_17 = arith.constant 0 : index
    %c0_18 = arith.constant 0 : index
    %17 = vector.load %arg10[%c0_15, %c1, %c0_16, %c0_17, %c0_18] : memref<1x4x4x32x8xf32, #tpu.memory_space<vmem>>, vector<1x1x1x32x8xf32>
    %18 = vector.shape_cast %17 : vector<1x1x1x32x8xf32> to vector<32x8xf32>
    %cst_19 = arith.constant dense<0.000000e+00> : vector<16x8xf32>
    %19 = tpu.matmul %8, %18, %cst_19 {dimension_numbers = #tpu.dot_dimension_numbers<[1], [0], [0], [1], [0, 0, 1, 1], [], []>} : vector<16x32xf32>, vector<32x8xf32>, vector<16x8xf32> -> vector<16x8xf32>
    %20 = vector.extract_strided_slice %7 {offsets = [4, 0], sizes = [1, 8], strides = [1, 1]} : vector<32x128xf32> to vector<1x8xf32>
    %21 = vector.broadcast %20 : vector<1x8xf32> to vector<16x8xf32>
    %22 = arith.addf %19, %21 : vector<16x8xf32>
    %23 = vector.shape_cast %22 : vector<16x8xf32> to vector<2x8x8xf32>
    %c0_20 = arith.constant 0 : index
    %c2 = arith.constant 2 : index
    %c0_21 = arith.constant 0 : index
    %c0_22 = arith.constant 0 : index
    %c0_23 = arith.constant 0 : index
    %24 = vector.load %arg10[%c0_20, %c2, %c0_21, %c0_22, %c0_23] : memref<1x4x4x32x8xf32, #tpu.memory_space<vmem>>, vector<1x1x1x32x8xf32>
    %25 = vector.shape_cast %24 : vector<1x1x1x32x8xf32> to vector<32x8xf32>
    %cst_24 = arith.constant dense<0.000000e+00> : vector<16x8xf32>
    %26 = tpu.matmul %3, %25, %cst_24 {dimension_numbers = #tpu.dot_dimension_numbers<[1], [0], [0], [1], [0, 0, 1, 1], [], []>} : vector<16x32xf32>, vector<32x8xf32>, vector<16x8xf32> -> vector<16x8xf32>
    %27 = vector.extract_strided_slice %7 {offsets = [8, 0], sizes = [1, 8], strides = [1, 1]} : vector<32x128xf32> to vector<1x8xf32>
    %28 = vector.broadcast %27 : vector<1x8xf32> to vector<16x8xf32>
    %29 = arith.addf %26, %28 : vector<16x8xf32>
    %30 = vector.shape_cast %29 : vector<16x8xf32> to vector<2x8x8xf32>
    "tpu.trace_start"() <{level = 10 : i32, message = "bqd,bkd->bqk"}> : () -> ()
    %cst_25 = arith.constant dense<0.000000e+00> : vector<2x8x8xf32>
    %31 = tpu.matmul %16, %23, %cst_25 {dimension_numbers = #tpu.dot_dimension_numbers<[2], [2], [1], [1], [0, 0, 0, 1, 1, 1], [0], [0]>} : vector<2x8x8xf32>, vector<2x8x8xf32>, vector<2x8x8xf32> -> vector<2x8x8xf32>
    "tpu.trace_stop"() : () -> ()
    %cst_26 = arith.constant 0.353553385 : f32
    %32 = vector.broadcast %cst_26 : f32 to vector<2x8x8xf32>
    %33 = arith.mulf %31, %32 : vector<2x8x8xf32>
    %34 = vector.shape_cast %5 : vector<8x8xf32> to vector<1x8x8xf32>
    %35 = vector.broadcast %34 : vector<1x8x8xf32> to vector<2x8x8xf32>
    %36 = arith.addf %33, %35 : vector<2x8x8xf32>
    %cst_27 = arith.constant dense<0xFF800000> : vector<2x8xf32>
    %37 = vector.multi_reduction <maximumf>, %36, %cst_27 [2] : vector<2x8x8xf32> to vector<2x8xf32>
    %38 = vector.shape_cast %37 : vector<2x8xf32> to vector<2x8x1xf32>
    %39 = vector.broadcast %38 : vector<2x8x1xf32> to vector<2x8x8xf32>
    %40 = arith.subf %36, %39 : vector<2x8x8xf32>
    %41 = math.exp %40 : vector<2x8x8xf32>
    %cst_28 = arith.constant dense<0.000000e+00> : vector<2x8xf32>
    %42 = vector.multi_reduction <add>, %41, %cst_28 [2] : vector<2x8x8xf32> to vector<2x8xf32>
    %43 = vector.shape_cast %42 : vector<2x8xf32> to vector<2x8x1xf32>
    %44 = tpu.reciprocal %43 {approx = true} : vector<2x8x1xf32> -> vector<2x8x1xf32>
    %45 = vector.broadcast %44 : vector<2x8x1xf32> to vector<2x8x8xf32>
    %46 = arith.mulf %41, %45 : vector<2x8x8xf32>
    "tpu.trace_start"() <{level = 10 : i32, message = "bqk,bkd->bqd"}> : () -> ()
    %cst_29 = arith.constant dense<0.000000e+00> : vector<2x8x8xf32>
    %47 = tpu.matmul %46, %30, %cst_29 {dimension_numbers = #tpu.dot_dimension_numbers<[2], [1], [1], [2], [0, 0, 0, 1, 1, 2], [0], [0]>} : vector<2x8x8xf32>, vector<2x8x8xf32>, vector<2x8x8xf32> -> vector<2x8x8xf32>
    "tpu.trace_stop"() : () -> ()
    %48 = vector.shape_cast %47 : vector<2x8x8xf32> to vector<16x8xf32>
    %c0_30 = arith.constant 0 : index
    %c0_31 = arith.constant 0 : index
    %c0_32 = arith.constant 0 : index
    %c0_33 = arith.constant 0 : index
    %c0_34 = arith.constant 0 : index
    %49 = vector.load %arg11[%c0_30, %c0_31, %c0_32, %c0_33, %c0_34] : memref<1x2x4x8x32xf32, #tpu.memory_space<vmem>>, vector<1x1x1x8x32xf32>
    %50 = vector.shape_cast %49 : vector<1x1x1x8x32xf32> to vector<8x32xf32>
    %cst_35 = arith.constant dense<0.000000e+00> : vector<16x32xf32>
    %51 = tpu.matmul %48, %50, %cst_35 {dimension_numbers = #tpu.dot_dimension_numbers<[1], [0], [0], [1], [0, 0, 1, 1], [], []>} : vector<16x8xf32>, vector<8x32xf32>, vector<16x32xf32> -> vector<16x32xf32>
    %52 = arith.addf %9, %51 : vector<16x32xf32>
    %c0_36 = arith.constant 0 : index
    %c0_37 = arith.constant 0 : index
    %c1_38 = arith.constant 1 : index
    %c0_39 = arith.constant 0 : index
    %c0_40 = arith.constant 0 : index
    %53 = vector.load %arg10[%c0_36, %c0_37, %c1_38, %c0_39, %c0_40] : memref<1x4x4x32x8xf32, #tpu.memory_space<vmem>>, vector<1x1x1x32x8xf32>
    %54 = vector.shape_cast %53 : vector<1x1x1x32x8xf32> to vector<32x8xf32>
    %cst_41 = arith.constant dense<0.000000e+00> : vector<16x8xf32>
    %55 = tpu.matmul %8, %54, %cst_41 {dimension_numbers = #tpu.dot_dimension_numbers<[1], [0], [0], [1], [0, 0, 1, 1], [], []>} : vector<16x32xf32>, vector<32x8xf32>, vector<16x8xf32> -> vector<16x8xf32>
    %56 = vector.extract_strided_slice %7 {offsets = [1, 0], sizes = [1, 8], strides = [1, 1]} : vector<32x128xf32> to vector<1x8xf32>
    %57 = vector.broadcast %56 : vector<1x8xf32> to vector<16x8xf32>
    %58 = arith.addf %55, %57 : vector<16x8xf32>
    %59 = vector.shape_cast %58 : vector<16x8xf32> to vector<2x8x8xf32>
    %c0_42 = arith.constant 0 : index
    %c1_43 = arith.constant 1 : index
    %c1_44 = arith.constant 1 : index
    %c0_45 = arith.constant 0 : index
    %c0_46 = arith.constant 0 : index
    %60 = vector.load %arg10[%c0_42, %c1_43, %c1_44, %c0_45, %c0_46] : memref<1x4x4x32x8xf32, #tpu.memory_space<vmem>>, vector<1x1x1x32x8xf32>
    %61 = vector.shape_cast %60 : vector<1x1x1x32x8xf32> to vector<32x8xf32>
    %cst_47 = arith.constant dense<0.000000e+00> : vector<16x8xf32>
    %62 = tpu.matmul %8, %61, %cst_47 {dimension_numbers = #tpu.dot_dimension_numbers<[1], [0], [0], [1], [0, 0, 1, 1], [], []>} : vector<16x32xf32>, vector<32x8xf32>, vector<16x8xf32> -> vector<16x8xf32>
    %63 = vector.extract_strided_slice %7 {offsets = [5, 0], sizes = [1, 8], strides = [1, 1]} : vector<32x128xf32> to vector<1x8xf32>
    %64 = vector.broadcast %63 : vector<1x8xf32> to vector<16x8xf32>
    %65 = arith.addf %62, %64 : vector<16x8xf32>
    %66 = vector.shape_cast %65 : vector<16x8xf32> to vector<2x8x8xf32>
    %c0_48 = arith.constant 0 : index
    %c2_49 = arith.constant 2 : index
    %c1_50 = arith.constant 1 : index
    %c0_51 = arith.constant 0 : index
    %c0_52 = arith.constant 0 : index
    %67 = vector.load %arg10[%c0_48, %c2_49, %c1_50, %c0_51, %c0_52] : memref<1x4x4x32x8xf32, #tpu.memory_space<vmem>>, vector<1x1x1x32x8xf32>
    %68 = vector.shape_cast %67 : vector<1x1x1x32x8xf32> to vector<32x8xf32>
    %cst_53 = arith.constant dense<0.000000e+00> : vector<16x8xf32>
    %69 = tpu.matmul %3, %68, %cst_53 {dimension_numbers = #tpu.dot_dimension_numbers<[1], [0], [0], [1], [0, 0, 1, 1], [], []>} : vector<16x32xf32>, vector<32x8xf32>, vector<16x8xf32> -> vector<16x8xf32>
    %70 = vector.extract_strided_slice %7 {offsets = [9, 0], sizes = [1, 8], strides = [1, 1]} : vector<32x128xf32> to vector<1x8xf32>
    %71 = vector.broadcast %70 : vector<1x8xf32> to vector<16x8xf32>
    %72 = arith.addf %69, %71 : vector<16x8xf32>
    %73 = vector.shape_cast %72 : vector<16x8xf32> to vector<2x8x8xf32>
    "tpu.trace_start"() <{level = 10 : i32, message = "bqd,bkd->bqk"}> : () -> ()
    %cst_54 = arith.constant dense<0.000000e+00> : vector<2x8x8xf32>
    %74 = tpu.matmul %59, %66, %cst_54 {dimension_numbers = #tpu.dot_dimension_numbers<[2], [2], [1], [1], [0, 0, 0, 1, 1, 1], [0], [0]>} : vector<2x8x8xf32>, vector<2x8x8xf32>, vector<2x8x8xf32> -> vector<2x8x8xf32>
    "tpu.trace_stop"() : () -> ()
    %cst_55 = arith.constant 0.353553385 : f32
    %75 = vector.broadcast %cst_55 : f32 to vector<2x8x8xf32>
    %76 = arith.mulf %74, %75 : vector<2x8x8xf32>
    %77 = vector.shape_cast %5 : vector<8x8xf32> to vector<1x8x8xf32>
    %78 = vector.broadcast %77 : vector<1x8x8xf32> to vector<2x8x8xf32>
    %79 = arith.addf %76, %78 : vector<2x8x8xf32>
    %cst_56 = arith.constant dense<0xFF800000> : vector<2x8xf32>
    %80 = vector.multi_reduction <maximumf>, %79, %cst_56 [2] : vector<2x8x8xf32> to vector<2x8xf32>
    %81 = vector.shape_cast %80 : vector<2x8xf32> to vector<2x8x1xf32>
    %82 = vector.broadcast %81 : vector<2x8x1xf32> to vector<2x8x8xf32>
    %83 = arith.subf %79, %82 : vector<2x8x8xf32>
    %84 = math.exp %83 : vector<2x8x8xf32>
    %cst_57 = arith.constant dense<0.000000e+00> : vector<2x8xf32>
    %85 = vector.multi_reduction <add>, %84, %cst_57 [2] : vector<2x8x8xf32> to vector<2x8xf32>
    %86 = vector.shape_cast %85 : vector<2x8xf32> to vector<2x8x1xf32>
    %87 = tpu.reciprocal %86 {approx = true} : vector<2x8x1xf32> -> vector<2x8x1xf32>
    %88 = vector.broadcast %87 : vector<2x8x1xf32> to vector<2x8x8xf32>
    %89 = arith.mulf %84, %88 : vector<2x8x8xf32>
    "tpu.trace_start"() <{level = 10 : i32, message = "bqk,bkd->bqd"}> : () -> ()
    %cst_58 = arith.constant dense<0.000000e+00> : vector<2x8x8xf32>
    %90 = tpu.matmul %89, %73, %cst_58 {dimension_numbers = #tpu.dot_dimension_numbers<[2], [1], [1], [2], [0, 0, 0, 1, 1, 2], [0], [0]>} : vector<2x8x8xf32>, vector<2x8x8xf32>, vector<2x8x8xf32> -> vector<2x8x8xf32>
    "tpu.trace_stop"() : () -> ()
    %91 = vector.shape_cast %90 : vector<2x8x8xf32> to vector<16x8xf32>
    %c0_59 = arith.constant 0 : index
    %c0_60 = arith.constant 0 : index
    %c1_61 = arith.constant 1 : index
    %c0_62 = arith.constant 0 : index
    %c0_63 = arith.constant 0 : index
    %92 = vector.load %arg11[%c0_59, %c0_60, %c1_61, %c0_62, %c0_63] : memref<1x2x4x8x32xf32, #tpu.memory_space<vmem>>, vector<1x1x1x8x32xf32>
    %93 = vector.shape_cast %92 : vector<1x1x1x8x32xf32> to vector<8x32xf32>
    %cst_64 = arith.constant dense<0.000000e+00> : vector<16x32xf32>
    %94 = tpu.matmul %91, %93, %cst_64 {dimension_numbers = #tpu.dot_dimension_numbers<[1], [0], [0], [1], [0, 0, 1, 1], [], []>} : vector<16x8xf32>, vector<8x32xf32>, vector<16x32xf32> -> vector<16x32xf32>
    %95 = arith.addf %52, %94 : vector<16x32xf32>
    %c0_65 = arith.constant 0 : index
    %c0_66 = arith.constant 0 : index
    %c2_67 = arith.constant 2 : index
    %c0_68 = arith.constant 0 : index
    %c0_69 = arith.constant 0 : index
    %96 = vector.load %arg10[%c0_65, %c0_66, %c2_67, %c0_68, %c0_69] : memref<1x4x4x32x8xf32, #tpu.memory_space<vmem>>, vector<1x1x1x32x8xf32>
    %97 = vector.shape_cast %96 : vector<1x1x1x32x8xf32> to vector<32x8xf32>
    %cst_70 = arith.constant dense<0.000000e+00> : vector<16x8xf32>
    %98 = tpu.matmul %8, %97, %cst_70 {dimension_numbers = #tpu.dot_dimension_numbers<[1], [0], [0], [1], [0, 0, 1, 1], [], []>} : vector<16x32xf32>, vector<32x8xf32>, vector<16x8xf32> -> vector<16x8xf32>
    %99 = vector.extract_strided_slice %7 {offsets = [2, 0], sizes = [1, 8], strides = [1, 1]} : vector<32x128xf32> to vector<1x8xf32>
    %100 = vector.broadcast %99 : vector<1x8xf32> to vector<16x8xf32>
    %101 = arith.addf %98, %100 : vector<16x8xf32>
    %102 = vector.shape_cast %101 : vector<16x8xf32> to vector<2x8x8xf32>
    %c0_71 = arith.constant 0 : index
    %c1_72 = arith.constant 1 : index
    %c2_73 = arith.constant 2 : index
    %c0_74 = arith.constant 0 : index
    %c0_75 = arith.constant 0 : index
    %103 = vector.load %arg10[%c0_71, %c1_72, %c2_73, %c0_74, %c0_75] : memref<1x4x4x32x8xf32, #tpu.memory_space<vmem>>, vector<1x1x1x32x8xf32>
    %104 = vector.shape_cast %103 : vector<1x1x1x32x8xf32> to vector<32x8xf32>
    %cst_76 = arith.constant dense<0.000000e+00> : vector<16x8xf32>
    %105 = tpu.matmul %8, %104, %cst_76 {dimension_numbers = #tpu.dot_dimension_numbers<[1], [0], [0], [1], [0, 0, 1, 1], [], []>} : vector<16x32xf32>, vector<32x8xf32>, vector<16x8xf32> -> vector<16x8xf32>
    %106 = vector.extract_strided_slice %7 {offsets = [6, 0], sizes = [1, 8], strides = [1, 1]} : vector<32x128xf32> to vector<1x8xf32>
    %107 = vector.broadcast %106 : vector<1x8xf32> to vector<16x8xf32>
    %108 = arith.addf %105, %107 : vector<16x8xf32>
    %109 = vector.shape_cast %108 : vector<16x8xf32> to vector<2x8x8xf32>
    %c0_77 = arith.constant 0 : index
    %c2_78 = arith.constant 2 : index
    %c2_79 = arith.constant 2 : index
    %c0_80 = arith.constant 0 : index
    %c0_81 = arith.constant 0 : index
    %110 = vector.load %arg10[%c0_77, %c2_78, %c2_79, %c0_80, %c0_81] : memref<1x4x4x32x8xf32, #tpu.memory_space<vmem>>, vector<1x1x1x32x8xf32>
    %111 = vector.shape_cast %110 : vector<1x1x1x32x8xf32> to vector<32x8xf32>
    %cst_82 = arith.constant dense<0.000000e+00> : vector<16x8xf32>
    %112 = tpu.matmul %3, %111, %cst_82 {dimension_numbers = #tpu.dot_dimension_numbers<[1], [0], [0], [1], [0, 0, 1, 1], [], []>} : vector<16x32xf32>, vector<32x8xf32>, vector<16x8xf32> -> vector<16x8xf32>
    %113 = vector.extract_strided_slice %7 {offsets = [10, 0], sizes = [1, 8], strides = [1, 1]} : vector<32x128xf32> to vector<1x8xf32>
    %114 = vector.broadcast %113 : vector<1x8xf32> to vector<16x8xf32>
    %115 = arith.addf %112, %114 : vector<16x8xf32>
    %116 = vector.shape_cast %115 : vector<16x8xf32> to vector<2x8x8xf32>
    "tpu.trace_start"() <{level = 10 : i32, message = "bqd,bkd->bqk"}> : () -> ()
    %cst_83 = arith.constant dense<0.000000e+00> : vector<2x8x8xf32>
    %117 = tpu.matmul %102, %109, %cst_83 {dimension_numbers = #tpu.dot_dimension_numbers<[2], [2], [1], [1], [0, 0, 0, 1, 1, 1], [0], [0]>} : vector<2x8x8xf32>, vector<2x8x8xf32>, vector<2x8x8xf32> -> vector<2x8x8xf32>
    "tpu.trace_stop"() : () -> ()
    %cst_84 = arith.constant 0.353553385 : f32
    %118 = vector.broadcast %cst_84 : f32 to vector<2x8x8xf32>
    %119 = arith.mulf %117, %118 : vector<2x8x8xf32>
    %120 = vector.shape_cast %5 : vector<8x8xf32> to vector<1x8x8xf32>
    %121 = vector.broadcast %120 : vector<1x8x8xf32> to vector<2x8x8xf32>
    %122 = arith.addf %119, %121 : vector<2x8x8xf32>
    %cst_85 = arith.constant dense<0xFF800000> : vector<2x8xf32>
    %123 = vector.multi_reduction <maximumf>, %122, %cst_85 [2] : vector<2x8x8xf32> to vector<2x8xf32>
    %124 = vector.shape_cast %123 : vector<2x8xf32> to vector<2x8x1xf32>
    %125 = vector.broadcast %124 : vector<2x8x1xf32> to vector<2x8x8xf32>
    %126 = arith.subf %122, %125 : vector<2x8x8xf32>
    %127 = math.exp %126 : vector<2x8x8xf32>
    %cst_86 = arith.constant dense<0.000000e+00> : vector<2x8xf32>
    %128 = vector.multi_reduction <add>, %127, %cst_86 [2] : vector<2x8x8xf32> to vector<2x8xf32>
    %129 = vector.shape_cast %128 : vector<2x8xf32> to vector<2x8x1xf32>
    %130 = tpu.reciprocal %129 {approx = true} : vector<2x8x1xf32> -> vector<2x8x1xf32>
    %131 = vector.broadcast %130 : vector<2x8x1xf32> to vector<2x8x8xf32>
    %132 = arith.mulf %127, %131 : vector<2x8x8xf32>
    "tpu.trace_start"() <{level = 10 : i32, message = "bqk,bkd->bqd"}> : () -> ()
    %cst_87 = arith.constant dense<0.000000e+00> : vector<2x8x8xf32>
    %133 = tpu.matmul %132, %116, %cst_87 {dimension_numbers = #tpu.dot_dimension_numbers<[2], [1], [1], [2], [0, 0, 0, 1, 1, 2], [0], [0]>} : vector<2x8x8xf32>, vector<2x8x8xf32>, vector<2x8x8xf32> -> vector<2x8x8xf32>
    "tpu.trace_stop"() : () -> ()
    %134 = vector.shape_cast %133 : vector<2x8x8xf32> to vector<16x8xf32>
    %c0_88 = arith.constant 0 : index
    %c0_89 = arith.constant 0 : index
    %c2_90 = arith.constant 2 : index
    %c0_91 = arith.constant 0 : index
    %c0_92 = arith.constant 0 : index
    %135 = vector.load %arg11[%c0_88, %c0_89, %c2_90, %c0_91, %c0_92] : memref<1x2x4x8x32xf32, #tpu.memory_space<vmem>>, vector<1x1x1x8x32xf32>
    %136 = vector.shape_cast %135 : vector<1x1x1x8x32xf32> to vector<8x32xf32>
    %cst_93 = arith.constant dense<0.000000e+00> : vector<16x32xf32>
    %137 = tpu.matmul %134, %136, %cst_93 {dimension_numbers = #tpu.dot_dimension_numbers<[1], [0], [0], [1], [0, 0, 1, 1], [], []>} : vector<16x8xf32>, vector<8x32xf32>, vector<16x32xf32> -> vector<16x32xf32>
    %138 = arith.addf %95, %137 : vector<16x32xf32>
    %c0_94 = arith.constant 0 : index
    %c0_95 = arith.constant 0 : index
    %c3 = arith.constant 3 : index
    %c0_96 = arith.constant 0 : index
    %c0_97 = arith.constant 0 : index
    %139 = vector.load %arg10[%c0_94, %c0_95, %c3, %c0_96, %c0_97] : memref<1x4x4x32x8xf32, #tpu.memory_space<vmem>>, vector<1x1x1x32x8xf32>
    %140 = vector.shape_cast %139 : vector<1x1x1x32x8xf32> to vector<32x8xf32>
    %cst_98 = arith.constant dense<0.000000e+00> : vector<16x8xf32>
    %141 = tpu.matmul %8, %140, %cst_98 {dimension_numbers = #tpu.dot_dimension_numbers<[1], [0], [0], [1], [0, 0, 1, 1], [], []>} : vector<16x32xf32>, vector<32x8xf32>, vector<16x8xf32> -> vector<16x8xf32>
    %142 = vector.extract_strided_slice %7 {offsets = [3, 0], sizes = [1, 8], strides = [1, 1]} : vector<32x128xf32> to vector<1x8xf32>
    %143 = vector.broadcast %142 : vector<1x8xf32> to vector<16x8xf32>
    %144 = arith.addf %141, %143 : vector<16x8xf32>
    %145 = vector.shape_cast %144 : vector<16x8xf32> to vector<2x8x8xf32>
    %c0_99 = arith.constant 0 : index
    %c1_100 = arith.constant 1 : index
    %c3_101 = arith.constant 3 : index
    %c0_102 = arith.constant 0 : index
    %c0_103 = arith.constant 0 : index
    %146 = vector.load %arg10[%c0_99, %c1_100, %c3_101, %c0_102, %c0_103] : memref<1x4x4x32x8xf32, #tpu.memory_space<vmem>>, vector<1x1x1x32x8xf32>
    %147 = vector.shape_cast %146 : vector<1x1x1x32x8xf32> to vector<32x8xf32>
    %cst_104 = arith.constant dense<0.000000e+00> : vector<16x8xf32>
    %148 = tpu.matmul %8, %147, %cst_104 {dimension_numbers = #tpu.dot_dimension_numbers<[1], [0], [0], [1], [0, 0, 1, 1], [], []>} : vector<16x32xf32>, vector<32x8xf32>, vector<16x8xf32> -> vector<16x8xf32>
    %149 = vector.extract_strided_slice %7 {offsets = [7, 0], sizes = [1, 8], strides = [1, 1]} : vector<32x128xf32> to vector<1x8xf32>
    %150 = vector.broadcast %149 : vector<1x8xf32> to vector<16x8xf32>
    %151 = arith.addf %148, %150 : vector<16x8xf32>
    %152 = vector.shape_cast %151 : vector<16x8xf32> to vector<2x8x8xf32>
    %c0_105 = arith.constant 0 : index
    %c2_106 = arith.constant 2 : index
    %c3_107 = arith.constant 3 : index
    %c0_108 = arith.constant 0 : index
    %c0_109 = arith.constant 0 : index
    %153 = vector.load %arg10[%c0_105, %c2_106, %c3_107, %c0_108, %c0_109] : memref<1x4x4x32x8xf32, #tpu.memory_space<vmem>>, vector<1x1x1x32x8xf32>
    %154 = vector.shape_cast %153 : vector<1x1x1x32x8xf32> to vector<32x8xf32>
    %cst_110 = arith.constant dense<0.000000e+00> : vector<16x8xf32>
    %155 = tpu.matmul %3, %154, %cst_110 {dimension_numbers = #tpu.dot_dimension_numbers<[1], [0], [0], [1], [0, 0, 1, 1], [], []>} : vector<16x32xf32>, vector<32x8xf32>, vector<16x8xf32> -> vector<16x8xf32>
    %156 = vector.extract_strided_slice %7 {offsets = [11, 0], sizes = [1, 8], strides = [1, 1]} : vector<32x128xf32> to vector<1x8xf32>
    %157 = vector.broadcast %156 : vector<1x8xf32> to vector<16x8xf32>
    %158 = arith.addf %155, %157 : vector<16x8xf32>
    %159 = vector.shape_cast %158 : vector<16x8xf32> to vector<2x8x8xf32>
    "tpu.trace_start"() <{level = 10 : i32, message = "bqd,bkd->bqk"}> : () -> ()
    %cst_111 = arith.constant dense<0.000000e+00> : vector<2x8x8xf32>
    %160 = tpu.matmul %145, %152, %cst_111 {dimension_numbers = #tpu.dot_dimension_numbers<[2], [2], [1], [1], [0, 0, 0, 1, 1, 1], [0], [0]>} : vector<2x8x8xf32>, vector<2x8x8xf32>, vector<2x8x8xf32> -> vector<2x8x8xf32>
    "tpu.trace_stop"() : () -> ()
    %cst_112 = arith.constant 0.353553385 : f32
    %161 = vector.broadcast %cst_112 : f32 to vector<2x8x8xf32>
    %162 = arith.mulf %160, %161 : vector<2x8x8xf32>
    %163 = vector.shape_cast %5 : vector<8x8xf32> to vector<1x8x8xf32>
    %164 = vector.broadcast %163 : vector<1x8x8xf32> to vector<2x8x8xf32>
    %165 = arith.addf %162, %164 : vector<2x8x8xf32>
    %cst_113 = arith.constant dense<0xFF800000> : vector<2x8xf32>
    %166 = vector.multi_reduction <maximumf>, %165, %cst_113 [2] : vector<2x8x8xf32> to vector<2x8xf32>
    %167 = vector.shape_cast %166 : vector<2x8xf32> to vector<2x8x1xf32>
    %168 = vector.broadcast %167 : vector<2x8x1xf32> to vector<2x8x8xf32>
    %169 = arith.subf %165, %168 : vector<2x8x8xf32>
    %170 = math.exp %169 : vector<2x8x8xf32>
    %cst_114 = arith.constant dense<0.000000e+00> : vector<2x8xf32>
    %171 = vector.multi_reduction <add>, %170, %cst_114 [2] : vector<2x8x8xf32> to vector<2x8xf32>
    %172 = vector.shape_cast %171 : vector<2x8xf32> to vector<2x8x1xf32>
    %173 = tpu.reciprocal %172 {approx = true} : vector<2x8x1xf32> -> vector<2x8x1xf32>
    %174 = vector.broadcast %173 : vector<2x8x1xf32> to vector<2x8x8xf32>
    %175 = arith.mulf %170, %174 : vector<2x8x8xf32>
    "tpu.trace_start"() <{level = 10 : i32, message = "bqk,bkd->bqd"}> : () -> ()
    %cst_115 = arith.constant dense<0.000000e+00> : vector<2x8x8xf32>
    %176 = tpu.matmul %175, %159, %cst_115 {dimension_numbers = #tpu.dot_dimension_numbers<[2], [1], [1], [2], [0, 0, 0, 1, 1, 2], [0], [0]>} : vector<2x8x8xf32>, vector<2x8x8xf32>, vector<2x8x8xf32> -> vector<2x8x8xf32>
    "tpu.trace_stop"() : () -> ()
    %177 = vector.shape_cast %176 : vector<2x8x8xf32> to vector<16x8xf32>
    %c0_116 = arith.constant 0 : index
    %c0_117 = arith.constant 0 : index
    %c3_118 = arith.constant 3 : index
    %c0_119 = arith.constant 0 : index
    %c0_120 = arith.constant 0 : index
    %178 = vector.load %arg11[%c0_116, %c0_117, %c3_118, %c0_119, %c0_120] : memref<1x2x4x8x32xf32, #tpu.memory_space<vmem>>, vector<1x1x1x8x32xf32>
    %179 = vector.shape_cast %178 : vector<1x1x1x8x32xf32> to vector<8x32xf32>
    %cst_121 = arith.constant dense<0.000000e+00> : vector<16x32xf32>
    %180 = tpu.matmul %177, %179, %cst_121 {dimension_numbers = #tpu.dot_dimension_numbers<[1], [0], [0], [1], [0, 0, 1, 1], [], []>} : vector<16x8xf32>, vector<8x32xf32>, vector<16x32xf32> -> vector<16x32xf32>
    %181 = arith.addf %138, %180 : vector<16x32xf32>
    %182 = vector.extract_strided_slice %7 {offsets = [12, 0], sizes = [1, 32], strides = [1, 1]} : vector<32x128xf32> to vector<1x32xf32>
    %183 = vector.broadcast %182 : vector<1x32xf32> to vector<16x32xf32>
    %184 = arith.addf %181, %183 : vector<16x32xf32>
    %185 = vector.extract_strided_slice %7 {offsets = [13, 0], sizes = [1, 32], strides = [1, 1]} : vector<32x128xf32> to vector<1x32xf32>
    %186 = vector.extract_strided_slice %7 {offsets = [14, 0], sizes = [1, 32], strides = [1, 1]} : vector<32x128xf32> to vector<1x32xf32>
    %187 = arith.addf %3, %184 : vector<16x32xf32>
    %cst_122 = arith.constant dense<0.000000e+00> : vector<16xf32>
    %188 = vector.multi_reduction <add>, %187, %cst_122 [1] : vector<16x32xf32> to vector<16xf32>
    %189 = vector.shape_cast %188 : vector<16xf32> to vector<16x1xf32>
    %cst_123 = arith.constant 3.200000e+01 : f32
    %190 = vector.broadcast %cst_123 : f32 to vector<16x1xf32>
    %191 = arith.divf %189, %190 : vector<16x1xf32>
    %192 = vector.broadcast %191 : vector<16x1xf32> to vector<16x32xf32>
    %193 = arith.subf %187, %192 : vector<16x32xf32>
    %194 = arith.mulf %193, %193 : vector<16x32xf32>
    %cst_124 = arith.constant dense<0.000000e+00> : vector<16xf32>
    %195 = vector.multi_reduction <add>, %194, %cst_124 [1] : vector<16x32xf32> to vector<16xf32>
    %196 = vector.shape_cast %195 : vector<16xf32> to vector<16x1xf32>
    %cst_125 = arith.constant 3.200000e+01 : f32
    %197 = vector.broadcast %cst_125 : f32 to vector<16x1xf32>
    %198 = arith.divf %196, %197 : vector<16x1xf32>
    %199 = vector.broadcast %191 : vector<16x1xf32> to vector<16x32xf32>
    %200 = arith.subf %187, %199 : vector<16x32xf32>
    %cst_126 = arith.constant 9.99999974E-6 : f32
    %201 = vector.broadcast %cst_126 : f32 to vector<16x1xf32>
    %202 = arith.addf %198, %201 : vector<16x1xf32>
    %203 = math.rsqrt %202 : vector<16x1xf32>
    %204 = vector.broadcast %203 : vector<16x1xf32> to vector<16x32xf32>
    %205 = arith.mulf %200, %204 : vector<16x32xf32>
    %206 = vector.broadcast %185 : vector<1x32xf32> to vector<16x32xf32>
    %207 = arith.mulf %205, %206 : vector<16x32xf32>
    %208 = vector.broadcast %186 : vector<1x32xf32> to vector<16x32xf32>
    %209 = arith.addf %207, %208 : vector<16x32xf32>
    %210 = arith.addf %209, %4 : vector<16x32xf32>
    %c0_127 = arith.constant 0 : index
    %c0_128 = arith.constant 0 : index
    %c0_129 = arith.constant 0 : index
    %c0_130 = arith.constant 0 : index
    %211 = vector.load %arg12[%c0_127, %c0_128, %c0_129, %c0_130] : memref<1x3x32x16xf32, #tpu.memory_space<vmem>>, vector<1x1x32x16xf32>
    %212 = vector.shape_cast %211 : vector<1x1x32x16xf32> to vector<32x16xf32>
    %cst_131 = arith.constant dense<0.000000e+00> : vector<16x16xf32>
    %213 = tpu.matmul %210, %212, %cst_131 {dimension_numbers = #tpu.dot_dimension_numbers<[1], [0], [0], [1], [0, 0, 1, 1], [], []>} : vector<16x32xf32>, vector<32x16xf32>, vector<16x16xf32> -> vector<16x16xf32>
    %214 = vector.extract_strided_slice %7 {offsets = [19, 0], sizes = [1, 16], strides = [1, 1]} : vector<32x128xf32> to vector<1x16xf32>
    %215 = vector.broadcast %214 : vector<1x16xf32> to vector<16x16xf32>
    %216 = arith.addf %213, %215 : vector<16x16xf32>
    %c0_132 = arith.constant 0 : index
    %c1_133 = arith.constant 1 : index
    %c0_134 = arith.constant 0 : index
    %c0_135 = arith.constant 0 : index
    %217 = vector.load %arg12[%c0_132, %c1_133, %c0_134, %c0_135] : memref<1x3x32x16xf32, #tpu.memory_space<vmem>>, vector<1x1x32x16xf32>
    %218 = vector.shape_cast %217 : vector<1x1x32x16xf32> to vector<32x16xf32>
    %cst_136 = arith.constant dense<0.000000e+00> : vector<16x16xf32>
    %219 = tpu.matmul %210, %218, %cst_136 {dimension_numbers = #tpu.dot_dimension_numbers<[1], [0], [0], [1], [0, 0, 1, 1], [], []>} : vector<16x32xf32>, vector<32x16xf32>, vector<16x16xf32> -> vector<16x16xf32>
    %220 = vector.extract_strided_slice %7 {offsets = [20, 0], sizes = [1, 16], strides = [1, 1]} : vector<32x128xf32> to vector<1x16xf32>
    %221 = vector.broadcast %220 : vector<1x16xf32> to vector<16x16xf32>
    %222 = arith.addf %219, %221 : vector<16x16xf32>
    %c0_137 = arith.constant 0 : index
    %c2_138 = arith.constant 2 : index
    %c0_139 = arith.constant 0 : index
    %c0_140 = arith.constant 0 : index
    %223 = vector.load %arg12[%c0_137, %c2_138, %c0_139, %c0_140] : memref<1x3x32x16xf32, #tpu.memory_space<vmem>>, vector<1x1x32x16xf32>
    %224 = vector.shape_cast %223 : vector<1x1x32x16xf32> to vector<32x16xf32>
    %cst_141 = arith.constant dense<0.000000e+00> : vector<16x16xf32>
    %225 = tpu.matmul %210, %224, %cst_141 {dimension_numbers = #tpu.dot_dimension_numbers<[1], [0], [0], [1], [0, 0, 1, 1], [], []>} : vector<16x32xf32>, vector<32x16xf32>, vector<16x16xf32> -> vector<16x16xf32>
    %226 = vector.extract_strided_slice %7 {offsets = [21, 0], sizes = [1, 16], strides = [1, 1]} : vector<32x128xf32> to vector<1x16xf32>
    %227 = vector.broadcast %226 : vector<1x16xf32> to vector<16x16xf32>
    %228 = arith.addf %225, %227 : vector<16x16xf32>
    %c0_142 = arith.constant 0 : index
    %c0_143 = arith.constant 0 : index
    %c0_144 = arith.constant 0 : index
    %229 = vector.load %arg6[%c0_142, %c0_143, %c0_144] : memref<4x16x16xf32, #tpu.memory_space<vmem>>, vector<4x16x16xf32>
    %230 = vector.extract_strided_slice %229 {offsets = [0, 0, 0], sizes = [1, 16, 16], strides = [1, 1, 1]} : vector<4x16x16xf32> to vector<1x16x16xf32>
    %231 = vector.shape_cast %230 : vector<1x16x16xf32> to vector<16x16xf32>
    %232 = vector.extract_strided_slice %229 {offsets = [2, 0, 0], sizes = [1, 16, 16], strides = [1, 1, 1]} : vector<4x16x16xf32> to vector<1x16x16xf32>
    %233 = vector.shape_cast %232 : vector<1x16x16xf32> to vector<16x16xf32>
    %234 = arith.mulf %216, %233 : vector<16x16xf32>
    %235 = arith.addf %231, %234 : vector<16x16xf32>
    %236 = vector.extract_strided_slice %229 {offsets = [1, 0, 0], sizes = [1, 16, 16], strides = [1, 1, 1]} : vector<4x16x16xf32> to vector<1x16x16xf32>
    %237 = vector.shape_cast %236 : vector<1x16x16xf32> to vector<16x16xf32>
    %238 = vector.extract_strided_slice %229 {offsets = [3, 0, 0], sizes = [1, 16, 16], strides = [1, 1, 1]} : vector<4x16x16xf32> to vector<1x16x16xf32>
    %239 = vector.shape_cast %238 : vector<1x16x16xf32> to vector<16x16xf32>
    %240 = arith.mulf %222, %239 : vector<16x16xf32>
    %241 = arith.addf %237, %240 : vector<16x16xf32>
    %c0_145 = arith.constant 0 : index
    %c0_146 = arith.constant 0 : index
    %242 = vector.load %arg8[%c0_145, %c0_146] : memref<4x16xf32, #tpu.memory_space<vmem>>, vector<4x16xf32>
    %cst_147 = arith.constant 1.000000e+00 : f32
    %243 = vector.broadcast %cst_147 : f32 to vector<4x16xf32>
    %244 = arith.subf %243, %242 : vector<4x16xf32>
    %cst_148 = arith.constant -1.000000e+30 : f32
    %245 = vector.broadcast %cst_148 : f32 to vector<4x16xf32>
    %246 = arith.mulf %244, %245 : vector<4x16xf32>
    %247 = vector.shape_cast %228 : vector<16x16xf32> to vector<16x1x16xf32>
    %248 = vector.shape_cast %246 : vector<4x16xf32> to vector<1x4x16xf32>
    %249 = vector.broadcast %247 : vector<16x1x16xf32> to vector<16x4x16xf32>
    %250 = vector.broadcast %248 : vector<1x4x16xf32> to vector<16x4x16xf32>
    %251 = arith.addf %249, %250 : vector<16x4x16xf32>
    %cst_149 = arith.constant dense<0xFF800000> : vector<16x4xf32>
    %252 = vector.multi_reduction <maximumf>, %251, %cst_149 [2] : vector<16x4x16xf32> to vector<16x4xf32>
    %cst_150 = arith.constant dense<0.000000e+00> : vector<16x16xf32>
    %253 = tpu.matmul %252, %242, %cst_150 {dimension_numbers = #tpu.dot_dimension_numbers<[1], [0], [0], [1], [0, 0, 1, 1], [], []>} : vector<16x4xf32>, vector<4x16xf32>, vector<16x16xf32> -> vector<16x16xf32>
    %254 = arith.subf %228, %253 : vector<16x16xf32>
    %255 = math.exp %254 : vector<16x16xf32>
    %cst_151 = arith.constant dense<0.000000e+00> : vector<16x4xf32>
    %256 = tpu.matmul %255, %242, %cst_151 {dimension_numbers = #tpu.dot_dimension_numbers<[1], [1], [0], [0], [0, 0, 1, 0], [], []>} : vector<16x16xf32>, vector<4x16xf32>, vector<16x4xf32> -> vector<16x4xf32>
    %cst_152 = arith.constant dense<0.000000e+00> : vector<16x16xf32>
    %257 = tpu.matmul %256, %242, %cst_152 {dimension_numbers = #tpu.dot_dimension_numbers<[1], [0], [0], [1], [0, 0, 1, 1], [], []>} : vector<16x4xf32>, vector<4x16xf32>, vector<16x16xf32> -> vector<16x16xf32>
    %258 = tpu.reciprocal %257 {approx = true} : vector<16x16xf32> -> vector<16x16xf32>
    %259 = arith.mulf %255, %258 : vector<16x16xf32>
    %c0_153 = arith.constant 0 : index
    %c0_154 = arith.constant 0 : index
    %c0_155 = arith.constant 0 : index
    %260 = vector.load %arg7[%c0_153, %c0_154, %c0_155] : memref<2x16x80xf32, #tpu.memory_space<vmem>>, vector<1x16x80xf32>
    %261 = vector.shape_cast %260 : vector<1x16x80xf32> to vector<16x80xf32>
    %c1_156 = arith.constant 1 : index
    %c0_157 = arith.constant 0 : index
    %c0_158 = arith.constant 0 : index
    %262 = vector.load %arg7[%c1_156, %c0_157, %c0_158] : memref<2x16x80xf32, #tpu.memory_space<vmem>>, vector<1x16x80xf32>
    %263 = vector.shape_cast %262 : vector<1x16x80xf32> to vector<16x80xf32>
    %264 = vector.shape_cast %235 : vector<16x16xf32> to vector<16x16x1xf32>
    %265 = vector.shape_cast %261 : vector<16x80xf32> to vector<1x16x80xf32>
    %266 = vector.broadcast %264 : vector<16x16x1xf32> to vector<16x16x80xf32>
    %267 = vector.broadcast %265 : vector<1x16x80xf32> to vector<16x16x80xf32>
    %268 = arith.subf %266, %267 : vector<16x16x80xf32>
    %269 = math.absf %268 : vector<16x16x80xf32>
    %cst_159 = arith.constant 1.000000e+00 : f32
    %270 = vector.broadcast %cst_159 : f32 to vector<16x16x80xf32>
    %271 = arith.subf %270, %269 : vector<16x16x80xf32>
    %cst_160 = arith.constant 0.000000e+00 : f32
    %272 = vector.broadcast %cst_160 : f32 to vector<16x16x80xf32>
    %273 = arith.maximumf %272, %271 : vector<16x16x80xf32>
    %274 = vector.shape_cast %241 : vector<16x16xf32> to vector<16x16x1xf32>
    %275 = vector.shape_cast %263 : vector<16x80xf32> to vector<1x16x80xf32>
    %276 = vector.broadcast %274 : vector<16x16x1xf32> to vector<16x16x80xf32>
    %277 = vector.broadcast %275 : vector<1x16x80xf32> to vector<16x16x80xf32>
    %278 = arith.subf %276, %277 : vector<16x16x80xf32>
    %279 = math.absf %278 : vector<16x16x80xf32>
    %cst_161 = arith.constant 1.000000e+00 : f32
    %280 = vector.broadcast %cst_161 : f32 to vector<16x16x80xf32>
    %281 = arith.subf %280, %279 : vector<16x16x80xf32>
    %cst_162 = arith.constant 0.000000e+00 : f32
    %282 = vector.broadcast %cst_162 : f32 to vector<16x16x80xf32>
    %283 = arith.maximumf %282, %281 : vector<16x16x80xf32>
    %284 = arith.mulf %273, %283 : vector<16x16x80xf32>
    %285 = vector.shape_cast %259 : vector<16x16xf32> to vector<16x16x1xf32>
    %286 = vector.broadcast %285 : vector<16x16x1xf32> to vector<16x16x80xf32>
    %287 = arith.mulf %286, %284 : vector<16x16x80xf32>
    %c0_163 = arith.constant 0 : index
    %c0_164 = arith.constant 0 : index
    %288 = vector.load %arg4[%c0_163, %c0_164] : memref<160x32xf32, #tpu.memory_space<vmem>>, vector<160x32xf32>
    %c0_165 = arith.constant 0 : index
    %c0_166 = arith.constant 0 : index
    %289 = vector.load %arg5[%c0_165, %c0_166] : memref<2x80xf32, #tpu.memory_space<vmem>>, vector<2x80xf32>
    %cst_167 = arith.constant 0.000000e+00 : f32
    %290 = vector.broadcast %cst_167 : f32 to vector<16x32xf32>
    %291 = vector.extract_strided_slice %287 {offsets = [0, 0, 0], sizes = [16, 4, 80], strides = [1, 1, 1]} : vector<16x16x80xf32> to vector<16x4x80xf32>
    %cst_168 = arith.constant dense<0.000000e+00> : vector<16x80xf32>
    %292 = vector.multi_reduction <add>, %291, %cst_168 [1] : vector<16x4x80xf32> to vector<16x80xf32>
    %c0_169 = arith.constant 0 : index
    %c3_170 = arith.constant 3 : index
    %c0_171 = arith.constant 0 : index
    %c0_172 = arith.constant 0 : index
    %c0_173 = arith.constant 0 : index
    %293 = vector.load %arg10[%c0_169, %c3_170, %c0_171, %c0_172, %c0_173] : memref<1x4x4x32x8xf32, #tpu.memory_space<vmem>>, vector<1x1x1x32x8xf32>
    %294 = vector.shape_cast %293 : vector<1x1x1x32x8xf32> to vector<32x8xf32>
    %cst_174 = arith.constant dense<0.000000e+00> : vector<160x8xf32>
    %295 = tpu.matmul %288, %294, %cst_174 {dimension_numbers = #tpu.dot_dimension_numbers<[1], [0], [0], [1], [0, 0, 1, 1], [], []>} : vector<160x32xf32>, vector<32x8xf32>, vector<160x8xf32> -> vector<160x8xf32>
    %296 = vector.extract_strided_slice %7 {offsets = [15, 0], sizes = [1, 8], strides = [1, 1]} : vector<32x128xf32> to vector<1x8xf32>
    %297 = vector.broadcast %296 : vector<1x8xf32> to vector<160x8xf32>
    %298 = arith.addf %295, %297 : vector<160x8xf32>
    %299 = vector.shape_cast %298 : vector<160x8xf32> to vector<2x80x8xf32>
    %300 = vector.shape_cast %289 : vector<2x80xf32> to vector<2x80x1xf32>
    %301 = vector.broadcast %300 : vector<2x80x1xf32> to vector<2x80x8xf32>
    %302 = arith.mulf %299, %301 : vector<2x80x8xf32>
    %303 = vector.shape_cast %292 : vector<16x80xf32> to vector<2x8x80xf32>
    "tpu.trace_start"() <{level = 10 : i32, message = "bqs,bsd->bqd"}> : () -> ()
    %cst_175 = arith.constant dense<0.000000e+00> : vector<2x8x8xf32>
    %304 = tpu.matmul %303, %302, %cst_175 {dimension_numbers = #tpu.dot_dimension_numbers<[2], [1], [1], [2], [0, 0, 0, 1, 1, 2], [0], [0]>} : vector<2x8x80xf32>, vector<2x80x8xf32>, vector<2x8x8xf32> -> vector<2x8x8xf32>
    "tpu.trace_stop"() : () -> ()
    %305 = vector.shape_cast %304 : vector<2x8x8xf32> to vector<16x8xf32>
    %c0_176 = arith.constant 0 : index
    %c1_177 = arith.constant 1 : index
    %c0_178 = arith.constant 0 : index
    %c0_179 = arith.constant 0 : index
    %c0_180 = arith.constant 0 : index
    %306 = vector.load %arg11[%c0_176, %c1_177, %c0_178, %c0_179, %c0_180] : memref<1x2x4x8x32xf32, #tpu.memory_space<vmem>>, vector<1x1x1x8x32xf32>
    %307 = vector.shape_cast %306 : vector<1x1x1x8x32xf32> to vector<8x32xf32>
    %cst_181 = arith.constant dense<0.000000e+00> : vector<16x32xf32>
    %308 = tpu.matmul %305, %307, %cst_181 {dimension_numbers = #tpu.dot_dimension_numbers<[1], [0], [0], [1], [0, 0, 1, 1], [], []>} : vector<16x8xf32>, vector<8x32xf32>, vector<16x32xf32> -> vector<16x32xf32>
    %309 = arith.addf %290, %308 : vector<16x32xf32>
    %310 = vector.extract_strided_slice %287 {offsets = [0, 4, 0], sizes = [16, 4, 80], strides = [1, 1, 1]} : vector<16x16x80xf32> to vector<16x4x80xf32>
    %cst_182 = arith.constant dense<0.000000e+00> : vector<16x80xf32>
    %311 = vector.multi_reduction <add>, %310, %cst_182 [1] : vector<16x4x80xf32> to vector<16x80xf32>
    %c0_183 = arith.constant 0 : index
    %c3_184 = arith.constant 3 : index
    %c1_185 = arith.constant 1 : index
    %c0_186 = arith.constant 0 : index
    %c0_187 = arith.constant 0 : index
    %312 = vector.load %arg10[%c0_183, %c3_184, %c1_185, %c0_186, %c0_187] : memref<1x4x4x32x8xf32, #tpu.memory_space<vmem>>, vector<1x1x1x32x8xf32>
    %313 = vector.shape_cast %312 : vector<1x1x1x32x8xf32> to vector<32x8xf32>
    %cst_188 = arith.constant dense<0.000000e+00> : vector<160x8xf32>
    %314 = tpu.matmul %288, %313, %cst_188 {dimension_numbers = #tpu.dot_dimension_numbers<[1], [0], [0], [1], [0, 0, 1, 1], [], []>} : vector<160x32xf32>, vector<32x8xf32>, vector<160x8xf32> -> vector<160x8xf32>
    %315 = vector.extract_strided_slice %7 {offsets = [16, 0], sizes = [1, 8], strides = [1, 1]} : vector<32x128xf32> to vector<1x8xf32>
    %316 = vector.broadcast %315 : vector<1x8xf32> to vector<160x8xf32>
    %317 = arith.addf %314, %316 : vector<160x8xf32>
    %318 = vector.shape_cast %317 : vector<160x8xf32> to vector<2x80x8xf32>
    %319 = vector.shape_cast %289 : vector<2x80xf32> to vector<2x80x1xf32>
    %320 = vector.broadcast %319 : vector<2x80x1xf32> to vector<2x80x8xf32>
    %321 = arith.mulf %318, %320 : vector<2x80x8xf32>
    %322 = vector.shape_cast %311 : vector<16x80xf32> to vector<2x8x80xf32>
    "tpu.trace_start"() <{level = 10 : i32, message = "bqs,bsd->bqd"}> : () -> ()
    %cst_189 = arith.constant dense<0.000000e+00> : vector<2x8x8xf32>
    %323 = tpu.matmul %322, %321, %cst_189 {dimension_numbers = #tpu.dot_dimension_numbers<[2], [1], [1], [2], [0, 0, 0, 1, 1, 2], [0], [0]>} : vector<2x8x80xf32>, vector<2x80x8xf32>, vector<2x8x8xf32> -> vector<2x8x8xf32>
    "tpu.trace_stop"() : () -> ()
    %324 = vector.shape_cast %323 : vector<2x8x8xf32> to vector<16x8xf32>
    %c0_190 = arith.constant 0 : index
    %c1_191 = arith.constant 1 : index
    %c1_192 = arith.constant 1 : index
    %c0_193 = arith.constant 0 : index
    %c0_194 = arith.constant 0 : index
    %325 = vector.load %arg11[%c0_190, %c1_191, %c1_192, %c0_193, %c0_194] : memref<1x2x4x8x32xf32, #tpu.memory_space<vmem>>, vector<1x1x1x8x32xf32>
    %326 = vector.shape_cast %325 : vector<1x1x1x8x32xf32> to vector<8x32xf32>
    %cst_195 = arith.constant dense<0.000000e+00> : vector<16x32xf32>
    %327 = tpu.matmul %324, %326, %cst_195 {dimension_numbers = #tpu.dot_dimension_numbers<[1], [0], [0], [1], [0, 0, 1, 1], [], []>} : vector<16x8xf32>, vector<8x32xf32>, vector<16x32xf32> -> vector<16x32xf32>
    %328 = arith.addf %309, %327 : vector<16x32xf32>
    %329 = vector.extract_strided_slice %287 {offsets = [0, 8, 0], sizes = [16, 4, 80], strides = [1, 1, 1]} : vector<16x16x80xf32> to vector<16x4x80xf32>
    %cst_196 = arith.constant dense<0.000000e+00> : vector<16x80xf32>
    %330 = vector.multi_reduction <add>, %329, %cst_196 [1] : vector<16x4x80xf32> to vector<16x80xf32>
    %c0_197 = arith.constant 0 : index
    %c3_198 = arith.constant 3 : index
    %c2_199 = arith.constant 2 : index
    %c0_200 = arith.constant 0 : index
    %c0_201 = arith.constant 0 : index
    %331 = vector.load %arg10[%c0_197, %c3_198, %c2_199, %c0_200, %c0_201] : memref<1x4x4x32x8xf32, #tpu.memory_space<vmem>>, vector<1x1x1x32x8xf32>
    %332 = vector.shape_cast %331 : vector<1x1x1x32x8xf32> to vector<32x8xf32>
    %cst_202 = arith.constant dense<0.000000e+00> : vector<160x8xf32>
    %333 = tpu.matmul %288, %332, %cst_202 {dimension_numbers = #tpu.dot_dimension_numbers<[1], [0], [0], [1], [0, 0, 1, 1], [], []>} : vector<160x32xf32>, vector<32x8xf32>, vector<160x8xf32> -> vector<160x8xf32>
    %334 = vector.extract_strided_slice %7 {offsets = [17, 0], sizes = [1, 8], strides = [1, 1]} : vector<32x128xf32> to vector<1x8xf32>
    %335 = vector.broadcast %334 : vector<1x8xf32> to vector<160x8xf32>
    %336 = arith.addf %333, %335 : vector<160x8xf32>
    %337 = vector.shape_cast %336 : vector<160x8xf32> to vector<2x80x8xf32>
    %338 = vector.shape_cast %289 : vector<2x80xf32> to vector<2x80x1xf32>
    %339 = vector.broadcast %338 : vector<2x80x1xf32> to vector<2x80x8xf32>
    %340 = arith.mulf %337, %339 : vector<2x80x8xf32>
    %341 = vector.shape_cast %330 : vector<16x80xf32> to vector<2x8x80xf32>
    "tpu.trace_start"() <{level = 10 : i32, message = "bqs,bsd->bqd"}> : () -> ()
    %cst_203 = arith.constant dense<0.000000e+00> : vector<2x8x8xf32>
    %342 = tpu.matmul %341, %340, %cst_203 {dimension_numbers = #tpu.dot_dimension_numbers<[2], [1], [1], [2], [0, 0, 0, 1, 1, 2], [0], [0]>} : vector<2x8x80xf32>, vector<2x80x8xf32>, vector<2x8x8xf32> -> vector<2x8x8xf32>
    "tpu.trace_stop"() : () -> ()
    %343 = vector.shape_cast %342 : vector<2x8x8xf32> to vector<16x8xf32>
    %c0_204 = arith.constant 0 : index
    %c1_205 = arith.constant 1 : index
    %c2_206 = arith.constant 2 : index
    %c0_207 = arith.constant 0 : index
    %c0_208 = arith.constant 0 : index
    %344 = vector.load %arg11[%c0_204, %c1_205, %c2_206, %c0_207, %c0_208] : memref<1x2x4x8x32xf32, #tpu.memory_space<vmem>>, vector<1x1x1x8x32xf32>
    %345 = vector.shape_cast %344 : vector<1x1x1x8x32xf32> to vector<8x32xf32>
    %cst_209 = arith.constant dense<0.000000e+00> : vector<16x32xf32>
    %346 = tpu.matmul %343, %345, %cst_209 {dimension_numbers = #tpu.dot_dimension_numbers<[1], [0], [0], [1], [0, 0, 1, 1], [], []>} : vector<16x8xf32>, vector<8x32xf32>, vector<16x32xf32> -> vector<16x32xf32>
    %347 = arith.addf %328, %346 : vector<16x32xf32>
    %348 = vector.extract_strided_slice %287 {offsets = [0, 12, 0], sizes = [16, 4, 80], strides = [1, 1, 1]} : vector<16x16x80xf32> to vector<16x4x80xf32>
    %cst_210 = arith.constant dense<0.000000e+00> : vector<16x80xf32>
    %349 = vector.multi_reduction <add>, %348, %cst_210 [1] : vector<16x4x80xf32> to vector<16x80xf32>
    %c0_211 = arith.constant 0 : index
    %c3_212 = arith.constant 3 : index
    %c3_213 = arith.constant 3 : index
    %c0_214 = arith.constant 0 : index
    %c0_215 = arith.constant 0 : index
    %350 = vector.load %arg10[%c0_211, %c3_212, %c3_213, %c0_214, %c0_215] : memref<1x4x4x32x8xf32, #tpu.memory_space<vmem>>, vector<1x1x1x32x8xf32>
    %351 = vector.shape_cast %350 : vector<1x1x1x32x8xf32> to vector<32x8xf32>
    %cst_216 = arith.constant dense<0.000000e+00> : vector<160x8xf32>
    %352 = tpu.matmul %288, %351, %cst_216 {dimension_numbers = #tpu.dot_dimension_numbers<[1], [0], [0], [1], [0, 0, 1, 1], [], []>} : vector<160x32xf32>, vector<32x8xf32>, vector<160x8xf32> -> vector<160x8xf32>
    %353 = vector.extract_strided_slice %7 {offsets = [18, 0], sizes = [1, 8], strides = [1, 1]} : vector<32x128xf32> to vector<1x8xf32>
    %354 = vector.broadcast %353 : vector<1x8xf32> to vector<160x8xf32>
    %355 = arith.addf %352, %354 : vector<160x8xf32>
    %356 = vector.shape_cast %355 : vector<160x8xf32> to vector<2x80x8xf32>
    %357 = vector.shape_cast %289 : vector<2x80xf32> to vector<2x80x1xf32>
    %358 = vector.broadcast %357 : vector<2x80x1xf32> to vector<2x80x8xf32>
    %359 = arith.mulf %356, %358 : vector<2x80x8xf32>
    %360 = vector.shape_cast %349 : vector<16x80xf32> to vector<2x8x80xf32>
    "tpu.trace_start"() <{level = 10 : i32, message = "bqs,bsd->bqd"}> : () -> ()
    %cst_217 = arith.constant dense<0.000000e+00> : vector<2x8x8xf32>
    %361 = tpu.matmul %360, %359, %cst_217 {dimension_numbers = #tpu.dot_dimension_numbers<[2], [1], [1], [2], [0, 0, 0, 1, 1, 2], [0], [0]>} : vector<2x8x80xf32>, vector<2x80x8xf32>, vector<2x8x8xf32> -> vector<2x8x8xf32>
    "tpu.trace_stop"() : () -> ()
    %362 = vector.shape_cast %361 : vector<2x8x8xf32> to vector<16x8xf32>
    %c0_218 = arith.constant 0 : index
    %c1_219 = arith.constant 1 : index
    %c3_220 = arith.constant 3 : index
    %c0_221 = arith.constant 0 : index
    %c0_222 = arith.constant 0 : index
    %363 = vector.load %arg11[%c0_218, %c1_219, %c3_220, %c0_221, %c0_222] : memref<1x2x4x8x32xf32, #tpu.memory_space<vmem>>, vector<1x1x1x8x32xf32>
    %364 = vector.shape_cast %363 : vector<1x1x1x8x32xf32> to vector<8x32xf32>
    %cst_223 = arith.constant dense<0.000000e+00> : vector<16x32xf32>
    %365 = tpu.matmul %362, %364, %cst_223 {dimension_numbers = #tpu.dot_dimension_numbers<[1], [0], [0], [1], [0, 0, 1, 1], [], []>} : vector<16x8xf32>, vector<8x32xf32>, vector<16x32xf32> -> vector<16x32xf32>
    %366 = arith.addf %347, %365 : vector<16x32xf32>
    %367 = vector.extract_strided_slice %7 {offsets = [22, 0], sizes = [1, 32], strides = [1, 1]} : vector<32x128xf32> to vector<1x32xf32>
    %368 = vector.broadcast %367 : vector<1x32xf32> to vector<16x32xf32>
    %369 = arith.addf %366, %368 : vector<16x32xf32>
    %370 = vector.extract_strided_slice %7 {offsets = [23, 0], sizes = [1, 32], strides = [1, 1]} : vector<32x128xf32> to vector<1x32xf32>
    %371 = vector.extract_strided_slice %7 {offsets = [24, 0], sizes = [1, 32], strides = [1, 1]} : vector<32x128xf32> to vector<1x32xf32>
    %372 = arith.addf %209, %369 : vector<16x32xf32>
    %cst_224 = arith.constant dense<0.000000e+00> : vector<16xf32>
    %373 = vector.multi_reduction <add>, %372, %cst_224 [1] : vector<16x32xf32> to vector<16xf32>
    %374 = vector.shape_cast %373 : vector<16xf32> to vector<16x1xf32>
    %cst_225 = arith.constant 3.200000e+01 : f32
    %375 = vector.broadcast %cst_225 : f32 to vector<16x1xf32>
    %376 = arith.divf %374, %375 : vector<16x1xf32>
    %377 = vector.broadcast %376 : vector<16x1xf32> to vector<16x32xf32>
    %378 = arith.subf %372, %377 : vector<16x32xf32>
    %379 = arith.mulf %378, %378 : vector<16x32xf32>
    %cst_226 = arith.constant dense<0.000000e+00> : vector<16xf32>
    %380 = vector.multi_reduction <add>, %379, %cst_226 [1] : vector<16x32xf32> to vector<16xf32>
    %381 = vector.shape_cast %380 : vector<16xf32> to vector<16x1xf32>
    %cst_227 = arith.constant 3.200000e+01 : f32
    %382 = vector.broadcast %cst_227 : f32 to vector<16x1xf32>
    %383 = arith.divf %381, %382 : vector<16x1xf32>
    %384 = vector.broadcast %376 : vector<16x1xf32> to vector<16x32xf32>
    %385 = arith.subf %372, %384 : vector<16x32xf32>
    %cst_228 = arith.constant 9.99999974E-6 : f32
    %386 = vector.broadcast %cst_228 : f32 to vector<16x1xf32>
    %387 = arith.addf %383, %386 : vector<16x1xf32>
    %388 = math.rsqrt %387 : vector<16x1xf32>
    %389 = vector.broadcast %388 : vector<16x1xf32> to vector<16x32xf32>
    %390 = arith.mulf %385, %389 : vector<16x32xf32>
    %391 = vector.broadcast %370 : vector<1x32xf32> to vector<16x32xf32>
    %392 = arith.mulf %390, %391 : vector<16x32xf32>
    %393 = vector.broadcast %371 : vector<1x32xf32> to vector<16x32xf32>
    %394 = arith.addf %392, %393 : vector<16x32xf32>
    %c0_229 = arith.constant 0 : index
    %c0_230 = arith.constant 0 : index
    %c0_231 = arith.constant 0 : index
    %395 = vector.load %arg13[%c0_229, %c0_230, %c0_231] : memref<1x32x64xf32, #tpu.memory_space<vmem>>, vector<1x32x64xf32>
    %396 = vector.shape_cast %395 : vector<1x32x64xf32> to vector<32x64xf32>
    %cst_232 = arith.constant dense<0.000000e+00> : vector<16x64xf32>
    %397 = tpu.matmul %394, %396, %cst_232 {dimension_numbers = #tpu.dot_dimension_numbers<[1], [0], [0], [1], [0, 0, 1, 1], [], []>} : vector<16x32xf32>, vector<32x64xf32>, vector<16x64xf32> -> vector<16x64xf32>
    %398 = vector.extract_strided_slice %7 {offsets = [25, 0], sizes = [1, 64], strides = [1, 1]} : vector<32x128xf32> to vector<1x64xf32>
    %399 = vector.broadcast %398 : vector<1x64xf32> to vector<16x64xf32>
    %400 = arith.addf %397, %399 : vector<16x64xf32>
    %cst_233 = arith.constant 0.000000e+00 : f32
    %401 = vector.broadcast %cst_233 : f32 to vector<16x64xf32>
    %402 = arith.maximumf %400, %401 : vector<16x64xf32>
    %c0_234 = arith.constant 0 : index
    %c0_235 = arith.constant 0 : index
    %c0_236 = arith.constant 0 : index
    %403 = vector.load %arg14[%c0_234, %c0_235, %c0_236] : memref<1x64x32xf32, #tpu.memory_space<vmem>>, vector<1x64x32xf32>
    %404 = vector.shape_cast %403 : vector<1x64x32xf32> to vector<64x32xf32>
    %cst_237 = arith.constant dense<0.000000e+00> : vector<16x32xf32>
    %405 = tpu.matmul %402, %404, %cst_237 {dimension_numbers = #tpu.dot_dimension_numbers<[1], [0], [0], [1], [0, 0, 1, 1], [], []>} : vector<16x64xf32>, vector<64x32xf32>, vector<16x32xf32> -> vector<16x32xf32>
    %406 = vector.extract_strided_slice %7 {offsets = [26, 0], sizes = [1, 32], strides = [1, 1]} : vector<32x128xf32> to vector<1x32xf32>
    %407 = vector.broadcast %406 : vector<1x32xf32> to vector<16x32xf32>
    %408 = arith.addf %405, %407 : vector<16x32xf32>
    %409 = vector.extract_strided_slice %7 {offsets = [27, 0], sizes = [1, 32], strides = [1, 1]} : vector<32x128xf32> to vector<1x32xf32>
    %410 = vector.extract_strided_slice %7 {offsets = [28, 0], sizes = [1, 32], strides = [1, 1]} : vector<32x128xf32> to vector<1x32xf32>
    %411 = arith.addf %394, %408 : vector<16x32xf32>
    %cst_238 = arith.constant dense<0.000000e+00> : vector<16xf32>
    %412 = vector.multi_reduction <add>, %411, %cst_238 [1] : vector<16x32xf32> to vector<16xf32>
    %413 = vector.shape_cast %412 : vector<16xf32> to vector<16x1xf32>
    %cst_239 = arith.constant 3.200000e+01 : f32
    %414 = vector.broadcast %cst_239 : f32 to vector<16x1xf32>
    %415 = arith.divf %413, %414 : vector<16x1xf32>
    %416 = vector.broadcast %415 : vector<16x1xf32> to vector<16x32xf32>
    %417 = arith.subf %411, %416 : vector<16x32xf32>
    %418 = arith.mulf %417, %417 : vector<16x32xf32>
    %cst_240 = arith.constant dense<0.000000e+00> : vector<16xf32>
    %419 = vector.multi_reduction <add>, %418, %cst_240 [1] : vector<16x32xf32> to vector<16xf32>
    %420 = vector.shape_cast %419 : vector<16xf32> to vector<16x1xf32>
    %cst_241 = arith.constant 3.200000e+01 : f32
    %421 = vector.broadcast %cst_241 : f32 to vector<16x1xf32>
    %422 = arith.divf %420, %421 : vector<16x1xf32>
    %423 = vector.broadcast %415 : vector<16x1xf32> to vector<16x32xf32>
    %424 = arith.subf %411, %423 : vector<16x32xf32>
    %cst_242 = arith.constant 9.99999974E-6 : f32
    %425 = vector.broadcast %cst_242 : f32 to vector<16x1xf32>
    %426 = arith.addf %422, %425 : vector<16x1xf32>
    %427 = math.rsqrt %426 : vector<16x1xf32>
    %428 = vector.broadcast %427 : vector<16x1xf32> to vector<16x32xf32>
    %429 = arith.mulf %424, %428 : vector<16x32xf32>
    %430 = vector.broadcast %409 : vector<1x32xf32> to vector<16x32xf32>
    %431 = arith.mulf %429, %430 : vector<16x32xf32>
    %432 = vector.broadcast %410 : vector<1x32xf32> to vector<16x32xf32>
    %433 = arith.addf %431, %432 : vector<16x32xf32>
    %c0_243 = arith.constant 0 : index
    %c0_244 = arith.constant 0 : index
    %434 = vector.load %arg17[%c0_243, %c0_244] : memref<16x32xf32, #tpu.memory_space<vmem>>, vector<16x32xf32>
    tpu.vector_store %arg17[%c0_243, %c0_244], %433 {strides = array<i32>} : memref<16x32xf32, #tpu.memory_space<vmem>>, vector<16x32xf32>,
    %c0_245 = arith.constant 0 : index
    %c0_246 = arith.constant 0 : index
    %435 = vector.load %arg9[%c0_245, %c0_246] : memref<2x32xf32, #tpu.memory_space<vmem>>, vector<2x32xf32>
    %cst_247 = arith.constant dense<0.000000e+00> : vector<16xf32>
    %436 = vector.multi_reduction <add>, %433, %cst_247 [1] : vector<16x32xf32> to vector<16xf32>
    %437 = vector.shape_cast %436 : vector<16xf32> to vector<16x1xf32>
    %cst_248 = arith.constant 3.200000e+01 : f32
    %438 = vector.broadcast %cst_248 : f32 to vector<16x1xf32>
    %439 = arith.divf %437, %438 : vector<16x1xf32>
    %440 = vector.broadcast %439 : vector<16x1xf32> to vector<16x32xf32>
    %441 = arith.subf %433, %440 : vector<16x32xf32>
    %442 = arith.mulf %441, %441 : vector<16x32xf32>
    %cst_249 = arith.constant dense<0.000000e+00> : vector<16xf32>
    %443 = vector.multi_reduction <add>, %442, %cst_249 [1] : vector<16x32xf32> to vector<16xf32>
    %444 = vector.shape_cast %443 : vector<16xf32> to vector<16x1xf32>
    %cst_250 = arith.constant 3.200000e+01 : f32
    %445 = vector.broadcast %cst_250 : f32 to vector<16x1xf32>
    %446 = arith.divf %444, %445 : vector<16x1xf32>
    %447 = vector.broadcast %439 : vector<16x1xf32> to vector<16x32xf32>
    %448 = arith.subf %433, %447 : vector<16x32xf32>
    %cst_251 = arith.constant 9.99999974E-6 : f32
    %449 = vector.broadcast %cst_251 : f32 to vector<16x1xf32>
    %450 = arith.addf %446, %449 : vector<16x1xf32>
    %451 = math.rsqrt %450 : vector<16x1xf32>
    %452 = vector.broadcast %451 : vector<16x1xf32> to vector<16x32xf32>
    %453 = arith.mulf %448, %452 : vector<16x32xf32>
    %454 = vector.extract_strided_slice %435 {offsets = [0, 0], sizes = [1, 32], strides = [1, 1]} : vector<2x32xf32> to vector<1x32xf32>
    %455 = vector.broadcast %454 : vector<1x32xf32> to vector<16x32xf32>
    %456 = arith.mulf %453, %455 : vector<16x32xf32>
    %457 = vector.extract_strided_slice %435 {offsets = [1, 0], sizes = [1, 32], strides = [1, 1]} : vector<2x32xf32> to vector<1x32xf32>
    %458 = vector.broadcast %457 : vector<1x32xf32> to vector<16x32xf32>
    %459 = arith.addf %456, %458 : vector<16x32xf32>
    %c0_252 = arith.constant 0 : index
    %c0_253 = arith.constant 0 : index
    %c0_254 = arith.constant 0 : index
    %460 = vector.load %arg16[%c0_252, %c0_253, %c0_254] : memref<1x16x32xf32, #tpu.memory_space<vmem>>, vector<1x16x32xf32>
    %461 = vector.shape_cast %460 : vector<1x16x32xf32> to vector<16x32xf32>
    %462 = vector.shape_cast %459 : vector<16x32xf32> to vector<1x16x32xf32>
    tpu.vector_store %arg16[%c0_252, %c0_253, %c0_254], %462 {strides = array<i32>} : memref<1x16x32xf32, #tpu.memory_space<vmem>>, vector<1x16x32xf32>,
    return
  }
  func.func @transform_0(%arg0: i32) -> (i32, i32) {
    %c0_i32 = arith.constant 0 : i32
    %c0_i32_0 = arith.constant 0 : i32
    %c0_i32_1 = arith.constant 0 : i32
    return %c0_i32, %c0_i32_0 : i32, i32
  }
  func.func @transform_1(%arg0: i32) -> (i32, i32) {
    %c0_i32 = arith.constant 0 : i32
    %c0_i32_0 = arith.constant 0 : i32
    %c0_i32_1 = arith.constant 0 : i32
    return %c0_i32, %c0_i32_0 : i32, i32
  }
  func.func @transform_2(%arg0: i32) -> (i32, i32) {
    %c0_i32 = arith.constant 0 : i32
    %c0_i32_0 = arith.constant 0 : i32
    %c0_i32_1 = arith.constant 0 : i32
    return %c0_i32, %c0_i32_0 : i32, i32
  }
  func.func @transform_3(%arg0: i32) -> (i32, i32) {
    %c0_i32 = arith.constant 0 : i32
    %c0_i32_0 = arith.constant 0 : i32
    %c0_i32_1 = arith.constant 0 : i32
    return %c0_i32, %c0_i32_0 : i32, i32
  }
  func.func @transform_4(%arg0: i32) -> (i32, i32) {
    %c0_i32 = arith.constant 0 : i32
    %c0_i32_0 = arith.constant 0 : i32
    %c0_i32_1 = arith.constant 0 : i32
    return %c0_i32, %c0_i32_0 : i32, i32
  }
  func.func @transform_5(%arg0: i32) -> (i32, i32, i32) {
    %c0_i32 = arith.constant 0 : i32
    %c0_i32_0 = arith.constant 0 : i32
    %c0_i32_1 = arith.constant 0 : i32
    %c0_i32_2 = arith.constant 0 : i32
    return %c0_i32, %c0_i32_0, %c0_i32_1 : i32, i32, i32
  }
  func.func @transform_6(%arg0: i32) -> (i32, i32, i32) {
    %c0_i32 = arith.constant 0 : i32
    %c0_i32_0 = arith.constant 0 : i32
    %c0_i32_1 = arith.constant 0 : i32
    %c0_i32_2 = arith.constant 0 : i32
    return %c0_i32, %c0_i32_0, %c0_i32_1 : i32, i32, i32
  }
  func.func @transform_7(%arg0: i32) -> (i32, i32) {
    %c0_i32 = arith.constant 0 : i32
    %c0_i32_0 = arith.constant 0 : i32
    %c0_i32_1 = arith.constant 0 : i32
    return %c0_i32, %c0_i32_0 : i32, i32
  }
  func.func @transform_8(%arg0: i32) -> (i32, i32) {
    %c0_i32 = arith.constant 0 : i32
    %c0_i32_0 = arith.constant 0 : i32
    %c0_i32_1 = arith.constant 0 : i32
    return %c0_i32, %c0_i32_0 : i32, i32
  }
  func.func @transform_9(%arg0: i32) -> (i32, i32, i32, i32, i32) {
    %c0_i32 = arith.constant 0 : i32
    %c0_i32_0 = arith.constant 0 : i32
    %c0_i32_1 = arith.constant 0 : i32
    %c0_i32_2 = arith.constant 0 : i32
    %c0_i32_3 = arith.constant 0 : i32
    return %arg0, %c0_i32, %c0_i32_0, %c0_i32_1, %c0_i32_2 : i32, i32, i32, i32, i32
  }
  func.func @transform_10(%arg0: i32) -> (i32, i32, i32, i32, i32) {
    %c0_i32 = arith.constant 0 : i32
    %c0_i32_0 = arith.constant 0 : i32
    %c0_i32_1 = arith.constant 0 : i32
    %c0_i32_2 = arith.constant 0 : i32
    %c0_i32_3 = arith.constant 0 : i32
    return %arg0, %c0_i32, %c0_i32_0, %c0_i32_1, %c0_i32_2 : i32, i32, i32, i32, i32
  }
  func.func @transform_11(%arg0: i32) -> (i32, i32, i32, i32) {
    %c0_i32 = arith.constant 0 : i32
    %c0_i32_0 = arith.constant 0 : i32
    %c0_i32_1 = arith.constant 0 : i32
    %c0_i32_2 = arith.constant 0 : i32
    return %arg0, %c0_i32, %c0_i32_0, %c0_i32_1 : i32, i32, i32, i32
  }
  func.func @transform_12(%arg0: i32) -> (i32, i32, i32) {
    %c0_i32 = arith.constant 0 : i32
    %c0_i32_0 = arith.constant 0 : i32
    %c0_i32_1 = arith.constant 0 : i32
    return %arg0, %c0_i32, %c0_i32_0 : i32, i32, i32
  }
  func.func @transform_13(%arg0: i32) -> (i32, i32, i32) {
    %c0_i32 = arith.constant 0 : i32
    %c0_i32_0 = arith.constant 0 : i32
    %c0_i32_1 = arith.constant 0 : i32
    return %arg0, %c0_i32, %c0_i32_0 : i32, i32, i32
  }
  func.func @transform_14(%arg0: i32) -> (i32, i32, i32) {
    %c0_i32 = arith.constant 0 : i32
    %c0_i32_0 = arith.constant 0 : i32
    %c0_i32_1 = arith.constant 0 : i32
    return %arg0, %c0_i32, %c0_i32_0 : i32, i32, i32
  }
  func.func @transform_15(%arg0: i32) -> (i32, i32, i32) {
    %c0_i32 = arith.constant 0 : i32
    %c0_i32_0 = arith.constant 0 : i32
    %c0_i32_1 = arith.constant 0 : i32
    return %arg0, %c0_i32, %c0_i32_0 : i32, i32, i32
  }
}

</mosaic_0001>

<bundles_post_ra>
// kernel: decoder_forward.1
= control target key start
LH: loop header
LB: loop body
LE: loop exit
PB: predicated region body
PF: predicated region fallthrough
CT: control target
= control target key end

     0   :  { %s9481_s18 = smov 0   ;;  %s11588_s0 = inlined_call_operand.vmem [shape: f32[16,32], index: 0, kind: input, shape index: {}]   ;;  %s11589_s1 = inlined_call_operand.vmem [shape: f32[16,32], index: 1, kind: input, shape index: {}]   ;;  %s11590_s2 = inlined_call_operand.vmem [shape: f32[8,8], index: 2, kind: input, shape index: {}]   ;;  %s11591_s3 = inlined_call_operand.vmem [shape: f32[160,32], index: 3, kind: input, shape index: {}]   ;;  %s11592_s4 = inlined_call_operand.vmem [shape: f32[2,80], index: 4, kind: input, shape index: {}]   ;;  %s11593_s5 = inlined_call_operand.vmem [shape: f32[4,16,16], index: 5, kind: input, shape index: {}]   ;;  %s11594_s6 = inlined_call_operand.vmem [shape: f32[2,16,80], index: 6, kind: input, shape index: {}]   ;;  %s11595_s7 = inlined_call_operand.vmem [shape: f32[4,16], index: 7, kind: input, shape index: {}]   ;;  %s11596_s8 = inlined_call_operand.vmem [shape: f32[2,32], index: 8, kind: input, shape index: {}]   ;;  %s11597_s9 = inlined_call_operand.vmem [shape: f32[2,4,4,32,8], index: 9, kind: input, shape index: {}]   ;;  %s11598_s10 = inlined_call_operand.vmem [shape: f32[2,2,4,8,32], index: 10, kind: input, shape index: {}]   ;;  %s11599_s11 = inlined_call_operand.vmem [shape: f32[2,3,32,16], index: 11, kind: input, shape index: {}]   ;;  %s11600_s12 = inlined_call_operand.vmem [shape: f32[2,32,64], index: 12, kind: input, shape index: {}]   ;;  %s11601_s13 = inlined_call_operand.vmem [shape: f32[2,64,32], index: 13, kind: input, shape index: {}]   ;;  %s11602_s14 = inlined_call_operand.vmem [shape: f32[2,32,128], index: 14, kind: input, shape index: {}]   ;;  %s11603_s15 = inlined_call_operand.vmem [shape: f32[2,16,32], index: 15, kind: output, shape index: {}]  }
   0x1   :  { %11666 = sst [smem:[#allocation71_spill]] %s11591_s3 }
   0x2   :  { %11667 = sst [smem:[#allocation72_spill]] %s11592_s4 }
   0x3   :  { %11668 = sst [smem:[#allocation73_spill]] %s11594_s6 }
   0x4   :  { %11669 = sst [smem:[#allocation74_spill]] %s11596_s8 }
   0x5   :  { %11670 = sst [smem:[#allocation75_spill]] %s11597_s9 }
   0x6   :  { %11671 = sst [smem:[#allocation76_spill]] %s11598_s10 }
   0x7 LB: > { %11672 = sst [smem:[#allocation3_spill]] %s9396_s18  ;;  %s8002_s19 = sadd.s32 4294967295, %s9396_s18   ;;  %s9396_s18 = sphi %s9481_s18, %s25_s18  }
   0x8   : > { %p8006_p0 = scmp.ge.s32.totalorder %s9396_s18, 1  ;;  %p487_p1 = scmp.lt.s32.totalorder %s9396_s18, 3 }
   0xa   : > { %p488_p2 = pnand %p8006_p0, %p487_p1 }
   0xc   : > { %491 = sbr.rel (%p488_p2) target bundleno = 7624 (0x1dc8), region = 80 }
  0x11   : > { %p560_p3 = scmp.lt.s32.totalorder %s8002_s19, 1  ;;  %s11673_s9 = sld [smem:[#allocation75_spill]] }
  0x12   : > { %s11674_s10 = sld [smem:[#allocation76_spill]]  ;;  %p8020_p4 = scmp.ne.s32.totalorder %s8002_s19, 0 }
  0x13   : > { %s561_s20 = scalar_select %p560_p3, %s8002_s19, 1 }
  0x15   : > { %s8271_s21 = sshll.u32 %s561_s20, 9  ;;  %s8272_s22 = sshll.u32 %s561_s20, 6 }
  0x16   : > { %s9298_s29 = smul.u32 96, %s561_s20  ;;  %s8273_s30 = sshll.u32 %s561_s20, 5 }
  0x17   : > { %s9492_s25 = scalar_lea.vmem %s11673_s9, %s8271_s21  ;;  %s9502_s18 = scalar_lea.vmem %s11600_s12, %s8273_s30 }
  0x18   : > { %s9497_s28 = scalar_lea.vmem %s11674_s10, %s8272_s22  ;;  %s9507_s6 = scalar_lea.vmem %s11601_s13, %s8272_s22 }
  0x19   : > { %s9512_s24 = scalar_lea.vmem %s11599_s11, %s9298_s29  ;;  %s9517_s9 = scalar_lea.vmem %s11602_s14, %s8273_s30 }
  0x1a   : > { %s8276_s10 = sshll.u32 %s561_s20, 4  ;;  %598 = sbr.rel (%p8020_p4) target bundleno = 33 (0x21), region = 84 }
  0x1b   : > { %s9522_s17 = scalar_lea.vmem %s11603_s15, %s8276_s10 }
  0x1f   : > { %v599_v0 = vld [vmem:[%s11588_s0] sm:$0xff]  ;;  %vm601_vm0 = vcmask 261120   ;;  %v600_v1 = vld [vmem:[%s11588_s0 + $0x8] sm:$0xff] }
  0x20   : > { %602 = vst.msk [vmem:[#allocation2] sm:$0xff] %vm601_vm0, %v599_v0  ;;  %603 = vst.msk [vmem:[#allocation2 + $0x8] sm:$0xff] %vm601_vm0, %v600_v1 }
  0x21 PF: > { %v618_v2 = vld [vmem:[%s9492_s25 + $0x18] sm:$0xff]  ;;  %v617_v3 = vld [vmem:[%s9492_s25 + $0x10] sm:$0xff]  ;;  %v606_v5 = vld [vmem:[%s11589_s1] sm:$0xff]  ;;  %vm623_vm1 = vcmask 261120   ;;  %v11607_v16 = vmov 0.0   ;;  %vm9399_vm2 = vmmov 0   ;;  %v619_v17 = vlaneseq }
  0x22   : > { %8632 = vmatprep.subr.mxu1 %v618_v2  ;;  %v616_v6 = vld [vmem:[%s9492_s25 + $0x8] sm:$0xff]  ;;  %v615_v10 = vld [vmem:[%s9492_s25] sm:$0xff]  ;;  %v8026_v12 = vld [vmem:[%s9492_s25 + $0x98] sm:$0xff]  ;;  %vm879_vm3 = vcmask 64512   ;;  %vm3788_vm4 = vcmask 125952   ;;  %vm3945_vm5 = vcmask 1043456  }
  0x23   : > { %8633 = vmatpush3.msra.mxu1 %v618_v2  ;;  %v607_v9 = vld [vmem:[%s11589_s1 + $0x8] sm:$0xff]  ;;  %v8025_v13 = vld [vmem:[%s9492_s25 + $0x90] sm:$0xff]  ;;  %v8023_v15 = vld [vmem:[%s9492_s25 + $0x80] sm:$0xff]  ;;  %v9568_v18 = vshrl.u32 %v619_v17, 7  ;;  %s11684_s26 = sld [smem:[#allocation72_spill]]  ;;  %vm3919_vm6 = vcmask 1041409  }
  0x24   : > { %8634 = vmatprep.subr.mxu1 %v617_v3  ;;  %v8024_v14 = vld [vmem:[%s9492_s25 + $0x88] sm:$0xff]  ;;  %v9577_v23 = vld [vmem:[%s9517_s9] sm:$0xff]  ;;  %v8032_v32 = vld [vmem:[%s9492_s25 + $0x118] sm:$0xff]  ;;  %vm3923_vm7 = vcmask 1043459   ;;  %vm3921_vm8 = vcmask 1042434   ;;  %vm3925_vm9 = vcmask 1044484  }
  0x25   : > { %8635 = vmatpush3.msra.mxu1 %v617_v3  ;;  %v9571_v20 = vsub.s32 4, %v9568_v18  ;;  %v9574_v21 = vsub.s32 0, %v9568_v18  ;;  %v8031_v33 = vld [vmem:[%s9492_s25 + $0x110] sm:$0xff]  ;;  %8654 = vmatprep.subr.mxu0 %v8032_v32  ;;  %v8030_v34 = vld [vmem:[%s9492_s25 + $0x108] sm:$0xff]  ;;  %v8029_v35 = vld [vmem:[%s9492_s25 + $0x100] sm:$0xff]  ;;  %vm3927_vm10 = vcmask 1045509  }
  0x26   : > { %8636 = vmatprep.subr.mxu1 %v616_v6  ;;  %8655 = vmatpush3.msra.mxu0 %v8032_v32  ;;  %v9605_v42 = vld [vmem:[%s11590_s2] sm:$0xff]  ;;  %v9614_v57 = vld [vmem:[%s9517_s9 + $0x8] sm:$0xff]  ;;  %v8050_v63 = vld [vmem:[%s9492_s25 + $0xb8] sm:$0xff]  ;;  %vm3929_vm11 = vcmask 1046534   ;;  %vm3931_vm12 = vcmask 1047559   ;;  %vm3940_vm13 = vcmask 31744  }
  0x27   : > { %v9532_v4 = vld [vmem:[#allocation2] sm:$0xff]  ;;  %v9541_v8 = vld [vmem:[#allocation2 + $0x8] sm:$0xff]  ;;  %8637 = vmatpush3.msra.mxu1 %v616_v6  ;;  %11675 = vst [vmem:[#allocation4_spill] sm:$0xff] %v9571_v20  ;;  %11676 = vst [vmem:[#allocation5_spill] sm:$0xff] %v9574_v21  ;;  %v713_v25 = vrot.slane %v9577_v23, %v9571_v20  ;;  %v622_v26 = vrot.slane %v9577_v23, %v9574_v21  ;;  %8656 = vmatprep.subr.mxu0 %v8031_v33  ;;  %s11727_s20 = sld [smem:[#allocation73_spill]]  ;;  %vm4030_vm14 = vcmask 130048  }
  0x28   : > { %v9539_v7 = vadd.f32 %v606_v5, %v9532_v4  ;;  %8662 = vmatprep.mubr.msk.f32.mxu0 %vm623_vm1, %v9532_v4  ;;  %v9552_v11 = vadd.f32 %v607_v9, %v9541_v8  ;;  %8638 = vmatprep.subr.mxu1 %v615_v10  ;;  %v797_v59 = vrot.slane %v9614_v57, %v9574_v21  ;;  %v8044_v0 = vld [vmem:[%s9492_s25 + $0x38] sm:$0xff]  ;;  %v8049_v6 = vld [vmem:[%s9492_s25 + $0xb0] sm:$0xff]  ;;  %s11733_s27 = sld [smem:[#allocation71_spill]]  ;;  %vm5073_vm15 = vcmask 650240  }
  0x29   : > { %8639 = vmatpush3.msra.mxu1 %v615_v10  ;;  %8657 = vmatpush3.msra.mxu0 %v8031_v33  ;;  %v8048_v10 = vld [vmem:[%s9492_s25 + $0xa8] sm:$0xff]  ;;  %vm5541_vm0 = vcmask 654336  }
  0x2a   : > { %8640 = vmatprep.mubr.msk.f32.mxu1 %vm623_vm1, %v9539_v7  ;;  %8643 = vmatprep.subr.mxu1 %v8026_v12 }
  0x2b   : > { %8641 = vmatmul.mubr.msk.f32.vlgmr.msra.gmra.mxu1 %vm623_vm1, %v9552_v11  ;;  %8658 = vmatprep.subr.mxu0 %v8030_v34 }
  0x2c   : > { %8644 = vmatpush3.msra.mxu1 %v8026_v12  ;;  %8651 = vmatprep.mubr.msk.f32.mxu1 %vm623_vm1, %v9539_v7 }
  0x2d   : > { %8645 = vmatprep.subr.mxu1 %v8025_v13  ;;  %8659 = vmatpush3.msra.mxu0 %v8030_v34 }
  0x2e   : > { %8646 = vmatpush3.msra.mxu1 %v8025_v13  ;;  %8660 = vmatprep.subr.mxu0 %v8029_v35  ;;  %v8043_v13 = vld [vmem:[%s9492_s25 + $0x30] sm:$0xff] }
  0x2f   : > { %8647 = vmatprep.subr.mxu1 %v8024_v14  ;;  %8661 = vmatpush3.msra.mxu0 %v8029_v35 }
  0x30   : > { %8648 = vmatpush3.msra.mxu1 %v8024_v14  ;;  %8663 = vmatmul.mubr.msk.f32.vlgmr.msra.gmra.mxu0 %vm623_vm1, %v9541_v8  ;;  %v8047_v14 = vld [vmem:[%s9492_s25 + $0xa0] sm:$0xff] }
  0x31   : > { %8649 = vmatprep.subr.mxu1 %v8023_v15  ;;  %8675 = vmatprep.subr.mxu0 %v11607_v16 }
  0x32   : > { %8650 = vmatpush3.msra.mxu1 %v8023_v15  ;;  %8677 = vmatprep.mubr.msk.f32.mxu0 %vm9399_vm2, %v11607_v16  ;;  %v8042_v15 = vld [vmem:[%s9492_s25 + $0x28] sm:$0xff] }
  0x33   : > { %8652 = vmatmul.mubr.msk.f32.vlgmr.msra.gmra.mxu1 %vm623_vm1, %v9552_v11  ;;  %8665 = vmatprep.subr.mxu1 %v11607_v16 }
  0x34   : > { %8667 = vmatprep.mubr.msk.f32.mxu1 %vm9399_vm2, %v11607_v16 }
  0xeb   : > { %v8642_v19 = vpop.f32.mrf.mxu1 }
  0xec   : > { %v702_v31 = vadd.f32 %v8642_v19, %v622_v26  ;;  %v8041_v19 = vld [vmem:[%s9492_s25 + $0x20] sm:$0xff] }
  0xed   : > { %v696_v22 = vpop.f32.mrf.mxu1 }
  0xee   : > { %v697_v29 = vadd.f32 %v696_v22, %v622_v26 }
  0xf0   : > { %v8664_v58 = vpop.f32.mrf.mxu0 }
  0xf1   : > { %v876_v61 = vadd.f32 %v8664_v58, %v797_v59 }
  0xf2   : > { %v870_v60 = vpop.f32.mrf.mxu0 }
  0xf3   : > { %v8653_v24 = vpop.f32.mrf.mxu1  ;;  %v871_v62 = vadd.f32 %v870_v60, %v797_v59 }
  0xf4   : > { %v786_v30 = vadd.f32 %v8653_v24, %v713_v25 }
  0xf5   : > { %v780_v27 = vpop.f32.mrf.mxu1  ;;  %8676 = vmatpush3.msra.mxu0 %v871_v62 }
  0xf6   : > { %v781_v28 = vadd.f32 %v780_v27, %v713_v25  ;;  %8685 = vmatprep.subr.mxu0 %v8044_v0  ;;  %v9644_v25 = vsub.s32 5, %v9568_v18 }
  0xf8   : > { %8666 = vmatpush3.xpose.msk.msra.mxu1 %vm879_vm3, %v781_v28  ;;  %v1297_v28 = vrot.slane %v9577_v23, %v9644_v25 }
  0xf9   : > { %8670 = vmatprep.subr.mxu1 %v11607_v16 }
  0xfb   : > { %8668 = vmatmul.mubr.msk.f32.vlgmr.msra.gmra.mxu1 %vm879_vm3, %v697_v29 }
  0xfc   : > { %8671 = vmatpush3.xpose.msk.msra.mxu1 %vm879_vm3, %v786_v30  ;;  %8672 = vmatprep.mubr.msk.f32.mxu1 %vm9399_vm2, %v11607_v16  ;;  %v9651_v30 = vsub.s32 1, %v9568_v18 }
  0xfd   : > { %8680 = vmatprep.subr.mxu1 %v11607_v16 }
  0xfe   : > { %11677 = vst [vmem:[#allocation6_spill] sm:$0xff] %v9651_v30  ;;  %v1213_v34 = vrot.slane %v9577_v23, %v9651_v30 }
  0xff   : > { %8673 = vmatmul.mubr.msk.f32.vlgmr.msra.gmra.mxu1 %vm879_vm3, %v702_v31 }
 0x100   : > { %8682 = vmatprep.mubr.msk.f32.mxu1 %vm9399_vm2, %v11607_v16  ;;  %8681 = vmatpush3.msra.mxu1 %v876_v61 }
 0x101   : > { %8696 = vmatprep.subr.mxu1 %v8050_v63 }
 0x1bb   : > { %v952_v36 = vpop.f32.mrf.mxu1 }
 0x1bc   : > { %v1032_v39 = vmul.f32 0.35355338, %v952_v36 }
 0x1bd   : > { %v8669_v37 = vpop.f32.mrf.mxu1 }
 0x1be   : > { %v1034_v45 = vadd.f32 %v1032_v39, %v9605_v42  ;;  %v8056_v39 = vld [vmem:[%s9492_s25 + $0x138] sm:$0xff] }
 0x1bf   : > { %v1028_v38 = vpop.f32.mrf.mxu1 }
 0x1c0   : > { %v1033_v40 = vmul.f32 0.35355338, %v1028_v38  ;;  %v1036_v46 = vsel %vm879_vm3, %v1034_v45, -inf }
 0x1c1   : > { %v8674_v41 = vpop.f32.mrf.mxu1 }
 0x1c2   : > { %v1035_v43 = vadd.f32 %v1033_v40, %v9605_v42  ;;  %v8055_v40 = vld [vmem:[%s9492_s25 + $0x130] sm:$0xff]  ;;  %v8054_v41 = vld [vmem:[%s9492_s25 + $0x128] sm:$0xff] }
 0x1c4   : > { %v1039_v44 = vsel %vm879_vm3, %v1035_v43, -inf }
 0x1c5   : > { %1040 = vmax.xlane.f32.xlu0 %v1039_v44 }
 0x1c9   : > { %1037 = vmax.xlane.f32.xlu0 %v1036_v46 }
 0x24e   : > { %v1041_v47 = vpop.xlane.xlu0 %1040 }
 0x24f   : > { %v1043_v48 = vsub.f32 %v1035_v43, %v1041_v47  ;;  %v8053_v43 = vld [vmem:[%s9492_s25 + $0x120] sm:$0xff] }
 0x251   : > { %v1046_v49 = vmul.f32 1.442695, %v1043_v48 }
 0x252   : > { %v1038_v50 = vpop.xlane.xlu0 %1037 }
 0x253   : > { %9310 = vpow2.f32 %v1046_v49  ;;  %v1042_v51 = vsub.f32 %v1034_v45, %v1038_v50 }
 0x255   : > { %v1044_v52 = vmul.f32 1.442695, %v1042_v51 }
 0x257   : > { %9312 = vpow2.f32 %v1044_v52 }
 0x260   : > { %v9311_v53 = vpop.eup %9310 }
 0x261   : > { %v1051_v54 = vsel %vm879_vm3, %v9311_v53, 0.0 }
 0x262   : > { %1052 = vadd.xlane.f32.xlu1 %v1051_v54 }
 0x264   : > { %v9313_v55 = vpop.eup %9312 }
 0x265   : > { %v1048_v56 = vsel %vm879_vm3, %v9313_v55, 0.0 }
 0x266   : > { %1049 = vadd.xlane.f32.xlu1 %v1048_v56 }
 0x2eb   : > { %v1053_v1 = vpop.xlane.xlu1 %1052 }
 0x2ec   : > { %9314 = vrcp.f32 %v1053_v1  ;;  %v1381_v1 = vrot.slane %v9614_v57, %v9651_v30 }
 0x2ef   : > { %v1050_v2 = vpop.xlane.xlu1 %1049 }
 0x2f0   : > { %9316 = vrcp.f32 %v1050_v2 }
 0x2f9   : > { %v9315_v3 = vpop.eup %9314 }
 0x2fa   : > { %v1057_v5 = vmul.f32 %v9315_v3, %v9311_v53 }
 0x2fc   : > { %8683 = vmatmul.mubr.msk.f32.vlgmr.msra.gmra.mxu1 %vm879_vm3, %v1057_v5 }
 0x2fd   : > { %v9317_v9 = vpop.eup %9316  ;;  %8697 = vmatpush3.msra.mxu1 %v8050_v63  ;;  %8704 = vmatprep.mubr.msk.f32.mxu1 %vm623_vm1, %v9539_v7 }
 0x2fe   : > { %8698 = vmatprep.subr.mxu1 %v8049_v6  ;;  %v1056_v12 = vmul.f32 %v9317_v9, %v9313_v55  ;;  %v1204_v9 = vld [vmem:[%s9497_s28] sm:$0xff] }
 0x2ff   : > { %8699 = vmatpush3.msra.mxu1 %v8049_v6 }
 0x300   : > { %8700 = vmatprep.subr.mxu1 %v8048_v10  ;;  %8678 = vmatmul.mubr.msk.f32.vlgmr.msra.gmra.mxu0 %vm879_vm3, %v1056_v12 }
 0x301   : > { %8686 = vmatpush3.msra.mxu0 %v8044_v0  ;;  %8701 = vmatpush3.msra.mxu1 %v8048_v10 }
 0x302   : > { %8687 = vmatprep.subr.mxu0 %v8043_v13  ;;  %8702 = vmatprep.subr.mxu1 %v8047_v14 }
 0x303   : > { %8688 = vmatpush3.msra.mxu0 %v8043_v13  ;;  %8703 = vmatpush3.msra.mxu1 %v8047_v14 }
 0x304   : > { %8689 = vmatprep.subr.mxu0 %v8042_v15  ;;  %8705 = vmatmul.mubr.msk.f32.vlgmr.msra.gmra.mxu1 %vm623_vm1, %v9552_v11 }
 0x305   : > { %8690 = vmatpush3.msra.mxu0 %v8042_v15  ;;  %8693 = vmatprep.mubr.msk.f32.mxu0 %vm623_vm1, %v9539_v7 }
 0x306   : > { %8691 = vmatprep.subr.mxu0 %v8041_v19  ;;  %8718 = vmatprep.subr.mxu1 %v11607_v16 }
 0x307   : > { %8692 = vmatpush3.msra.mxu0 %v8041_v19  ;;  %8720 = vmatprep.mubr.msk.f32.mxu1 %vm9399_vm2, %v11607_v16 }
 0x308   : > { %8694 = vmatmul.mubr.msk.f32.vlgmr.msra.gmra.mxu0 %vm623_vm1, %v9552_v11  ;;  %8707 = vmatprep.subr.mxu0 %v8056_v39 }
 0x309   : > { %8715 = vmatprep.mubr.msk.f32.mxu0 %vm623_vm1, %v9532_v4  ;;  %8708 = vmatpush3.msra.mxu0 %v8056_v39 }
 0x30a   : > { %8709 = vmatprep.subr.mxu0 %v8055_v40 }
 0x30b   : > { %8710 = vmatpush3.msra.mxu0 %v8055_v40  ;;  %v9718_v40 = vsub.s32 6, %v9568_v18 }
 0x30c   : > { %8711 = vmatprep.subr.mxu0 %v8054_v41 }
 0x30d   : > { %8712 = vmatpush3.msra.mxu0 %v8054_v41  ;;  %11678 = vst [vmem:[#allocation7_spill] sm:$0xff] %v9718_v40 }
 0x30e   : > { %8713 = vmatprep.subr.mxu0 %v8053_v43 }
 0x30f   : > { %8714 = vmatpush3.msra.mxu0 %v8053_v43  ;;  %v2037_v43 = vrot.slane %v9577_v23, %v9718_v40 }
 0x310   : > { %8716 = vmatmul.mubr.msk.f32.vlgmr.msra.gmra.mxu0 %vm623_vm1, %v9541_v8  ;;  %8728 = vmatprep.subr.mxu0 %v11607_v16 }
 0x311   : > { %8730 = vmatprep.mubr.msk.f32.mxu0 %vm9399_vm2, %v11607_v16 }
 0x3bc   : > { %v9641_v22 = vpop.f32.mrf.mxu1 }
 0x3be   : > { %v8684_v24 = vpop.f32.mrf.mxu1 }
 0x3bf   : > { %v8079_v24 = vld [vmem:[%s9492_s25 + $0xd8] sm:$0xff] }
 0x3c0   : > { %v9646_v26 = vpop.f32.mrf.mxu0 }
 0x3c2   : > { %v8679_v27 = vpop.f32.mrf.mxu0 }
 0x3c3   : > { %v8065_v27 = vld [vmem:[%s9497_s28 + $0x8] sm:$0xff] }
 0x3c4   : > { %v8706_v29 = vpop.f32.mrf.mxu1 }
 0x3c5   : > { %v1370_v37 = vadd.f32 %v8706_v29, %v1297_v28  ;;  %v8077_v29 = vld [vmem:[%s9492_s25 + $0xc8] sm:$0xff] }
 0x3c6   : > { %v1364_v31 = vpop.f32.mrf.mxu1 }
 0x3c7   : > { %v1365_v32 = vadd.f32 %v1364_v31, %v1297_v28  ;;  %v8078_v28 = vld [vmem:[%s9492_s25 + $0xd0] sm:$0xff]  ;;  %v8076_v31 = vld [vmem:[%s9492_s25 + $0xc0] sm:$0xff] }
 0x3c8   : > { %v8695_v33 = vpop.f32.mrf.mxu0 }
 0x3c9   : > { %8719 = vmatpush3.xpose.msk.msra.mxu1 %vm879_vm3, %v1365_v32  ;;  %v1286_v38 = vadd.f32 %v8695_v33, %v1213_v34 }
 0x3ca   : > { %v1280_v35 = vpop.f32.mrf.mxu0  ;;  %8723 = vmatprep.subr.mxu1 %v11607_v16 }
 0x3cb   : > { %v1281_v36 = vadd.f32 %v1280_v35, %v1213_v34  ;;  %v8072_v34 = vld [vmem:[%s9492_s25 + $0x50] sm:$0xff] }
 0x3cd   : > { %8721 = vmatmul.mubr.msk.f32.vlgmr.msra.gmra.mxu1 %vm879_vm3, %v1281_v36  ;;  %v8071_v36 = vld [vmem:[%s9492_s25 + $0x48] sm:$0xff] }
 0x3ce   : > { %8724 = vmatpush3.xpose.msk.msra.mxu1 %vm879_vm3, %v1370_v37  ;;  %8725 = vmatprep.mubr.msk.f32.mxu1 %vm9399_vm2, %v11607_v16  ;;  %v8070_v37 = vld [vmem:[%s9492_s25 + $0x40] sm:$0xff] }
 0x3cf   : > { %8733 = vmatprep.subr.mxu1 %v11607_v16 }
 0x3d0   : > { %v8717_v2 = vpop.f32.mrf.mxu0 }
 0x3d1   : > { %8726 = vmatmul.mubr.msk.f32.vlgmr.msra.gmra.mxu1 %vm879_vm3, %v1286_v38  ;;  %v1454_v3 = vadd.f32 %v8717_v2, %v1381_v1 }
 0x3d2   : > { %8735 = vmatprep.mubr.msk.f32.mxu1 %vm9399_vm2, %v11607_v16  ;;  %v1448_v5 = vpop.f32.mrf.mxu0 }
 0x3d3   : > { %v1449_v6 = vadd.f32 %v1448_v5, %v1381_v1  ;;  %8734 = vmatpush3.msra.mxu1 %v1454_v3 }
 0x3d4   : > { %8743 = vmatprep.subr.mxu1 %v1204_v9 }
 0x3d5   : > { %8729 = vmatpush3.msra.mxu0 %v1449_v6 }
 0x3d6   : > { %8738 = vmatprep.subr.mxu0 %v8065_v27 }
 0x48d   : > { %v1529_v44 = vpop.f32.mrf.mxu1 }
 0x48e   : > { %v1609_v45 = vmul.f32 0.35355338, %v1529_v44 }
 0x48f   : > { %v8722_v46 = vpop.f32.mrf.mxu1 }
 0x490   : > { %v1611_v47 = vadd.f32 %v1609_v45, %v9605_v42 }
 0x491   : > { %v1605_v48 = vpop.f32.mrf.mxu1 }
 0x492   : > { %v1610_v49 = vmul.f32 0.35355338, %v1605_v48  ;;  %v1613_v50 = vsel %vm879_vm3, %v1611_v47, -inf  ;;  %v9727_v48 = vsub.s32 2, %v9568_v18 }
 0x493   : > { %1614 = vmax.xlane.f32.xlu0 %v1613_v50  ;;  %v8727_v51 = vpop.f32.mrf.mxu1 }
 0x494   : > { %v1612_v52 = vadd.f32 %v1610_v49, %v9605_v42  ;;  %11679 = vst [vmem:[#allocation8_spill] sm:$0xff] %v9727_v48  ;;  %v1953_v51 = vrot.slane %v9577_v23, %v9727_v48 }
 0x496   : > { %v1616_v53 = vsel %vm879_vm3, %v1612_v52, -inf }
 0x497   : > { %1617 = vmax.xlane.f32.xlu1 %v1616_v53 }
 0x51c   : > { %v1615_v54 = vpop.xlane.xlu0 %1614 }
 0x51d   : > { %v1619_v55 = vsub.f32 %v1611_v47, %v1615_v54 }
 0x51f   : > { %v1621_v56 = vmul.f32 1.442695, %v1619_v55  ;;  %v8085_v55 = vld [vmem:[%s9492_s25 + $0x158] sm:$0xff] }
 0x520   : > { %v1618_v58 = vpop.xlane.xlu1 %1617 }
 0x521   : > { %9318 = vpow2.f32 %v1621_v56  ;;  %v1620_v59 = vsub.f32 %v1612_v52, %v1618_v58  ;;  %v8084_v56 = vld [vmem:[%s9492_s25 + $0x150] sm:$0xff]  ;;  %v8083_v58 = vld [vmem:[%s9492_s25 + $0x148] sm:$0xff] }
 0x523   : > { %v1623_v60 = vmul.f32 1.442695, %v1620_v59  ;;  %v8082_v59 = vld [vmem:[%s9492_s25 + $0x140] sm:$0xff] }
 0x525   : > { %9320 = vpow2.f32 %v1623_v60 }
 0x52e   : > { %v9319_v61 = vpop.eup %9318 }
 0x52f   : > { %v1625_v62 = vsel %vm879_vm3, %v9319_v61, 0.0 }
 0x530   : > { %1626 = vadd.xlane.f32.xlu0 %v1625_v62 }
 0x532   : > { %v9321_v63 = vpop.eup %9320 }
 0x533   : > { %v1628_v0 = vsel %vm879_vm3, %v9321_v63, 0.0 }
 0x534   : > { %1629 = vadd.xlane.f32.xlu1 %v1628_v0 }
 0x5b9   : > { %v1627_v10 = vpop.xlane.xlu0 %1626 }
 0x5ba   : > { %9322 = vrcp.f32 %v1627_v10 }
 0x5bd   : > { %v1630_v12 = vpop.xlane.xlu1 %1629 }
 0x5be   : > { %9324 = vrcp.f32 %v1630_v12 }
 0x5c7   : > { %v9323_v13 = vpop.eup %9322 }
 0x5c8   : > { %v1633_v14 = vmul.f32 %v9323_v13, %v9319_v61 }
 0x5ca   : > { %8731 = vmatmul.mubr.msk.f32.vlgmr.msra.gmra.mxu0 %vm879_vm3, %v1633_v14 }
 0x5cb   : > { %v9325_v15 = vpop.eup %9324  ;;  %8739 = vmatpush3.msra.mxu0 %v8065_v27 }
 0x5cc   : > { %v1634_v19 = vmul.f32 %v9325_v15, %v9321_v63 }
 0x5ce   : > { %8736 = vmatmul.mubr.msk.f32.vlgmr.msra.gmra.mxu1 %vm879_vm3, %v1634_v19 }
 0x5cf   : > { %8745 = vmatprep.mubr.msk.f32.mxu1 %vm879_vm3, %v9646_v26  ;;  %8744 = vmatpush3.msra.mxu1 %v1204_v9  ;;  %v8073_v26 = vld [vmem:[%s9492_s25 + $0x58] sm:$0xff] }
 0x5d0   : > { %8759 = vmatprep.subr.mxu1 %v8079_v24  ;;  %8748 = vmatprep.subr.mxu0 %v8073_v26 }
 0x5d2   : > { %8746 = vmatmul.mubr.msk.f32.vlgmr.msra.gmra.mxu1 %vm879_vm3, %v9641_v22 }
 0x5d3   : > { %8760 = vmatpush3.msra.mxu1 %v8079_v24  ;;  %8767 = vmatprep.mubr.msk.f32.mxu1 %vm623_vm1, %v9539_v7 }
 0x5d4   : > { %8761 = vmatprep.subr.mxu1 %v8078_v28 }
 0x5d5   : > { %8762 = vmatpush3.msra.mxu1 %v8078_v28 }
 0x5d6   : > { %8763 = vmatprep.subr.mxu1 %v8077_v29 }
 0x5d7   : > { %8764 = vmatpush3.msra.mxu1 %v8077_v29  ;;  %v2121_v29 = vrot.slane %v9614_v57, %v9727_v48 }
 0x5d8   : > { %8765 = vmatprep.subr.mxu1 %v8076_v31 }
 0x5d9   : > { %8766 = vmatpush3.msra.mxu1 %v8076_v31 }
 0x5da   : > { %8768 = vmatmul.mubr.msk.f32.vlgmr.msra.gmra.mxu1 %vm623_vm1, %v9552_v11  ;;  %8781 = vmatprep.subr.mxu1 %v11607_v16 }
 0x5db   : > { %8783 = vmatprep.mubr.msk.f32.mxu1 %vm9399_vm2, %v11607_v16 }
 0x68a   : > { %v1704_v22 = vpop.f32.mrf.mxu0 }
 0x68b   : > { %8740 = vmatprep.mubr.msk.f32.mxu0 %vm879_vm3, %v1704_v22 }
 0x68c   : > { %v8732_v32 = vpop.f32.mrf.mxu0 }
 0x68e   : > { %v1777_v33 = vpop.f32.mrf.mxu1 }
 0x68f   : > { %8741 = vmatmul.mubr.msk.f32.vlgmr.msra.gmra.mxu0 %vm879_vm3, %v1777_v33 }
 0x690   : > { %8749 = vmatpush3.msra.mxu0 %v8073_v26  ;;  %v8737_v35 = vpop.f32.mrf.mxu1  ;;  %8756 = vmatprep.mubr.msk.f32.mxu0 %vm623_vm1, %v9539_v7 }
 0x691   : > { %8750 = vmatprep.subr.mxu0 %v8072_v34 }
 0x692   : > { %8751 = vmatpush3.msra.mxu0 %v8072_v34  ;;  %v9713_v38 = vpop.f32.mrf.mxu1 }
 0x693   : > { %8752 = vmatprep.subr.mxu0 %v8071_v36 }
 0x694   : > { %8753 = vmatpush3.msra.mxu0 %v8071_v36  ;;  %v9715_v39 = vpop.f32.mrf.mxu1 }
 0x695   : > { %8754 = vmatprep.subr.mxu0 %v8070_v37 }
 0x696   : > { %8755 = vmatpush3.msra.mxu0 %v8070_v37 }
 0x697   : > { %8757 = vmatmul.mubr.msk.f32.vlgmr.msra.gmra.mxu0 %vm623_vm1, %v9552_v11  ;;  %8770 = vmatprep.subr.mxu0 %v8085_v55 }
 0x698   : > { %8778 = vmatprep.mubr.msk.f32.mxu0 %vm623_vm1, %v9532_v4  ;;  %8771 = vmatpush3.msra.mxu0 %v8085_v55  ;;  %v8105_v55 = vld [vmem:[%s9492_s25 + $0xf0] sm:$0xff] }
 0x699   : > { %8772 = vmatprep.subr.mxu0 %v8084_v56 }
 0x69a   : > { %v8769_v41 = vpop.f32.mrf.mxu1  ;;  %8773 = vmatpush3.msra.mxu0 %v8084_v56 }
 0x69b   : > { %v2110_v45 = vadd.f32 %v8769_v41, %v2037_v43  ;;  %8774 = vmatprep.subr.mxu0 %v8083_v58 }
 0x69c   : > { %v2104_v44 = vpop.f32.mrf.mxu1  ;;  %8775 = vmatpush3.msra.mxu0 %v8083_v58  ;;  %v8104_v58 = vld [vmem:[%s9492_s25 + $0xe8] sm:$0xff] }
 0x69d   : > { %v2105_v46 = vadd.f32 %v2104_v44, %v2037_v43  ;;  %8776 = vmatprep.subr.mxu0 %v8082_v59  ;;  %v8094_v43 = vld [vmem:[%s9497_s28 + $0x10] sm:$0xff]  ;;  %v8106_v44 = vld [vmem:[%s9492_s25 + $0xf8] sm:$0xff] }
 0x69e   : > { %8777 = vmatpush3.msra.mxu0 %v8082_v59  ;;  %v8103_v59 = vld [vmem:[%s9492_s25 + $0xe0] sm:$0xff] }
 0x69f   : > { %8782 = vmatpush3.xpose.msk.msra.mxu1 %vm879_vm3, %v2105_v46  ;;  %8779 = vmatmul.mubr.msk.f32.vlgmr.msra.gmra.mxu0 %vm623_vm1, %v9541_v8  ;;  %v8099_v46 = vld [vmem:[%s9492_s25 + $0x70] sm:$0xff] }
 0x6a0   : > { %8786 = vmatprep.subr.mxu1 %v11607_v16  ;;  %8791 = vmatprep.subr.mxu0 %v11607_v16 }
 0x6a1   : > { %8793 = vmatprep.mubr.msk.f32.mxu0 %vm9399_vm2, %v11607_v16 }
 0x74f   : > { %v9724_v47 = vpop.f32.mrf.mxu0 }
 0x751   : > { %v9729_v49 = vpop.f32.mrf.mxu0 }
 0x757   : > { %v8758_v50 = vpop.f32.mrf.mxu0 }
 0x758   : > { %v2026_v54 = vadd.f32 %v8758_v50, %v1953_v51  ;;  %v8098_v50 = vld [vmem:[%s9492_s25 + $0x68] sm:$0xff] }
 0x759   : > { %v2020_v52 = vpop.f32.mrf.mxu0 }
 0x75a   : > { %v2021_v53 = vadd.f32 %v2020_v52, %v1953_v51  ;;  %v8097_v51 = vld [vmem:[%s9492_s25 + $0x60] sm:$0xff] }
 0x75c   : > { %8784 = vmatmul.mubr.msk.f32.vlgmr.msra.gmra.mxu1 %vm879_vm3, %v2021_v53 }
 0x75d   : > { %8787 = vmatpush3.xpose.msk.msra.mxu1 %vm879_vm3, %v2110_v45  ;;  %8788 = vmatprep.mubr.msk.f32.mxu1 %vm9399_vm2, %v11607_v16  ;;  %v8100_v45 = vld [vmem:[%s9492_s25 + $0x78] sm:$0xff] }
 0x75e   : > { %8796 = vmatprep.subr.mxu1 %v11607_v16 }
 0x75f   : > { %v8780_v26 = vpop.f32.mrf.mxu0 }
 0x760   : > { %8789 = vmatmul.mubr.msk.f32.vlgmr.msra.gmra.mxu1 %vm879_vm3, %v2026_v54  ;;  %v2194_v31 = vadd.f32 %v8780_v26, %v2121_v29 }
 0x761   : > { %8798 = vmatprep.mubr.msk.f32.mxu1 %vm9399_vm2, %v11607_v16  ;;  %v2188_v22 = vpop.f32.mrf.mxu0 }
 0x762   : > { %v2189_v32 = vadd.f32 %v2188_v22, %v2121_v29  ;;  %8797 = vmatpush3.msra.mxu1 %v2194_v31 }
 0x763   : > { %8806 = vmatprep.subr.mxu1 %v8100_v45 }
 0x764   : > { %8792 = vmatpush3.msra.mxu0 %v2189_v32 }
 0x765   : > { %8801 = vmatprep.subr.mxu0 %v8094_v43 }
 0x81c   : > { %v2269_v60 = vpop.f32.mrf.mxu1 }
 0x81d   : > { %v2349_v61 = vmul.f32 0.35355338, %v2269_v60  ;;  %v1942_v60 = vadd.f32 %v9713_v38, %v9724_v47 }
 0x81e   : > { %v8785_v62 = vpop.f32.mrf.mxu1 }
 0x81f   : > { %v2351_v63 = vadd.f32 %v2349_v61, %v9605_v42 }
 0x820   : > { %v2345_v0 = vpop.f32.mrf.mxu1 }
 0x821   : > { %v2350_v1 = vmul.f32 0.35355338, %v2345_v0  ;;  %v2353_v2 = vsel %vm879_vm3, %v2351_v63, -inf }
 0x822   : > { %2354 = vmax.xlane.f32.xlu0 %v2353_v2  ;;  %v8790_v3 = vpop.f32.mrf.mxu1 }
 0x823   : > { %v2352_v5 = vadd.f32 %v2350_v1, %v9605_v42  ;;  %v9793_v1 = vsub.s32 7, %v9568_v18 }
 0x825   : > { %v2356_v6 = vsel %vm879_vm3, %v2352_v5, -inf  ;;  %11680 = vst [vmem:[#allocation9_spill] sm:$0xff] %v9793_v1  ;;  %v2698_v38 = vrot.slane %v9577_v23, %v9793_v1 }
 0x826   : > { %2357 = vmax.xlane.f32.xlu1 %v2356_v6 }
 0x8ab   : > { %v2355_v9 = vpop.xlane.xlu0 %2354 }
 0x8ac   : > { %v2359_v10 = vsub.f32 %v2351_v63, %v2355_v9 }
 0x8ae   : > { %v2361_v12 = vmul.f32 1.442695, %v2359_v10  ;;  %v8112_v10 = vld [vmem:[%s9492_s25 + $0x178] sm:$0xff] }
 0x8af   : > { %v2358_v13 = vpop.xlane.xlu1 %2357 }
 0x8b0   : > { %9326 = vpow2.f32 %v2361_v12  ;;  %v2360_v14 = vsub.f32 %v2352_v5, %v2358_v13  ;;  %v8111_v12 = vld [vmem:[%s9492_s25 + $0x170] sm:$0xff]  ;;  %v8110_v13 = vld [vmem:[%s9492_s25 + $0x168] sm:$0xff] }
 0x8b2   : > { %v2363_v15 = vmul.f32 1.442695, %v2360_v14  ;;  %v8109_v14 = vld [vmem:[%s9492_s25 + $0x160] sm:$0xff] }
 0x8b4   : > { %9328 = vpow2.f32 %v2363_v15 }
 0x8bd   : > { %v9327_v19 = vpop.eup %9326 }
 0x8be   : > { %v2365_v24 = vsel %vm879_vm3, %v9327_v19, 0.0 }
 0x8bf   : > { %2366 = vadd.xlane.f32.xlu0 %v2365_v24 }
 0x8c1   : > { %v9329_v27 = vpop.eup %9328 }
 0x8c2   : > { %v2368_v28 = vsel %vm879_vm3, %v9329_v27, 0.0 }
 0x8c3   : > { %2369 = vadd.xlane.f32.xlu1 %v2368_v28 }
 0x948   : > { %v2367_v33 = vpop.xlane.xlu0 %2366 }
 0x949   : > { %9330 = vrcp.f32 %v2367_v33 }
 0x94c   : > { %v2370_v34 = vpop.xlane.xlu1 %2369 }
 0x94d   : > { %9332 = vrcp.f32 %v2370_v34 }
 0x956   : > { %v9331_v35 = vpop.eup %9330 }
 0x957   : > { %v2373_v36 = vmul.f32 %v9331_v35, %v9327_v19 }
 0x959   : > { %8794 = vmatmul.mubr.msk.f32.vlgmr.msra.gmra.mxu0 %vm879_vm3, %v2373_v36 }
 0x95a   : > { %v9333_v37 = vpop.eup %9332  ;;  %8802 = vmatpush3.msra.mxu0 %v8094_v43 }
 0x95b   : > { %v2374_v41 = vmul.f32 %v9333_v37, %v9329_v27  ;;  %8817 = vmatprep.subr.mxu0 %v8106_v44 }
 0x95d   : > { %8799 = vmatmul.mubr.msk.f32.vlgmr.msra.gmra.mxu1 %vm879_vm3, %v2374_v41 }
 0x95e   : > { %8814 = vmatprep.mubr.msk.f32.mxu1 %vm623_vm1, %v9539_v7  ;;  %8807 = vmatpush3.msra.mxu1 %v8100_v45 }
 0x95f   : > { %8808 = vmatprep.subr.mxu1 %v8099_v46 }
 0x960   : > { %8809 = vmatpush3.msra.mxu1 %v8099_v46 }
 0x961   : > { %8810 = vmatprep.subr.mxu1 %v8098_v50 }
 0x962   : > { %8811 = vmatpush3.msra.mxu1 %v8098_v50 }
 0x963   : > { %8812 = vmatprep.subr.mxu1 %v8097_v51 }
 0x964   : > { %8813 = vmatpush3.msra.mxu1 %v8097_v51 }
 0x965   : > { %8815 = vmatmul.mubr.msk.f32.vlgmr.msra.gmra.mxu1 %vm623_vm1, %v9552_v11  ;;  %8828 = vmatprep.subr.mxu1 %v8112_v10 }
 0x966   : > { %8836 = vmatprep.mubr.msk.f32.mxu1 %vm623_vm1, %v9532_v4  ;;  %8829 = vmatpush3.msra.mxu1 %v8112_v10 }
 0x967   : > { %8830 = vmatprep.subr.mxu1 %v8111_v12 }
 0x968   : > { %8831 = vmatpush3.msra.mxu1 %v8111_v12 }
 0x969   : > { %8832 = vmatprep.subr.mxu1 %v8110_v13 }
 0x96a   : > { %8833 = vmatpush3.msra.mxu1 %v8110_v13 }
 0x96b   : > { %8834 = vmatprep.subr.mxu1 %v8109_v14 }
 0x96c   : > { %8835 = vmatpush3.msra.mxu1 %v8109_v14 }
 0x96d   : > { %8837 = vmatmul.mubr.msk.f32.vlgmr.msra.gmra.mxu1 %vm623_vm1, %v9541_v8  ;;  %8849 = vmatprep.subr.mxu1 %v11607_v16 }
 0x96e   : > { %8851 = vmatprep.mubr.msk.f32.mxu1 %vm9399_vm2, %v11607_v16 }
 0xa19   : > { %v2444_v52 = vpop.f32.mrf.mxu0 }
 0xa1a   : > { %8803 = vmatprep.mubr.msk.f32.mxu0 %vm879_vm3, %v2444_v52 }
 0xa1b   : > { %v8795_v53 = vpop.f32.mrf.mxu0 }
 0xa1d   : > { %v2517_v54 = vpop.f32.mrf.mxu1 }
 0xa1e   : > { %8804 = vmatmul.mubr.msk.f32.vlgmr.msra.gmra.mxu0 %vm879_vm3, %v2517_v54 }
 0xa1f   : > { %8818 = vmatpush3.msra.mxu0 %v8106_v44  ;;  %v8800_v56 = vpop.f32.mrf.mxu1  ;;  %8825 = vmatprep.mubr.msk.f32.mxu0 %vm623_vm1, %v9539_v7  ;;  %v1937_v7 = vadd.f32 %v9715_v39, %v9729_v49 }
 0xa20   : > { %8819 = vmatprep.subr.mxu0 %v8105_v55 }
 0xa21   : > { %8820 = vmatpush3.msra.mxu0 %v8105_v55 }
 0xa22   : > { %8821 = vmatprep.subr.mxu0 %v8104_v58 }
 0xa23   : > { %8822 = vmatpush3.msra.mxu0 %v8104_v58 }
 0xa24   : > { %8823 = vmatprep.subr.mxu0 %v8103_v59 }
 0xa25   : > { %8824 = vmatpush3.msra.mxu0 %v8103_v59  ;;  %v8816_v2 = vpop.f32.mrf.mxu1 }
 0xa26   : > { %8826 = vmatmul.mubr.msk.f32.vlgmr.msra.gmra.mxu0 %vm623_vm1, %v9552_v11  ;;  %8839 = vmatprep.subr.mxu0 %v11607_v16  ;;  %v9796_v11 = vsub.s32 3, %v9568_v18 }
 0xa27   : > { %8841 = vmatprep.mubr.msk.f32.mxu0 %vm9399_vm2, %v11607_v16  ;;  %v2681_v5 = vpop.f32.mrf.mxu1 }
 0xa28   : > { %11681 = vst [vmem:[#allocation10_spill] sm:$0xff] %v9796_v11  ;;  %v2614_v39 = vrot.slane %v9577_v23, %v9796_v11 }
 0xa2a   : > { %v2682_v6 = vadd.f32 %v2681_v5, %v2614_v39  ;;  %v2687_v23 = vadd.f32 %v8816_v2, %v2614_v39 }
 0xa2d   : > { %v8838_v50 = vpop.f32.mrf.mxu1 }
 0xa2f   : > { %v2849_v52 = vpop.f32.mrf.mxu1 }
 0xade   : > { %v8805_v61 = vpop.f32.mrf.mxu0 }
 0xadf   : > { %v9788_v62 = vadd.f32 %v8805_v61, %v1942_v60  ;;  %v8121_v61 = vld [vmem:[%s9497_s28 + $0x18] sm:$0xff] }
 0xae0   : > { %v2595_v63 = vpop.f32.mrf.mxu0 }
 0xae1   : > { %v9790_v0 = vadd.f32 %v2595_v63, %v1937_v7 }
 0xae6   : > { %v8827_v3 = vpop.f32.mrf.mxu0 }
 0xae7   : > { %v2771_v9 = vadd.f32 %v8827_v3, %v2698_v38 }
 0xae8   : > { %v2765_v47 = vpop.f32.mrf.mxu0 }
 0xae9   : > { %v2766_v49 = vadd.f32 %v2765_v47, %v2698_v38  ;;  %v3270_v38 = vrot.slane %v9614_v57, %v9571_v20 }
 0xaeb   : > { %8840 = vmatpush3.xpose.msk.msra.mxu0 %vm879_vm3, %v2766_v49 }
 0xaec   : > { %8844 = vmatprep.subr.mxu0 %v11607_v16 }
 0xaee   : > { %8842 = vmatmul.mubr.msk.f32.vlgmr.msra.gmra.mxu0 %vm879_vm3, %v2682_v6 }
 0xaef   : > { %8845 = vmatpush3.xpose.msk.msra.mxu0 %vm879_vm3, %v2771_v9  ;;  %8846 = vmatprep.mubr.msk.f32.mxu0 %vm9399_vm2, %v11607_v16 }
 0xaf0   : > { %8854 = vmatprep.subr.mxu0 %v11607_v16 }
 0xaf2   : > { %8847 = vmatmul.mubr.msk.f32.vlgmr.msra.gmra.mxu0 %vm879_vm3, %v2687_v23 }
 0xaf3   : > { %8856 = vmatprep.mubr.msk.f32.mxu0 %vm9399_vm2, %v11607_v16 }
 0xbae   : > { %v2930_v15 = vpop.f32.mrf.mxu0 }
 0xbaf   : > { %v3010_v19 = vmul.f32 0.35355338, %v2930_v15 }
 0xbb0   : > { %v8843_v24 = vpop.f32.mrf.mxu0 }
 0xbb1   : > { %v3012_v27 = vadd.f32 %v3010_v19, %v9605_v42 }
 0xbb2   : > { %v3006_v28 = vpop.f32.mrf.mxu0 }
 0xbb3   : > { %v3011_v29 = vmul.f32 0.35355338, %v3006_v28  ;;  %v3014_v26 = vsel %vm879_vm3, %v3012_v27, -inf }
 0xbb4   : > { %3015 = vmax.xlane.f32.xlu0 %v3014_v26  ;;  %v8848_v31 = vpop.f32.mrf.mxu0  ;;  %v8129_v26 = vld [vmem:[%s9512_s24 + $0x38] sm:$0xff] }
 0xbb5   : > { %v3013_v22 = vadd.f32 %v3011_v29, %v9605_v42  ;;  %v2782_v42 = vrot.slane %v9614_v57, %v9796_v11  ;;  %v3319_v29 = vld [vmem:[%s9512_s24 + $0x18] sm:$0xff]  ;;  %v3318_v31 = vld [vmem:[%s9512_s24 + $0x10] sm:$0xff] }
 0xbb7   : > { %v3017_v32 = vsel %vm879_vm3, %v3013_v22, -inf  ;;  %v2855_v51 = vadd.f32 %v8838_v50, %v2782_v42  ;;  %v2850_v53 = vadd.f32 %v2849_v52, %v2782_v42  ;;  %v3305_v42 = vrot.slane %v9614_v57, %v9644_v25 }
 0xbb8   : > { %3018 = vmax.xlane.f32.xlu1 %v3017_v32  ;;  %v3317_v32 = vld [vmem:[%s9512_s24 + $0x8] sm:$0xff] }
 0xbb9   : > { %8855 = vmatpush3.msra.mxu0 %v2855_v51  ;;  %8850 = vmatpush3.msra.mxu1 %v2850_v53  ;;  %v3311_v53 = vrot.slane %v9614_v57, %v9718_v40 }
 0xbba   : > { %8859 = vmatprep.subr.mxu1 %v8121_v61  ;;  %8864 = vmatprep.subr.mxu0 %v3319_v29 }
 0xc3d   : > { %v3016_v33 = vpop.xlane.xlu0 %3015 }
 0xc3e   : > { %v3020_v34 = vsub.f32 %v3012_v27, %v3016_v33  ;;  %v8127_v33 = vld [vmem:[%s9512_s24 + $0x28] sm:$0xff] }
 0xc40   : > { %v3022_v35 = vmul.f32 1.442695, %v3020_v34  ;;  %v3316_v34 = vld [vmem:[%s9512_s24] sm:$0xff] }
 0xc41   : > { %v3019_v36 = vpop.xlane.xlu1 %3018 }
 0xc42   : > { %9334 = vpow2.f32 %v3022_v35  ;;  %v3021_v37 = vsub.f32 %v3013_v22, %v3019_v36  ;;  %v8128_v22 = vld [vmem:[%s9512_s24 + $0x30] sm:$0xff]  ;;  %v8126_v35 = vld [vmem:[%s9512_s24 + $0x20] sm:$0xff]  ;;  %v8135_v36 = vld [vmem:[%s9512_s24 + $0x58] sm:$0xff] }
 0xc44   : > { %v3024_v41 = vmul.f32 1.442695, %v3021_v37 }
 0xc46   : > { %9336 = vpow2.f32 %v3024_v41 }
 0xc4f   : > { %v9335_v43 = vpop.eup %9334 }
 0xc50   : > { %v3026_v44 = vsel %vm879_vm3, %v9335_v43, 0.0 }
 0xc51   : > { %3027 = vadd.xlane.f32.xlu0 %v3026_v44 }
 0xc53   : > { %v9337_v45 = vpop.eup %9336 }
 0xc54   : > { %v3029_v46 = vsel %vm879_vm3, %v9337_v45, 0.0 }
 0xc55   : > { %3030 = vadd.xlane.f32.xlu1 %v3029_v46 }
 0xcda   : > { %v3028_v54 = vpop.xlane.xlu0 %3027 }
 0xcdb   : > { %9338 = vrcp.f32 %v3028_v54 }
 0xcde   : > { %v3031_v55 = vpop.xlane.xlu1 %3030 }
 0xcdf   : > { %9340 = vrcp.f32 %v3031_v55 }
 0xce8   : > { %v9339_v56 = vpop.eup %9338 }
 0xce9   : > { %v3034_v58 = vmul.f32 %v9339_v56, %v9335_v43 }
 0xceb   : > { %8852 = vmatmul.mubr.msk.f32.vlgmr.msra.gmra.mxu1 %vm879_vm3, %v3034_v58 }
 0xcec   : > { %v9341_v59 = vpop.eup %9340  ;;  %8860 = vmatpush3.msra.mxu1 %v8121_v61 }
 0xced   : > { %v3035_v60 = vmul.f32 %v9341_v59, %v9337_v45  ;;  %8875 = vmatprep.subr.mxu1 %v8129_v26 }
 0xcef   : > { %8857 = vmatmul.mubr.msk.f32.vlgmr.msra.gmra.mxu0 %vm879_vm3, %v3035_v60  ;;  %v9366_v60 = vld [vmem:[%s11589_s1] sm:$0xff] }
 0xcf0   : > { %8865 = vmatpush3.msra.mxu0 %v3319_v29 }
 0xcf1   : > { %8866 = vmatprep.subr.mxu0 %v3318_v31 }
 0xcf2   : > { %8867 = vmatpush3.msra.mxu0 %v3318_v31 }
 0xcf3   : > { %8868 = vmatprep.subr.mxu0 %v3317_v32 }
 0xcf4   : > { %8869 = vmatpush3.msra.mxu0 %v3317_v32 }
 0xcf5   : > { %8870 = vmatprep.subr.mxu0 %v3316_v34 }
 0xcf6   : > { %8871 = vmatpush3.msra.mxu0 %v3316_v34 }
 0xcf7   : > { %8886 = vmatprep.subr.mxu0 %v8135_v36 }
 0xdab   : > { %v3105_v7 = vpop.f32.mrf.mxu1 }
 0xdac   : > { %8861 = vmatprep.mubr.msk.f32.mxu1 %vm879_vm3, %v3105_v7  ;;  %v9367_v7 = vld [vmem:[%s11589_s1 + $0x8] sm:$0xff] }
 0xdad   : > { %v8853_v63 = vpop.f32.mrf.mxu1 }
 0xdae   : > { %v8134_v63 = vld [vmem:[%s9512_s24 + $0x50] sm:$0xff] }
 0xdaf   : > { %v3178_v2 = vpop.f32.mrf.mxu0 }
 0xdb0   : > { %8862 = vmatmul.mubr.msk.f32.vlgmr.msra.gmra.mxu1 %vm879_vm3, %v3178_v2  ;;  %v8133_v2 = vld [vmem:[%s9512_s24 + $0x48] sm:$0xff] }
 0xdb1   : > { %v8858_v3 = vpop.f32.mrf.mxu0  ;;  %8876 = vmatpush3.msra.mxu1 %v8129_v26 }
 0xdb2   : > { %8877 = vmatprep.subr.mxu1 %v8128_v22  ;;  %v8132_v3 = vld [vmem:[%s9512_s24 + $0x40] sm:$0xff] }
 0xdb3   : > { %8878 = vmatpush3.msra.mxu1 %v8128_v22 }
 0xdb4   : > { %8879 = vmatprep.subr.mxu1 %v8127_v33 }
 0xdb5   : > { %8880 = vmatpush3.msra.mxu1 %v8127_v33 }
 0xdb6   : > { %8881 = vmatprep.subr.mxu1 %v8126_v35 }
 0xdb7   : > { %8882 = vmatpush3.msra.mxu1 %v8126_v35 }
 0xe70   : > { %v8863_v39 = vpop.f32.mrf.mxu1 }
 0xe71   : > { %v3266_v47 = vadd.f32 %v8863_v39, %v9788_v62 }
 0xe72   : > { %v3256_v49 = vpop.f32.mrf.mxu1 }
 0xe73   : > { %v3272_v5 = vadd.f32 %v3270_v38, %v3266_v47  ;;  %v3265_v6 = vadd.f32 %v3256_v49, %v9790_v0 }
 0xe75   : > { %v3271_v9 = vadd.f32 %v3270_v38, %v3265_v6  ;;  %v3274_v23 = vadd.f32 %v3272_v5, %v9541_v8  ;;  %v9400_v38 = vmov 1966171168   ;;  %v9881_v5 = vld [vmem:[%s9517_s9 + $0x10] sm:$0xff] }
 0xe76   : > { %v3596_v39 = vunpack.c.l.s4 %v9400_v38  ;;  %v3497_v6 = vrot.slane %v9881_v5, %v9644_v25 }
 0xe77   : > { %v3278_v10 = vsel %vm623_vm1, %v3274_v23, 0.0  ;;  %v3273_v12 = vadd.f32 %v3271_v9, %v9532_v4 }
 0xe78   : > { %3279 = vadd.xlane.f32.xlu1 %v3278_v10  ;;  %v3597_v49 = vunpack.c.0.s8 %v3596_v39  ;;  %v9893_v10 = vld [vmem:[%s11595_s7] sm:$0xf] }
 0xe79   : > { %v3275_v13 = vsel %vm623_vm1, %v3273_v12, 0.0  ;;  %8897 = vmatprep.subr.msk.mxu1 %vm3945_vm5, %v9893_v10 }
 0xe7a   : > { %3276 = vadd.xlane.f32.xlu0 %v3275_v13 }
 0xf01   : > { %v3280_v14 = vpop.xlane.xlu1 %3279 }
 0xf02   : > { %v3283_v62 = vmul.f32 0.03125, %v3280_v14 }
 0xf03   : > { %v3277_v15 = vpop.xlane.xlu0 %3276 }
 0xf04   : > { %v3285_v19 = vsub.f32 %v3274_v23, %v3283_v62  ;;  %v3282_v0 = vmul.f32 0.03125, %v3277_v15  ;;  %v9888_v23 = vsub.s32 %v3597_v49, %v9568_v18  ;;  %v3590_v62 = vsub.f32 1.0, %v9893_v10 }
 0xf06   : > { %v3284_v24 = vsub.f32 %v3273_v12, %v3282_v0  ;;  %v3287_v8 = vmul.f32 %v3285_v19, %v3285_v19 }
 0xf08   : > { %v3291_v27 = vsel %vm623_vm1, %v3287_v8, 0.0  ;;  %v3286_v4 = vmul.f32 %v3284_v24, %v3284_v24 }
 0xf09   : > { %3292 = vadd.xlane.f32.xlu1 %v3291_v27 }
 0xf0a   : > { %v3288_v28 = vsel %vm623_vm1, %v3286_v4, 0.0 }
 0xf0b   : > { %3289 = vadd.xlane.f32.xlu0 %v3288_v28  ;;  %v9909_v28 = vmul.f32 -1e+30, %v3590_v62 }
 0xf92   : > { %v3293_v37 = vpop.xlane.xlu1 %3292 }
 0xf93   : > { %v3295_v41 = vmul.f32 0.03125, %v3293_v37 }
 0xf94   : > { %v3290_v43 = vpop.xlane.xlu0 %3289 }
 0xf95   : > { %v3297_v44 = vadd.f32 1e-05, %v3295_v41  ;;  %v3294_v45 = vmul.f32 0.03125, %v3290_v43 }
 0xf97   : > { %9342 = vrsqrt.f32 %v3297_v44  ;;  %v3296_v46 = vadd.f32 1e-05, %v3294_v45 }
 0xf99   : > { %9344 = vrsqrt.f32 %v3296_v46 }
 0xfa4   : > { %v9343_v50 = vpop.eup %9342 }
 0xfa5   : > { %v3301_v51 = vmul.f32 %v9343_v50, %v3285_v19 }
 0xfa6   : > { %v9345_v52 = vpop.eup %9344 }
 0xfa7   : > { %v3300_v54 = vmul.f32 %v9345_v52, %v3284_v24  ;;  %v3307_v55 = vmul.f32 %v3305_v42, %v3301_v51 }
 0xfa9   : > { %v3306_v56 = vmul.f32 %v3305_v42, %v3300_v54  ;;  %v9857_v58 = vadd.f32 %v3311_v53, %v3307_v55 }
 0xfab   : > { %11682 = vst [vmem:[#allocation11_spill] sm:$0xff] %v9857_v58  ;;  %v9859_v59 = vadd.f32 %v3311_v53, %v3306_v56  ;;  %v3315_v57 = vadd.f32 %v9367_v7, %v9857_v58 }
 0xfad   : > { %11683 = vst [vmem:[#allocation12_spill] sm:$0xff] %v9859_v59  ;;  %v3314_v61 = vadd.f32 %v9366_v60, %v9859_v59 }
 0xfaf   : > { %8872 = vmatprep.mubr.msk.f32.mxu0 %vm623_vm1, %v3314_v61  ;;  %8883 = vmatprep.mubr.msk.f32.mxu1 %vm623_vm1, %v3314_v61 }
 0xfb0   : > { %8873 = vmatmul.mubr.msk.f32.vlgmr.msra.gmra.mxu0 %vm623_vm1, %v3315_v57  ;;  %8884 = vmatmul.mubr.msk.f32.vlgmr.msra.gmra.mxu1 %vm623_vm1, %v3315_v57 }
 0xfb1   : > { %8887 = vmatpush3.msra.mxu0 %v8135_v36  ;;  %8894 = vmatprep.mubr.msk.f32.mxu0 %vm623_vm1, %v3314_v61 }
 0xfb2   : > { %8888 = vmatprep.subr.mxu0 %v8134_v63  ;;  %8898 = vmatpush3.msk.msra.mxu1 %vm3945_vm5, %v9893_v10 }
 0xfb3   : > { %8889 = vmatpush3.msra.mxu0 %v8134_v63  ;;  %8902 = vmatprep.subr.msk.mxu1 %vm4030_vm14, %v9893_v10 }
 0xfb4   : > { %8890 = vmatprep.subr.mxu0 %v8133_v2 }
 0xfb5   : > { %8891 = vmatpush3.msra.mxu0 %v8133_v2 }
 0xfb6   : > { %8892 = vmatprep.subr.mxu0 %v8132_v3 }
 0xfb7   : > { %8893 = vmatpush3.msra.mxu0 %v8132_v3 }
 0xfb8   : > { %8895 = vmatmul.mubr.msk.f32.vlgmr.msra.gmra.mxu0 %vm623_vm1, %v3315_v57  ;;  %8907 = vmatprep.subr.msk.mxu0 %vm3945_vm5, %v9893_v10 }
 0xfb9   : > { %8908 = vmatpush3.msk.msra.mxu0 %vm3945_vm5, %v9893_v10 }
 0xfba   : > { %8950 = vmatprep.subr.mxu0 %v11607_v16 }
0x1070   : > { %v9878_v47 = vpop.f32.mrf.mxu0 }
0x1072   : > { %v9885_v9 = vpop.f32.mrf.mxu0 }
0x1078   : > { %v8896_v12 = vpop.f32.mrf.mxu0 }
0x1079   : > { %v9895_v13 = vadd.f32 %v8896_v12, %v3497_v6 }
0x107a   : > { %v3564_v14 = vpop.f32.mrf.mxu0 }
0x107b   : > { %v3643_v15 = vcombine.high %v9895_v13, %v9895_v13  ;;  %v3650_v19 = vrot.slane %v9895_v13, %v9888_v23  ;;  %v9902_v0 = vadd.f32 %v3564_v14, %v3497_v6 }
0x107d   : > { %v3658_v24 = vcombine.high %v3650_v19, %v3650_v19  ;;  %v3594_v8 = vcombine.high %v9902_v0, %v9902_v0  ;;  %v3601_v27 = vrot.slane %v9902_v0, %v9888_v23  ;;  %v3657_v4 = vrot.slane %v3643_v15, %v9888_v23 }
0x107e   : > { %v3666_v29 = vrot.slane %v3650_v19, %v9888_v23 }
0x107f   : > { %v3608_v26 = vrot.slane %v3594_v8, %v9888_v23  ;;  %v3609_v31 = vcombine.high %v3601_v27, %v3601_v27  ;;  %v3617_v22 = vrot.slane %v3601_v27, %v9888_v23  ;;  %v3680_v32 = vrot.slane %v3658_v24, %v9888_v23 }
0x1080   : > { %v3727_v33 = vrot.slane %v3666_v29, %v9574_v21  ;;  %v3688_v34 = vcombine.high %v3666_v29, %v3666_v29  ;;  %v3673_v46 = vrot.slane %v3657_v4, %v9888_v23  ;;  %v3659_v39 = vcombine.high %v3657_v4, %v3657_v4 }
0x1081   : > { %v3695_v35 = vrot.slane %v3617_v22, %v9574_v21  ;;  %v3631_v36 = vrot.slane %v3609_v31, %v9888_v23  ;;  %v3731_v37 = vrot.slane %v3680_v32, %v9574_v21  ;;  %v3624_v41 = vrot.slane %v3608_v26, %v9888_v23 }
0x1082   : > { %v3780_v43 = vadd.f32 %v3727_v33, %v9909_v28  ;;  %v3610_v52 = vcombine.high %v3608_v26, %v3608_v26  ;;  %v3735_v56 = vrot.slane %v3688_v34, %v9574_v21  ;;  %v3743_v3 = vrot.slane %v3673_v46, %v9574_v21 }
0x1083   : > { %v3772_v44 = vadd.f32 %v3695_v35, %v9909_v28  ;;  %v3699_v45 = vrot.slane %v3631_v36, %v9574_v21  ;;  %v3711_v50 = vrot.slane %v3624_v41, %v9574_v21  ;;  %v3641_v51 = vcombine.high %v3631_v36, %v3631_v36 }
0x1084   : > { %v3813_v42 = vsel %vm3788_vm4, %v3780_v43, -inf  ;;  %v3781_v55 = vadd.f32 %v3731_v37, %v9909_v28  ;;  %v3638_v57 = vrot.slane %v3610_v52, %v9888_v23  ;;  %v3782_v2 = vadd.f32 %v3735_v56, %v9909_v28 }
0x1085   : > { %3814 = vmax.xlane.f32.xlu1 %v3813_v42  ;;  %v3789_v53 = vsel %vm3788_vm4, %v3772_v44, -inf  ;;  %v3773_v54 = vadd.f32 %v3699_v45, %v9909_v28  ;;  %v3776_v61 = vadd.f32 %v3711_v50, %v9909_v28  ;;  %v3707_v7 = vrot.slane %v3641_v51, %v9574_v21 }
0x1086   : > { %3790 = vmax.xlane.f32.xlu0 %v3789_v53  ;;  %v3816_v63 = vsel %vm3788_vm4, %v3781_v55, -inf  ;;  %v3639_v38 = vcombine.high %v3617_v22, %v3617_v22  ;;  %v3715_v12 = vrot.slane %v3638_v57, %v9574_v21  ;;  %v3640_v14 = vcombine.high %v3624_v41, %v3624_v41 }
0x1087   : > { %v3792_v60 = vsel %vm3788_vm4, %v3773_v54, -inf  ;;  %v3801_v49 = vsel %vm3788_vm4, %v3776_v61, -inf  ;;  %v3775_v6 = vadd.f32 %v3707_v7, %v9909_v28  ;;  %v3819_v62 = vsel %vm3788_vm4, %v3782_v2, -inf }
0x1088   : > { %v3784_v15 = vadd.f32 %v3743_v3, %v9909_v28  ;;  %v3703_v19 = vrot.slane %v3639_v38, %v9574_v21  ;;  %v3690_v24 = vcombine.high %v3680_v32, %v3680_v32  ;;  %v3642_v8 = vcombine.high %v3638_v57, %v3638_v57 }
0x1089   : > { %3793 = vmax.xlane.f32.xlu1 %v3792_v60  ;;  %v3798_v27 = vsel %vm3788_vm4, %v3775_v6, -inf  ;;  %v3777_v4 = vadd.f32 %v3715_v12, %v9909_v28  ;;  %v3719_v29 = vrot.slane %v3640_v14, %v9574_v21  ;;  %v3687_v26 = vrot.slane %v3659_v39, %v9888_v23  ;;  %v8885_v60 = vpop.f32.mrf.mxu1  ;;  %v3573_v39 = vld [vmem:[%s11593_s5] sm:$0xff]  ;;  %v3575_v12 = vld [vmem:[%s11593_s5 + $0x10] sm:$0xff] }
0x108a   : > { %3817 = vmax.xlane.f32.xlu0 %v3816_v63  ;;  %v3825_v31 = vsel %vm3788_vm4, %v3784_v15, -inf  ;;  %v3774_v22 = vadd.f32 %v3703_v19, %v9909_v28  ;;  %v3739_v33 = vrot.slane %v3690_v24, %v9574_v21  ;;  %v3723_v35 = vrot.slane %v3642_v8, %v9574_v21  ;;  %v3577_v63 = vld [vmem:[%s11593_s5 + $0x20] sm:$0xff] }
0x108b   : > { %v3804_v32 = vsel %vm3788_vm4, %v3777_v4, -inf  ;;  %v3778_v34 = vadd.f32 %v3719_v29, %v9909_v28  ;;  %v3691_v36 = vcombine.high %v3687_v26, %v3687_v26  ;;  %v3747_v41 = vrot.slane %v3687_v26, %v9574_v21  ;;  %v3480_v2 = vpop.f32.mrf.mxu1 }
0x108c   : > { %v3795_v37 = vsel %vm3788_vm4, %v3774_v22, -inf  ;;  %v3783_v23 = vadd.f32 %v3739_v33, %v9909_v28  ;;  %v3689_v43 = vcombine.high %v3673_v46, %v3673_v46  ;;  %v3779_v45 = vadd.f32 %v3723_v35, %v9909_v28  ;;  %v10048_v35 = vld [vmem:[%s11684_s26] sm:$0x3] }
0x108d   : > { %3802 = vmax.xlane.f32.xlu1 %v3801_v49  ;;  %v3807_v44 = vsel %vm3788_vm4, %v3778_v34, -inf  ;;  %v3755_v42 = vrot.slane %v3691_v36, %v9574_v21  ;;  %v3785_v51 = vadd.f32 %v3747_v41, %v9909_v28  ;;  %v3323_v7 = vrot.slane %v9881_v5, %v9796_v11  ;;  %v3579_v49 = vld [vmem:[%s11593_s5 + $0x30] sm:$0xff] }
0x108e   : > { %3820 = vmax.xlane.f32.xlu0 %v3819_v62  ;;  %v3822_v50 = vsel %vm3788_vm4, %v3783_v23, -inf  ;;  %v3751_v52 = vrot.slane %v3689_v43, %v9574_v21  ;;  %v3810_v53 = vsel %vm3788_vm4, %v3779_v45, -inf  ;;  %v5423_v41 = vrot.slane %v10048_v35, %v9574_v21  ;;  %v3578_v43 = vld [vmem:[%s11593_s5 + $0x28] sm:$0xff] }
0x108f   : > { %v3787_v54 = vadd.f32 %v3755_v42, %v9909_v28  ;;  %v3828_v46 = vsel %vm3788_vm4, %v3785_v51, -inf  ;;  %v3397_v57 = vadd.f32 %v9885_v9, %v3323_v7  ;;  %v3580_v42 = vld [vmem:[%s11593_s5 + $0x38] sm:$0xff] }
0x1090   : > { %v3786_v55 = vadd.f32 %v3751_v52, %v9909_v28  ;;  %v3413_v28 = vrot.slane %v9881_v5, %v9571_v20  ;;  %v3576_v52 = vld [vmem:[%s11593_s5 + $0x18] sm:$0xff] }
0x1091   : > { %3799 = vmax.xlane.f32.xlu1 %v3798_v27  ;;  %v3834_v56 = vsel %vm3788_vm4, %v3787_v54, -inf  ;;  %v3581_v3 = vmul.f32 %v3577_v63, %v3397_v57 }
0x1092   : > { %3826 = vmax.xlane.f32.xlu0 %v3825_v31  ;;  %v3831_v61 = vsel %vm3788_vm4, %v3786_v55, -inf  ;;  %v3481_v38 = vadd.f32 %v3480_v2, %v3413_v28  ;;  %v3486_v45 = vadd.f32 %v8885_v60, %v3413_v28 }
0x1093   : > { %v3583_v6 = vadd.f32 %v3581_v3, %v3573_v39 }
0x1094   : > { %v3585_v9 = vmul.f32 %v3579_v49, %v3481_v38  ;;  %v3586_v51 = vmul.f32 %v3580_v42, %v3486_v45 }
0x1095   : > { %3805 = vmax.xlane.f32.xlu1 %v3804_v32  ;;  %v9988_v62 = vrot.slane %v3583_v6, %v9651_v30  ;;  %v9999_v19 = vrot.slane %v3583_v6, %v9574_v21  ;;  %v10007_v8 = vrot.slane %v3583_v6, %v9727_v48  ;;  %v10015_v4 = vrot.slane %v3583_v6, %v9796_v11 }
0x1096   : > { %3796 = vmax.xlane.f32.xlu0 %v3795_v37  ;;  %v3587_v14 = vadd.f32 %v3585_v9, %v3575_v12  ;;  %v10023_v26 = vrot.slane %v3583_v6, %v9571_v20  ;;  %v10031_v22 = vrot.slane %v3583_v6, %v9644_v25  ;;  %v10039_v32 = vrot.slane %v3583_v6, %v9718_v40 }
0x1097   : > { %v10052_v36 = vrot.slane %v3583_v6, %v9793_v1  ;;  %v3402_v37 = vadd.f32 %v9878_v47, %v3323_v7  ;;  %v3574_v47 = vld [vmem:[%s11593_s5 + $0x8] sm:$0xff] }
0x1098   : > { %v9995_v15 = vrot.slane %v3587_v14, %v9574_v21  ;;  %v10003_v24 = vrot.slane %v3587_v14, %v9651_v30  ;;  %v10011_v27 = vrot.slane %v3587_v14, %v9727_v48  ;;  %v10019_v29 = vrot.slane %v3587_v14, %v9796_v11 }
0x1099   : > { %3808 = vmax.xlane.f32.xlu1 %v3807_v44  ;;  %v10027_v31 = vrot.slane %v3587_v14, %v9571_v20  ;;  %v10035_v33 = vrot.slane %v3587_v14, %v9644_v25  ;;  %v10043_v34 = vrot.slane %v3587_v14, %v9718_v40  ;;  %v10057_v23 = vrot.slane %v3587_v14, %v9793_v1 }
0x109a   : > { %3823 = vmax.xlane.f32.xlu0 %v3822_v50  ;;  %v3582_v44 = vmul.f32 %v3578_v43, %v3402_v37 }
0x109c   : > { %v3584_v50 = vadd.f32 %v3582_v44, %v3574_v47  ;;  %v3854_v44 = vand.u32 127, %v619_v17 }
0x109d   : > { %3811 = vmax.xlane.f32.xlu1 %v3810_v53  ;;  %v3588_v53 = vadd.f32 %v3586_v51, %v3576_v52 }
0x109e   : > { %3829 = vmax.xlane.f32.xlu0 %v3828_v46  ;;  %v10075_v54 = vrot.slane %v3584_v50, %v9574_v21  ;;  %v10079_v46 = vrot.slane %v3584_v50, %v9651_v30  ;;  %v10091_v60 = vrot.slane %v3584_v50, %v9727_v48  ;;  %v10099_v7 = vrot.slane %v3584_v50, %v9796_v11 }
0x109f   : > { %v10083_v55 = vrot.slane %v3588_v53, %v9574_v21  ;;  %v10103_v57 = vrot.slane %v3588_v53, %v9796_v11  ;;  %v10107_v63 = vrot.slane %v3584_v50, %v9571_v20  ;;  %v10111_v2 = vrot.slane %v3588_v53, %v9571_v20 }
0x10a0   : > { %11686 = vst [vmem:[#allocation14_spill] sm:$0xff] %v10091_v60  ;;  %11688 = vst [vmem:[#allocation16_spill] sm:$0xff] %v10099_v7  ;;  %v10115_v28 = vrot.slane %v3584_v50, %v9644_v25  ;;  %v10119_v3 = vrot.slane %v3588_v53, %v9644_v25  ;;  %v10123_v38 = vrot.slane %v3584_v50, %v9718_v40 }
0x10a1   : > { %3835 = vmax.xlane.f32.xlu1 %v3834_v56  ;;  %v10087_v56 = vrot.slane %v3588_v53, %v9651_v30  ;;  %11689 = vst [vmem:[#allocation17_spill] sm:$0xff] %v10103_v57  ;;  %11690 = vst [vmem:[#allocation18_spill] sm:$0xff] %v10107_v63  ;;  %v10127_v39 = vrot.slane %v3588_v53, %v9718_v40  ;;  %v10131_v49 = vrot.slane %v3584_v50, %v9793_v1 }
0x10a2   : > { %3832 = vmax.xlane.f32.xlu0 %v3831_v61  ;;  %v10095_v61 = vrot.slane %v3588_v53, %v9727_v48  ;;  %11691 = vst [vmem:[#allocation19_spill] sm:$0xff] %v10111_v2  ;;  %11692 = vst [vmem:[#allocation20_spill] sm:$0xff] %v10115_v28  ;;  %v10135_v6 = vrot.slane %v3588_v53, %v9793_v1  ;;  %v3857_v42 = vsub.s32 %v3854_v44, %v9568_v18 }
0x10a3   : > { %11685 = vst [vmem:[#allocation13_spill] sm:$0xff] %v10087_v56  ;;  %11693 = vst [vmem:[#allocation21_spill] sm:$0xff] %v10119_v3 }
0x10a4   : > { %11687 = vst [vmem:[#allocation15_spill] sm:$0xff] %v10095_v61  ;;  %11694 = vst [vmem:[#allocation22_spill] sm:$0xff] %v10123_v38 }
0x10a5   : > { %11695 = vst [vmem:[#allocation23_spill] sm:$0xff] %v10127_v39  ;;  %11696 = vst [vmem:[#allocation24_spill] sm:$0xff] %v10131_v49 }
0x10a6   : > { %11697 = vst [vmem:[#allocation25_spill] sm:$0xff] %v10135_v6 }
0x10b2   : > { %4220 = vbcast.lane.b32.xlu1 %v9988_v62, 256 }
0x10b6   : > { %4513 = vbcast.lane.b32.xlu1 %v9995_v15, 256 }
0x10b8   : > { %4209 = vbcast.lane.b32.xlu0 %v9999_v19, 256 }
0x10ba   : > { %4524 = vbcast.lane.b32.xlu1 %v10003_v24, 256 }
0x10bc   : > { %4231 = vbcast.lane.b32.xlu0 %v10007_v8, 256 }
0x10be   : > { %4535 = vbcast.lane.b32.xlu1 %v10011_v27, 256 }
0x10c0   : > { %4242 = vbcast.lane.b32.xlu0 %v10015_v4, 256 }
0x10c2   : > { %4546 = vbcast.lane.b32.xlu1 %v10019_v29, 256 }
0x10c4   : > { %4253 = vbcast.lane.b32.xlu0 %v10023_v26, 256 }
0x10c6   : > { %4557 = vbcast.lane.b32.xlu1 %v10027_v31, 256 }
0x10c8   : > { %4264 = vbcast.lane.b32.xlu0 %v10031_v22, 256 }
0x10ca   : > { %4568 = vbcast.lane.b32.xlu1 %v10035_v33, 256 }
0x10cc   : > { %4275 = vbcast.lane.b32.xlu0 %v10039_v32, 256 }
0x10ce   : > { %4579 = vbcast.lane.b32.xlu1 %v10043_v34, 256 }
0x10d0   : > { %4286 = vbcast.lane.b32.xlu0 %v10052_v36, 256 }
0x10d2   : > { %4590 = vbcast.lane.b32.xlu1 %v10057_v23, 256 }
0x10d4   : > { %5461 = vbcast.lane.b32.xlu0 %v5423_v41, 328 }
0x10d6   : > { %5457 = vbcast.lane.b32.xlu1 %v5423_v41, 320 }
0x10d8   : > { %5453 = vbcast.lane.b32.xlu0 %v5423_v41, 312 }
0x10da   : > { %5449 = vbcast.lane.b32.xlu1 %v5423_v41, 304 }
0x10dc   : > { %5445 = vbcast.lane.b32.xlu0 %v5423_v41, 296 }
0x10de   : > { %4297 = vbcast.lane.b32.xlu1 %v10075_v54, 256 }
0x10e0   : > { %4308 = vbcast.lane.b32.xlu0 %v10079_v46, 256 }
0x10e2   : > { %4601 = vbcast.lane.b32.xlu1 %v10083_v55, 256 }
0x10e4   : > { %4612 = vbcast.lane.b32.xlu0 %v10087_v56, 256 }
0x10e6   : > { %5441 = vbcast.lane.b32.xlu1 %v5423_v41, 288 }
0x10e8   : > { %4319 = vbcast.lane.b32.xlu0 %v10091_v60, 256  ;;  %v5069_v60 = vld [vmem:[%s11733_s27 + $0x88] sm:$0xff] }
0x10ea   : > { %4623 = vbcast.lane.b32.xlu1 %v10095_v61, 256 }
0x10ec   : > { %4330 = vbcast.lane.b32.xlu0 %v10099_v7, 256 }
0x10ee   : > { %4634 = vbcast.lane.b32.xlu1 %v10103_v57, 256 }
0x10f0   : > { %5437 = vbcast.lane.b32.xlu0 %v5423_v41, 280 }
0x10f2   : > { %4341 = vbcast.lane.b32.xlu1 %v10107_v63, 256 }
0x10f4   : > { %4645 = vbcast.lane.b32.xlu0 %v10111_v2, 256 }
0x10f6   : > { %4352 = vbcast.lane.b32.xlu1 %v10115_v28, 256 }
0x10f8   : > { %4656 = vbcast.lane.b32.xlu0 %v10119_v3, 256 }
0x10fa   : > { %5433 = vbcast.lane.b32.xlu1 %v5423_v41, 272 }
0x10fc   : > { %4363 = vbcast.lane.b32.xlu0 %v10123_v38, 256 }
0x10fe   : > { %4667 = vbcast.lane.b32.xlu1 %v10127_v39, 256 }
0x1100   : > { %4374 = vbcast.lane.b32.xlu0 %v10131_v49, 256 }
0x1102   : > { %4678 = vbcast.lane.b32.xlu1 %v10135_v6, 256 }
0x1104   : > { %5429 = vbcast.lane.b32.xlu0 %v5423_v41, 264 }
0x1106   : > { %5425 = vbcast.lane.b32.xlu1 %v5423_v41, 256 }
0x110e   : > { %v3815_v9 = vpop.xlane.xlu1 %3814 }
0x110f   : > { %v3791_v12 = vpop.xlane.xlu0 %3790  ;;  %v3890_v3 = vrot.slane %v3815_v9, %v3857_v42 }
0x1110   : > { %v3858_v53 = vrot.slane %v3791_v12, %v3857_v42 }
0x1112   : > { %v3794_v14 = vpop.xlane.xlu1 %3793 }
0x1113   : > { %v3818_v37 = vpop.xlane.xlu0 %3817  ;;  %v3862_v51 = vrot.slane %v3794_v14, %v3857_v42 }
0x1114   : > { %v3894_v39 = vrot.slane %v3818_v37, %v3857_v42 }
0x1115   : > { %v3920_v41 = vsel %vm3919_vm6, %v3862_v51, %v3858_v53 }
0x1116   : > { %v3803_v43 = vpop.xlane.xlu1 %3802 }
0x1117   : > { %v3821_v45 = vpop.xlane.xlu0 %3820  ;;  %v3874_v6 = vrot.slane %v3803_v43, %v3857_v42 }
0x1118   : > { %v3898_v12 = vrot.slane %v3821_v45, %v3857_v42 }
0x111a   : > { %v3800_v47 = vpop.xlane.xlu1 %3799 }
0x111b   : > { %v3827_v50 = vpop.xlane.xlu0 %3826  ;;  %v3870_v58 = vrot.slane %v3800_v47, %v3857_v42 }
0x111c   : > { %v3906_v9 = vrot.slane %v3827_v50, %v3857_v42 }
0x111e   : > { %v3806_v52 = vpop.xlane.xlu1 %3805 }
0x111f   : > { %v3797_v16 = vpop.xlane.xlu0 %3796  ;;  %v3878_v18 = vrot.slane %v3806_v52, %v3857_v42 }
0x1120   : > { %v3866_v59 = vrot.slane %v3797_v16, %v3857_v42 }
0x1122   : > { %v3922_v17 = vsel %vm3921_vm8, %v3866_v59, %v3920_v41  ;;  %v3809_v49 = vpop.xlane.xlu1 %3808  ;;  %v3933_v59 = vsel %vm3919_vm6, %v3894_v39, %v3890_v3 }
0x1123   : > { %v3924_v14 = vsel %vm3923_vm7, %v3870_v58, %v3922_v17  ;;  %v3824_v44 = vpop.xlane.xlu0 %3823  ;;  %v3882_v38 = vrot.slane %v3809_v49, %v3857_v42  ;;  %v3934_v58 = vsel %vm3921_vm8, %v3898_v12, %v3933_v59 }
0x1124   : > { %v3926_v16 = vsel %vm3925_vm9, %v3874_v6, %v3924_v14  ;;  %v3902_v51 = vrot.slane %v3824_v44, %v3857_v42 }
0x1125   : > { %v3928_v47 = vsel %vm3927_vm10, %v3878_v18, %v3926_v16 }
0x1126   : > { %v3812_v53 = vpop.xlane.xlu1 %3811  ;;  %v3930_v43 = vsel %vm3929_vm11, %v3882_v38, %v3928_v47  ;;  %v3935_v45 = vsel %vm3923_vm7, %v3902_v51, %v3934_v58 }
0x1127   : > { %v3886_v37 = vrot.slane %v3812_v53, %v3857_v42  ;;  %v3830_v52 = vpop.xlane.xlu0 %3829  ;;  %v3936_v38 = vsel %vm3925_vm9, %v3906_v9, %v3935_v45 }
0x1128   : > { %v3910_v49 = vrot.slane %v3830_v52, %v3857_v42 }
0x1129   : > { %v3932_v6 = vsel %vm3931_vm12, %v3886_v37, %v3930_v43 }
0x112a   : > { %8899 = vmatprep.mubr.msk.f32.mxu1 %vm3940_vm13, %v3932_v6  ;;  %v3836_v41 = vpop.xlane.xlu1 %3835  ;;  %v3937_v3 = vsel %vm3927_vm10, %v3910_v49, %v3936_v38 }
0x112b   : > { %v3833_v17 = vpop.xlane.xlu0 %3832  ;;  %v3918_v39 = vrot.slane %v3836_v41, %v3857_v42 }
0x112c   : > { %v3914_v18 = vrot.slane %v3833_v17, %v3857_v42 }
0x112e   : > { %v3938_v14 = vsel %vm3929_vm11, %v3914_v18, %v3937_v3  ;;  %v10154_v44 = vpop.permute.xlu1 %4220 }
0x112f   : > { %v10156_v12 = vpop.permute.xlu0 %4209  ;;  %v3939_v16 = vsel %vm3931_vm12, %v3918_v39, %v3938_v14 }
0x1130   : > { %8900 = vmatmul.mubr.msk.f32.vlgmr.msra.gmra.mxu1 %vm3940_vm13, %v3939_v16 }
0x1131   : > { %8903 = vmatpush3.xpose.msk.msra.mxu1 %vm4030_vm14, %v9893_v10 }
0x1132   : > { %v10160_v50 = vpop.permute.xlu1 %4513 }
0x1133   : > { %11698 = vst [vmem:[#allocation26_spill] sm:$0xff] %v10160_v50  ;;  %v10162_v51 = vpop.permute.xlu0 %4231  ;;  %v5070_v50 = vld [vmem:[%s11733_s27 + $0x90] sm:$0xff] }
0x1134   : > { %11699 = vst [vmem:[#allocation27_spill] sm:$0xff] %v10162_v51 }
0x1136   : > { %v10164_v47 = vpop.permute.xlu1 %4524 }
0x1137   : > { %11700 = vst [vmem:[#allocation28_spill] sm:$0xff] %v10164_v47  ;;  %v10166_v53 = vpop.permute.xlu0 %4242 }
0x1138   : > { %11701 = vst [vmem:[#allocation29_spill] sm:$0xff] %v10166_v53 }
0x113a   : > { %v10168_v43 = vpop.permute.xlu1 %4535 }
0x113b   : > { %11702 = vst [vmem:[#allocation30_spill] sm:$0xff] %v10168_v43  ;;  %v10170_v42 = vpop.permute.xlu0 %4253 }
0x113c   : > { %11703 = vst [vmem:[#allocation31_spill] sm:$0xff] %v10170_v42 }
0x113e   : > { %v10172_v59 = vpop.permute.xlu1 %4546 }
0x113f   : > { %11704 = vst [vmem:[#allocation32_spill] sm:$0xff] %v10172_v59  ;;  %v10174_v37 = vpop.permute.xlu0 %4264 }
0x1140   : > { %11705 = vst [vmem:[#allocation33_spill] sm:$0xff] %v10174_v37 }
0x1142   : > { %v10176_v52 = vpop.permute.xlu1 %4557 }
0x1143   : > { %11706 = vst [vmem:[#allocation34_spill] sm:$0xff] %v10176_v52  ;;  %v10178_v58 = vpop.permute.xlu0 %4275 }
0x1144   : > { %11707 = vst [vmem:[#allocation35_spill] sm:$0xff] %v10178_v58 }
0x1146   : > { %v10180_v45 = vpop.permute.xlu1 %4568 }
0x1147   : > { %11708 = vst [vmem:[#allocation36_spill] sm:$0xff] %v10180_v45  ;;  %v10182_v49 = vpop.permute.xlu0 %4286 }
0x1148   : > { %11709 = vst [vmem:[#allocation37_spill] sm:$0xff] %v10182_v49 }
0x114a   : > { %v10184_v6 = vpop.permute.xlu1 %4579 }
0x114b   : > { %11710 = vst [vmem:[#allocation38_spill] sm:$0xff] %v10184_v6  ;;  %v10186_v9 = vpop.permute.xlu0 %5461 }
0x114c   : > { %11711 = vst [vmem:[#allocation39_spill] sm:$0xff] %v10186_v9 }
0x114e   : > { %v10188_v41 = vpop.permute.xlu1 %4590 }
0x114f   : > { %11712 = vst [vmem:[#allocation40_spill] sm:$0xff] %v10188_v41  ;;  %v10190_v17 = vpop.permute.xlu0 %5453 }
0x1150   : > { %11713 = vst [vmem:[#allocation41_spill] sm:$0xff] %v10190_v17 }
0x1152   : > { %v10192_v38 = vpop.permute.xlu1 %5457 }
0x1153   : > { %11714 = vst [vmem:[#allocation42_spill] sm:$0xff] %v10192_v38  ;;  %v10194_v18 = vpop.permute.xlu0 %5445 }
0x1154   : > { %11715 = vst [vmem:[#allocation43_spill] sm:$0xff] %v10194_v18 }
0x1156   : > { %v10196_v3 = vpop.permute.xlu1 %5449 }
0x1157   : > { %11716 = vst [vmem:[#allocation44_spill] sm:$0xff] %v10196_v3  ;;  %v10198_v39 = vpop.permute.xlu0 %4308 }
0x1158   : > { %11717 = vst [vmem:[#allocation45_spill] sm:$0xff] %v10198_v39  ;;  %v10221_v39 = vld [vmem:[%s11727_s20 + $0x10] sm:$0xff] }
0x1159   : > { %11728 = vst [vmem:[#allocation55_spill] sm:$0xff] %v10221_v39 }
0x115a   : > { %v10200_v14 = vpop.permute.xlu1 %4297 }
0x115b   : > { %11718 = vst [vmem:[#allocation46_spill] sm:$0xff] %v10200_v14  ;;  %v10202_v16 = vpop.permute.xlu0 %4612 }
0x115c   : > { %11719 = vst [vmem:[#allocation47_spill] sm:$0xff] %v10202_v16 }
0x115e   : > { %v10204_v28 = vpop.permute.xlu1 %4601 }
0x115f   : > { %11720 = vst [vmem:[#allocation48_spill] sm:$0xff] %v10204_v28  ;;  %v10206_v49 = vpop.permute.xlu0 %4319 }
0x1160   : > { %11721 = vst [vmem:[#allocation49_spill] sm:$0xff] %v10206_v49  ;;  %v10227_v49 = vld [vmem:[%s11727_s20] sm:$0xff] }
0x1162   : > { %v10208_v58 = vpop.permute.xlu1 %5441 }
0x1163   : > { %11722 = vst [vmem:[#allocation50_spill] sm:$0xff] %v10208_v58  ;;  %v10210_v41 = vpop.permute.xlu0 %4330 }
0x1164   : > { %11723 = vst [vmem:[#allocation51_spill] sm:$0xff] %v10210_v41 }
0x1166   : > { %v10212_v2 = vpop.permute.xlu1 %4623 }
0x1167   : > { %11724 = vst [vmem:[#allocation52_spill] sm:$0xff] %v10212_v2  ;;  %v10214_v6 = vpop.permute.xlu0 %5437 }
0x1168   : > { %11725 = vst [vmem:[#allocation53_spill] sm:$0xff] %v10214_v6 }
0x116a   : > { %v10216_v45 = vpop.permute.xlu1 %4634 }
0x116b   : > { %11726 = vst [vmem:[#allocation54_spill] sm:$0xff] %v10216_v45  ;;  %v4646_v16 = vpop.permute.xlu0 %4645 }
0x116c   : > { %v4708_v14 = vsub.f32 %v4646_v16, %v10221_v39 }
0x116e   : > { %v4740_v41 = vand.u32 2147483647, %v4708_v14  ;;  %v4342_v28 = vpop.permute.xlu1 %4341 }
0x116f   : > { %v4404_v2 = vsub.f32 %v4342_v28, %v10227_v49  ;;  %v4657_v37 = vpop.permute.xlu0 %4656 }
0x1170   : > { %v4772_v63 = vsub.f32 1.0, %v4740_v41  ;;  %v4710_v45 = vsub.f32 %v4657_v37, %v10221_v39 }
0x1171   : > { %v4436_v52 = vand.u32 2147483647, %v4404_v2 }
0x1172   : > { %v4742_v59 = vand.u32 2147483647, %v4710_v45  ;;  %v4353_v42 = vpop.permute.xlu1 %4352  ;;  %v4804_v7 = vmax.f32 %v4772_v63, 0.0 }
0x1173   : > { %v4468_v57 = vsub.f32 1.0, %v4436_v52  ;;  %v4406_v53 = vsub.f32 %v4353_v42, %v10227_v49  ;;  %v4364_v16 = vpop.permute.xlu0 %4363 }
0x1174   : > { %v4774_v61 = vsub.f32 1.0, %v4742_v59  ;;  %v4408_v14 = vsub.f32 %v4364_v16, %v10227_v49 }
0x1175   : > { %v4500_v43 = vmax.f32 %v4468_v57, 0.0  ;;  %v4438_v47 = vand.u32 2147483647, %v4406_v53 }
0x1176   : > { %v10233_v51 = vpop.permute.xlu1 %5433  ;;  %v4806_v2 = vmax.f32 %v4774_v61, 0.0  ;;  %v4440_v52 = vand.u32 2147483647, %v4408_v14 }
0x1177   : > { %11729 = vst [vmem:[#allocation56_spill] sm:$0xff] %v10233_v51  ;;  %v4470_v28 = vsub.f32 1.0, %v4438_v47  ;;  %v10235_v41 = vmul.f32 %v4804_v7, %v4500_v43 }
0x1178   : > { %v4472_v42 = vsub.f32 1.0, %v4440_v52  ;;  %v8151_v52 = vld [vmem:[%s9492_s25 + $0x190] sm:$0xff] }
0x1179   : > { %11730 = vst [vmem:[#allocation57_spill] sm:$0xff] %v10235_v41  ;;  %v4502_v37 = vmax.f32 %v4470_v28, 0.0  ;;  %v5068_v41 = vld [vmem:[%s11733_s27 + $0x80] sm:$0xff] }
0x117a   : > { %v4668_v57 = vpop.permute.xlu1 %4667  ;;  %v4504_v7 = vmax.f32 %v4472_v42, 0.0  ;;  %v8149_v42 = vld [vmem:[%s9492_s25 + $0x180] sm:$0xff] }
0x117b   : > { %v4712_v63 = vsub.f32 %v4668_v57, %v10221_v39  ;;  %v10242_v53 = vmul.f32 %v4806_v2, %v4502_v37  ;;  %v5071_v39 = vld [vmem:[%s11733_s27 + $0x98] sm:$0xff] }
0x117d   : > { %11731 = vst [vmem:[#allocation58_spill] sm:$0xff] %v10242_v53  ;;  %v4744_v59 = vand.u32 2147483647, %v4712_v63  ;;  %v8150_v63 = vld [vmem:[%s9492_s25 + $0x188] sm:$0xff]  ;;  %v5067_v53 = vld [vmem:[%s11733_s27 + $0x78] sm:$0xff] }
0x117f   : > { %v4776_v47 = vsub.f32 1.0, %v4744_v59  ;;  %v5053_v59 = vld [vmem:[%s11733_s27 + $0x8] sm:$0xff] }
0x1181   : > { %v4808_v43 = vmax.f32 %v4776_v47, 0.0  ;;  %v5054_v47 = vld [vmem:[%s11733_s27 + $0x10] sm:$0xff] }
0x1183   : > { %v10244_v45 = vmul.f32 %v4808_v43, %v4504_v7  ;;  %v8179_v7 = vld [vmem:[%s9492_s25 + $0x1b8] sm:$0xff]  ;;  %v8178_v43 = vld [vmem:[%s9492_s25 + $0x1b0] sm:$0xff] }
0x1185   : > { %11732 = vst [vmem:[#allocation59_spill] sm:$0xff] %v10244_v45  ;;  %v5066_v45 = vld [vmem:[%s11733_s27 + $0x70] sm:$0xff] }
0x11f0   : > { %v8901_v61 = vpop.f32.mrf.mxu1 }
0x11f1   : > { %v4025_v16 = vsub.f32 %v9895_v13, %v8901_v61  ;;  %v8152_v13 = vld [vmem:[%s9492_s25 + $0x198] sm:$0xff] }
0x11f2   : > { %v4015_v14 = vpop.f32.mrf.mxu1  ;;  %8912 = vmatprep.subr.mxu1 %v8152_v13  ;;  %v5055_v61 = vld [vmem:[%s11733_s27 + $0x18] sm:$0xff] }
0x11f3   : > { %v4024_v10 = vsub.f32 %v9902_v0, %v4015_v14  ;;  %v4028_v28 = vmul.f32 1.442695, %v4025_v16  ;;  %v5052_v0 = vld [vmem:[%s11733_s27] sm:$0xff]  ;;  %v8177_v16 = vld [vmem:[%s9492_s25 + $0x1a8] sm:$0xff] }
0x11f4   : > { %v5056_v14 = vld [vmem:[%s11733_s27 + $0x20] sm:$0xff] }
0x11f5   : > { %v4026_v57 = vmul.f32 1.442695, %v4024_v10  ;;  %v8176_v10 = vld [vmem:[%s9492_s25 + $0x1a0] sm:$0xff] }
0x11f7   : > { %9346 = vpow2.f32 %v4026_v57  ;;  %v5058_v57 = vld [vmem:[%s11733_s27 + $0x30] sm:$0xff] }
0x11f8   : > { %9348 = vpow2.f32 %v4028_v28  ;;  %v5057_v28 = vld [vmem:[%s11733_s27 + $0x28] sm:$0xff] }
0x1204   : > { %v10248_v2 = vpop.eup %9346 }
0x1205   : > { %v10250_v37 = vpop.eup %9348  ;;  %8904 = vmatprep.mubr.msk.f32.mxu1 %vm4030_vm14, %v10248_v2 }
0x1206   : > { %8905 = vmatmul.mubr.msk.f32.vlgmr.msra.gmra.mxu1 %vm4030_vm14, %v10250_v37 }
0x1207   : > { %8913 = vmatpush3.msra.mxu1 %v8152_v13  ;;  %8920 = vmatprep.mubr.msk.f32.mxu1 %vm623_vm1, %v5052_v0  ;;  %v11734_v13 = vmov 0.0  }
0x1208   : > { %8914 = vmatprep.subr.mxu1 %v8151_v52 }
0x1209   : > { %8915 = vmatpush3.msra.mxu1 %v8151_v52  ;;  %v5059_v52 = vld [vmem:[%s11733_s27 + $0x38] sm:$0xff] }
0x120a   : > { %8916 = vmatprep.subr.mxu1 %v8150_v63 }
0x120b   : > { %8917 = vmatpush3.msra.mxu1 %v8150_v63  ;;  %v5060_v63 = vld [vmem:[%s11733_s27 + $0x40] sm:$0xff] }
0x120c   : > { %8918 = vmatprep.subr.mxu1 %v8149_v42 }
0x120d   : > { %8919 = vmatpush3.msra.mxu1 %v8149_v42  ;;  %v5061_v42 = vld [vmem:[%s11733_s27 + $0x48] sm:$0xff] }
0x120e   : > { %8921 = vmatmul.mubr.msk.f32.vlgmr.msra.gmra.mxu1 %vm623_vm1, %v5053_v59  ;;  %8996 = vmatprep.subr.mxu1 %v8179_v7 }
0x120f   : > { %8923 = vmatprep.mubr.msk.f32.mxu1 %vm623_vm1, %v5054_v47  ;;  %8997 = vmatpush3.msra.mxu1 %v8179_v7  ;;  %v5062_v7 = vld [vmem:[%s11733_s27 + $0x50] sm:$0xff] }
0x1210   : > { %8998 = vmatprep.subr.mxu1 %v8178_v43 }
0x1211   : > { %8999 = vmatpush3.msra.mxu1 %v8178_v43  ;;  %v5063_v43 = vld [vmem:[%s11733_s27 + $0x58] sm:$0xff] }
0x1212   : > { %8924 = vmatmul.mubr.msk.f32.gmra.mxu1 %vm623_vm1, %v5055_v61  ;;  %9000 = vmatprep.subr.mxu1 %v8177_v16 }
0x1213   : > { %8926 = vmatprep.mubr.msk.f32.mxu1 %vm623_vm1, %v5056_v14  ;;  %9001 = vmatpush3.msra.mxu1 %v8177_v16  ;;  %v5064_v16 = vld [vmem:[%s11733_s27 + $0x60] sm:$0xff] }
0x1214   : > { %9002 = vmatprep.subr.mxu1 %v8176_v10 }
0x1215   : > { %9003 = vmatpush3.msra.mxu1 %v8176_v10  ;;  %v5065_v10 = vld [vmem:[%s11733_s27 + $0x68] sm:$0xff] }
0x1216   : > { %8927 = vmatmul.mubr.msk.f32.gmra.mxu1 %vm623_vm1, %v5057_v28  ;;  %9034 = vmatprep.subr.mxu1 %v11734_v13 }
0x1217   : > { %8929 = vmatprep.mubr.msk.f32.mxu1 %vm623_vm1, %v5058_v57 }
0x121a   : > { %8930 = vmatmul.mubr.msk.f32.gmra.mxu1 %vm623_vm1, %v5059_v52 }
0x121b   : > { %8932 = vmatprep.mubr.msk.f32.mxu1 %vm623_vm1, %v5060_v63 }
0x121e   : > { %8933 = vmatmul.mubr.msk.f32.gmra.mxu1 %vm623_vm1, %v5061_v42 }
0x121f   : > { %8935 = vmatprep.mubr.msk.f32.mxu1 %vm623_vm1, %v5062_v7 }
0x1222   : > { %8936 = vmatmul.mubr.msk.f32.gmra.mxu1 %vm623_vm1, %v5063_v43 }
0x1223   : > { %8938 = vmatprep.mubr.msk.f32.mxu1 %vm623_vm1, %v5064_v16 }
0x1226   : > { %8939 = vmatmul.mubr.msk.f32.gmra.mxu1 %vm623_vm1, %v5065_v10 }
0x1227   : > { %8941 = vmatprep.mubr.msk.f32.mxu1 %vm623_vm1, %v5066_v45 }
0x122a   : > { %8942 = vmatmul.mubr.msk.f32.gmra.mxu1 %vm623_vm1, %v5067_v53 }
0x122b   : > { %8944 = vmatprep.mubr.msk.f32.mxu1 %vm623_vm1, %v5068_v41 }
0x122e   : > { %8945 = vmatmul.mubr.msk.f32.gmra.mxu1 %vm623_vm1, %v5069_v60 }
0x122f   : > { %8947 = vmatprep.mubr.msk.f32.mxu1 %vm623_vm1, %v5070_v50 }
0x1232   : > { %8948 = vmatmul.mubr.msk.f32.gmra.mxu1 %vm623_vm1, %v5071_v39 }
0x1233   : > { %9004 = vmatprep.mubr.msk.f32.mxu1 %vm623_vm1, %v5052_v0 }
0x1236   : > { %9005 = vmatmul.mubr.msk.f32.vlgmr.msra.gmra.mxu1 %vm623_vm1, %v5053_v59 }
0x1237   : > { %9007 = vmatprep.mubr.msk.f32.mxu1 %vm623_vm1, %v5054_v47 }
0x123a   : > { %9008 = vmatmul.mubr.msk.f32.gmra.mxu1 %vm623_vm1, %v5055_v61 }
0x123b   : > { %9010 = vmatprep.mubr.msk.f32.mxu1 %vm623_vm1, %v5056_v14 }
0x123e   : > { %9011 = vmatmul.mubr.msk.f32.gmra.mxu1 %vm623_vm1, %v5057_v28 }
0x123f   : > { %9013 = vmatprep.mubr.msk.f32.mxu1 %vm623_vm1, %v5058_v57 }
0x1242   : > { %9014 = vmatmul.mubr.msk.f32.gmra.mxu1 %vm623_vm1, %v5059_v52 }
0x1243   : > { %9016 = vmatprep.mubr.msk.f32.mxu1 %vm623_vm1, %v5060_v63 }
0x1246   : > { %9017 = vmatmul.mubr.msk.f32.gmra.mxu1 %vm623_vm1, %v5061_v42 }
0x1247   : > { %9019 = vmatprep.mubr.msk.f32.mxu1 %vm623_vm1, %v5062_v7 }
0x124a   : > { %9020 = vmatmul.mubr.msk.f32.gmra.mxu1 %vm623_vm1, %v5063_v43 }
0x124b   : > { %9022 = vmatprep.mubr.msk.f32.mxu1 %vm623_vm1, %v5064_v16 }
0x124e   : > { %9023 = vmatmul.mubr.msk.f32.gmra.mxu1 %vm623_vm1, %v5065_v10 }
0x124f   : > { %9025 = vmatprep.mubr.msk.f32.mxu1 %vm623_vm1, %v5066_v45 }
0x1252   : > { %9026 = vmatmul.mubr.msk.f32.gmra.mxu1 %vm623_vm1, %v5067_v53  ;;  %v9368_v53 = vld [vmem:[%s9517_s9 + $0x8] sm:$0xff] }
0x1253   : > { %9028 = vmatprep.mubr.msk.f32.mxu1 %vm623_vm1, %v5068_v41  ;;  %v10373_v41 = vrot.slane %v9368_v53, %v9793_v1 }
0x1256   : > { %9029 = vmatmul.mubr.msk.f32.gmra.mxu1 %vm623_vm1, %v5069_v60 }
0x1257   : > { %9031 = vmatprep.mubr.msk.f32.mxu1 %vm623_vm1, %v5070_v50 }
0x125a   : > { %9032 = vmatmul.mubr.msk.f32.gmra.mxu1 %vm623_vm1, %v5071_v39 }
0x125b   : > { %9054 = vmatprep.mubr.msk.f32.mxu1 %vm9399_vm2, %v11734_v13 }
0x12c6   : > { %v8906_v0 = vpop.f32.mrf.mxu1 }
0x12c8   : > { %v4105_v59 = vpop.f32.mrf.mxu1 }
0x12c9   : > { %8909 = vmatprep.mubr.msk.f32.mxu0 %vm3940_vm13, %v4105_v59 }
0x12ca   : > { %8910 = vmatmul.mubr.msk.f32.vlgmr.msra.gmra.mxu0 %vm3940_vm13, %v8906_v0 }
0x12cb   : > { %8970 = vmatprep.mubr.msk.f32.mxu0 %vm9399_vm2, %v11734_v13 }
0x12ce   : > { %v8922_v60 = vpop.f32.mrf.mxu1 }
0x12cf   : > { %v10376_v50 = vadd.f32 %v8922_v60, %v10373_v41 }
0x12d0   : > { %v5321_v39 = vpop.f32.mrf.mxu1 }
0x12d1   : > { %v10379_v45 = vadd.f32 %v5321_v39, %v10373_v41 }
0x12d2   : > { %v8925_v47 = vpop.f32.mrf.mxu1 }
0x12d4   : > { %v5331_v61 = vpop.f32.mrf.mxu1 }
0x12d6   : > { %v8928_v14 = vpop.f32.mrf.mxu1 }
0x12d7   : > { %v5347_v53 = vadd.f32 %v8928_v14, %v10373_v41 }
0x12d8   : > { %v5341_v28 = vpop.f32.mrf.mxu1 }
0x12da   : > { %v8931_v57 = vpop.f32.mrf.mxu1 }
0x12db   : > { %v5357_v42 = vadd.f32 %v8931_v57, %v10373_v41 }
0x12dc   : > { %v5351_v52 = vpop.f32.mrf.mxu1 }
0x12dd   : > { %v5352_v16 = vadd.f32 %v5351_v52, %v10373_v41  ;;  %v5513_v60 = vmul.f32 %v10190_v17, %v5357_v42  ;;  %v5342_v52 = vadd.f32 %v5341_v28, %v10373_v41  ;;  %v5337_v42 = vadd.f32 %v8925_v47, %v10373_v41 }
0x12de   : > { %v8934_v63 = vpop.f32.mrf.mxu1  ;;  %v5332_v28 = vadd.f32 %v5331_v61, %v10373_v41 }
0x12df   : > { %v5367_v7 = vadd.f32 %v8934_v63, %v10373_v41  ;;  %v5512_v63 = vmul.f32 %v10196_v3, %v5352_v16  ;;  %v5510_v16 = vmul.f32 %v10208_v58, %v5342_v52  ;;  %v5509_v47 = vmul.f32 %v10214_v6, %v5337_v42 }
0x12e0   : > { %v5361_v43 = vpop.f32.mrf.mxu1  ;;  %v5508_v61 = vmul.f32 %v10233_v51, %v5332_v28 }
0x12e1   : > { %v5515_v10 = vmul.f32 %v10186_v9, %v5367_v7  ;;  %v5362_v0 = vadd.f32 %v5361_v43, %v10373_v41  ;;  %v5511_v43 = vmul.f32 %v10194_v18, %v5347_v53 }
0x12e2   : > { %v8937_v59 = vpop.f32.mrf.mxu1 }
0x12e3   : > { %v5514_v39 = vmul.f32 %v10192_v38, %v5362_v0  ;;  %v10390_v56 = vadd.f32 %v8937_v59, %v10373_v41  ;;  %8951 = vmatpush3.msra.mxu0 %v5515_v10 }
0x12e4   : > { %v5371_v57 = vpop.f32.mrf.mxu1  ;;  %8952 = vmatprep.subr.mxu0 %v11734_v13 }
0x12e5   : > { %11735 = vst [vmem:[#allocation60_spill] sm:$0xff] %v10390_v56  ;;  %v10396_v7 = vadd.f32 %v5371_v57, %v10373_v41  ;;  %8953 = vmatpush3.msra.mxu0 %v5514_v39 }
0x12e6   : > { %v8940_v14 = vpop.f32.mrf.mxu1  ;;  %8954 = vmatprep.subr.mxu0 %v11734_v13 }
0x12e7   : > { %11736 = vst [vmem:[#allocation61_spill] sm:$0xff] %v10396_v7  ;;  %v10402_v10 = vadd.f32 %v8940_v14, %v10373_v41  ;;  %8955 = vmatpush3.msra.mxu0 %v5513_v60 }
0x12e8   : > { %v5381_v0 = vpop.f32.mrf.mxu1  ;;  %8956 = vmatprep.subr.mxu0 %v11734_v13 }
0x12e9   : > { %11737 = vst [vmem:[#allocation62_spill] sm:$0xff] %v10402_v10  ;;  %v10408_v59 = vadd.f32 %v5381_v0, %v10373_v41  ;;  %8957 = vmatpush3.msra.mxu0 %v5512_v63 }
0x12ea   : > { %v8943_v39 = vpop.f32.mrf.mxu1  ;;  %8958 = vmatprep.subr.mxu0 %v11734_v13 }
0x12eb   : > { %11738 = vst [vmem:[#allocation63_spill] sm:$0xff] %v10408_v59  ;;  %v10413_v53 = vadd.f32 %v8943_v39, %v10373_v41  ;;  %8959 = vmatpush3.msra.mxu0 %v5511_v43 }
0x12ec   : > { %v5391_v60 = vpop.f32.mrf.mxu1  ;;  %8960 = vmatprep.subr.mxu0 %v11734_v13 }
0x12ed   : > { %11739 = vst [vmem:[#allocation64_spill] sm:$0xff] %v10413_v53  ;;  %v10418_v57 = vadd.f32 %v5391_v60, %v10373_v41  ;;  %8961 = vmatpush3.msra.mxu0 %v5510_v16 }
0x12ee   : > { %v8946_v52 = vpop.f32.mrf.mxu1  ;;  %8962 = vmatprep.subr.mxu0 %v11734_v13 }
0x12ef   : > { %11740 = vst [vmem:[#allocation65_spill] sm:$0xff] %v10418_v57  ;;  %v10422_v63 = vadd.f32 %v8946_v52, %v10373_v41  ;;  %8963 = vmatpush3.msra.mxu0 %v5509_v47 }
0x12f0   : > { %v5401_v14 = vpop.f32.mrf.mxu1  ;;  %8964 = vmatprep.subr.mxu0 %v11734_v13 }
0x12f1   : > { %11741 = vst [vmem:[#allocation66_spill] sm:$0xff] %v10422_v63  ;;  %v10426_v42 = vadd.f32 %v5401_v14, %v10373_v41  ;;  %8965 = vmatpush3.msra.mxu0 %v5508_v61  ;;  %v10437_v61 = vrot.slane %v9881_v5, %v9574_v21 }
0x12f2   : > { %v8949_v43 = vpop.f32.mrf.mxu1  ;;  %8966 = vmatprep.subr.mxu0 %v11734_v13 }
0x12f3   : > { %11742 = vst [vmem:[#allocation67_spill] sm:$0xff] %v10426_v42  ;;  %v10430_v0 = vadd.f32 %v8949_v43, %v10373_v41 }
0x12f4   : > { %v5411_v28 = vpop.f32.mrf.mxu1 }
0x12f5   : > { %v10433_v16 = vadd.f32 %v5411_v28, %v10373_v41 }
0x12f6   : > { %v9006_v39 = vpop.f32.mrf.mxu1 }
0x12f7   : > { %11743 = vst [vmem:[#allocation68_spill] sm:$0xff] %v10433_v16 }
0x12f8   : > { %v5938_v60 = vpop.f32.mrf.mxu1 }
0x12fa   : > { %v9009_v47 = vpop.f32.mrf.mxu1 }
0x12fc   : > { %v5948_v52 = vpop.f32.mrf.mxu1 }
0x12fe   : > { %v9012_v7 = vpop.f32.mrf.mxu1 }
0x12ff   : > { %v5964_v63 = vadd.f32 %v9012_v7, %v10437_v61  ;;  %v5949_v7 = vadd.f32 %v5948_v52, %v10437_v61  ;;  %v5939_v52 = vadd.f32 %v5938_v60, %v10437_v61 }
0x1300   : > { %v5958_v56 = vpop.f32.mrf.mxu1 }
0x1302   : > { %v9015_v59 = vpop.f32.mrf.mxu1 }
0x1303   : > { %v5974_v43 = vadd.f32 %v9015_v59, %v10437_v61  ;;  %v5959_v59 = vadd.f32 %v5958_v56, %v10437_v61 }
0x1304   : > { %v5968_v14 = vpop.f32.mrf.mxu1 }
0x1305   : > { %v5969_v41 = vadd.f32 %v5968_v14, %v10437_v61  ;;  %v6044_v16 = vmul.f32 %v5974_v43, %v10190_v17  ;;  %v6039_v14 = vmul.f32 %v5949_v7, %v10233_v51 }
0x1306   : > { %v9018_v10 = vpop.f32.mrf.mxu1 }
0x1307   : > { %v5984_v57 = vadd.f32 %v9018_v10, %v10437_v61  ;;  %v6043_v10 = vmul.f32 %v5969_v41, %v10196_v3 }
0x1308   : > { %v5978_v53 = vpop.f32.mrf.mxu1 }
0x1309   : > { %v6046_v28 = vmul.f32 %v5984_v57, %v10186_v9  ;;  %v5979_v42 = vadd.f32 %v5978_v53, %v10437_v61  ;;  %v5954_v57 = vadd.f32 %v9009_v47, %v10437_v61  ;;  %v6042_v53 = vmul.f32 %v5964_v63, %v10194_v18  ;;  %v10463_v63 = vpop.permute.xlu0 %4374  ;;  %v10466_v47 = vpop.permute.xlu1 %4678 }
0x130b   : > { %v6045_v5 = vmul.f32 %v5979_v42, %v10192_v38  ;;  %9035 = vmatpush3.msra.mxu1 %v6046_v28  ;;  %v6041_v42 = vmul.f32 %v5959_v59, %v10208_v58  ;;  %v6040_v56 = vmul.f32 %v5954_v57, %v10214_v6 }
0x130c   : > { %9036 = vmatprep.subr.mxu1 %v11734_v13 }
0x130d   : > { %9037 = vmatpush3.msra.mxu1 %v6045_v5  ;;  %v10469_v43 = vpop.permute.xlu0 %5429  ;;  %v10474_v5 = vpop.permute.xlu1 %5425 }
0x130e   : > { %9038 = vmatprep.subr.mxu1 %v11734_v13  ;;  %11744 = vst [vmem:[#allocation69_spill] sm:$0xff] %v10469_v43  ;;  %v5507_v41 = vmul.f32 %v10469_v43, %v10376_v50  ;;  %11745 = vst [vmem:[#allocation70_spill] sm:$0xff] %v10474_v5  ;;  %v5506_v59 = vmul.f32 %v10474_v5, %v10379_v45 }
0x130f   : > { %9039 = vmatpush3.msra.mxu1 %v6044_v16  ;;  %v5944_v16 = vadd.f32 %v9006_v39, %v10437_v61 }
0x1310   : > { %9040 = vmatprep.subr.mxu1 %v11734_v13  ;;  %8967 = vmatpush3.msra.mxu0 %v5507_v41 }
0x1311   : > { %9041 = vmatpush3.msra.mxu1 %v6043_v10  ;;  %v6038_v28 = vmul.f32 %v5944_v16, %v10469_v43  ;;  %v6037_v10 = vmul.f32 %v5939_v52, %v10474_v5  ;;  %8968 = vmatprep.subr.mxu0 %v11734_v13 }
0x1312   : > { %9042 = vmatprep.subr.mxu1 %v11734_v13  ;;  %8969 = vmatpush3.msra.mxu0 %v5506_v59  ;;  %v5466_v59 = vrot.slane %v10048_v35, %v9651_v30 }
0x1313   : > { %9043 = vmatpush3.msra.mxu1 %v6042_v53  ;;  %8973 = vmatprep.subr.mxu0 %v11734_v13 }
0x1314   : > { %9044 = vmatprep.subr.mxu1 %v11734_v13 }
0x1315   : > { %9045 = vmatpush3.msra.mxu1 %v6041_v42 }
0x1316   : > { %9046 = vmatprep.subr.mxu1 %v11734_v13 }
0x1317   : > { %9047 = vmatpush3.msra.mxu1 %v6040_v56 }
0x1318   : > { %9048 = vmatprep.subr.mxu1 %v11734_v13 }
0x1319   : > { %9049 = vmatpush3.msra.mxu1 %v6039_v14 }
0x131a   : > { %9050 = vmatprep.subr.mxu1 %v11734_v13 }
0x131b   : > { %9051 = vmatpush3.msra.mxu1 %v6038_v28 }
0x131c   : > { %9052 = vmatprep.subr.mxu1 %v11734_v13 }
0x131d   : > { %9053 = vmatpush3.msra.mxu1 %v6037_v10 }
0x138a   : > { %v8911_v50 = vpop.f32.mrf.mxu0 }
0x138b   : > { %9350 = vrcp.f32 %v8911_v50 }
0x138c   : > { %v4186_v39 = vpop.f32.mrf.mxu0 }
0x138d   : > { %9352 = vrcp.f32 %v4186_v39 }
0x1398   : > { %v9351_v60 = vpop.eup %9350 }
0x1399   : > { %v4198_v57 = vmul.f32 %v9351_v60, %v10250_v37 }
0x139a   : > { %v9353_v45 = vpop.eup %9352 }
0x139b   : > { %v4197_v53 = vmul.f32 %v9353_v45, %v10248_v2  ;;  %v10485_v7 = vrot.slane %v4198_v57, %v9574_v21  ;;  %v10521_v28 = vrot.slane %v4198_v57, %v9651_v30  ;;  %v10527_v10 = vrot.slane %v4198_v57, %v9727_v48 }
0x139c   : > { %v10531_v50 = vrot.slane %v4198_v57, %v9796_v11  ;;  %v10535_v39 = vrot.slane %v4198_v57, %v9571_v20  ;;  %v10539_v35 = vrot.slane %v4198_v57, %v9644_v25  ;;  %v10543_v60 = vrot.slane %v4198_v57, %v9718_v40 }
0x139d   : > { %4937 = vbcast.lane.b32.xlu0 %v10485_v7, 256  ;;  %v10489_v42 = vrot.slane %v4197_v53, %v9651_v30  ;;  %v10493_v56 = vrot.slane %v4197_v53, %v9574_v21  ;;  %v10497_v37 = vrot.slane %v4197_v53, %v9727_v48  ;;  %v10501_v2 = vrot.slane %v4197_v53, %v9796_v11  ;;  %v11766_v11 = vld [vmem:[#allocation35_spill] sm:$0xff] }
0x139e   : > { %v10505_v14 = vrot.slane %v4197_v53, %v9644_v25  ;;  %v10509_v16 = vrot.slane %v4197_v53, %v9571_v20  ;;  %v10513_v52 = vrot.slane %v4197_v53, %v9718_v40  ;;  %v10517_v41 = vrot.slane %v4197_v53, %v9793_v1  ;;  %v11765_v20 = vld [vmem:[#allocation19_spill] sm:$0xff] }
0x139f   : > { %4860 = vbcast.lane.b32.xlu1 %v10489_v42, 256  ;;  %v10547_v45 = vrot.slane %v4198_v57, %v9793_v1  ;;  %v4382_v25 = vsub.f32 %v10154_v44, %v10227_v49  ;;  %v11755_v57 = vld [vmem:[#allocation29_spill] sm:$0xff] }
0x13a0   : > { %v4386_v53 = vsub.f32 %v11755_v57, %v10227_v49 }
0x13a1   : > { %4849 = vbcast.lane.b32.xlu0 %v10493_v56, 256 }
0x13a3   : > { %4871 = vbcast.lane.b32.xlu1 %v10497_v37, 256 }
0x13a5   : > { %4882 = vbcast.lane.b32.xlu0 %v10501_v2, 256 }
0x13a7   : > { %4904 = vbcast.lane.b32.xlu1 %v10505_v14, 256 }
0x13a9   : > { %4893 = vbcast.lane.b32.xlu0 %v10509_v16, 256 }
0x13ab   : > { %4915 = vbcast.lane.b32.xlu1 %v10513_v52, 256 }
0x13ad   : > { %4926 = vbcast.lane.b32.xlu0 %v10517_v41, 256 }
0x13af   : > { %4948 = vbcast.lane.b32.xlu1 %v10521_v28, 256 }
0x13b1   : > { %5504 = vbcast.lane.b32.xlu0 %v5466_v59, 328 }
0x13b3   : > { %4959 = vbcast.lane.b32.xlu1 %v10527_v10, 256 }
0x13b5   : > { %4970 = vbcast.lane.b32.xlu0 %v10531_v50, 256 }
0x13b7   : > { %5500 = vbcast.lane.b32.xlu1 %v5466_v59, 320 }
0x13b9   : > { %4981 = vbcast.lane.b32.xlu0 %v10535_v39, 256 }
0x13bb   : > { %4992 = vbcast.lane.b32.xlu1 %v10539_v35, 256 }
0x13bd   : > { %5496 = vbcast.lane.b32.xlu0 %v5466_v59, 312 }
0x13bf   : > { %5003 = vbcast.lane.b32.xlu1 %v10543_v60, 256 }
0x13c1   : > { %5014 = vbcast.lane.b32.xlu0 %v10547_v45, 256 }
0x13c3   : > { %5492 = vbcast.lane.b32.xlu1 %v5466_v59, 304 }
0x13c5   : > { %5488 = vbcast.lane.b32.xlu0 %v5466_v59, 296 }
0x13c7   : > { %5484 = vbcast.lane.b32.xlu1 %v5466_v59, 288 }
0x13c9   : > { %5480 = vbcast.lane.b32.xlu0 %v5466_v59, 280 }
0x13cb   : > { %5476 = vbcast.lane.b32.xlu1 %v5466_v59, 272 }
0x13cd   : > { %5472 = vbcast.lane.b32.xlu0 %v5466_v59, 264 }
0x13cf   : > { %5468 = vbcast.lane.b32.xlu1 %v5466_v59, 256  ;;  %v11756_v59 = vld [vmem:[#allocation17_spill] sm:$0xff] }
0x13d1   : > { %4213 = vbcast.lane.b32.xlu0 %v9999_v19, 264  ;;  %v4414_v19 = vand.u32 2147483647, %v4382_v25 }
0x13d3   : > { %4224 = vbcast.lane.b32.xlu1 %v9988_v62, 264  ;;  %v4380_v62 = vsub.f32 %v10156_v12, %v10227_v49 }
0x13d5   : > { %4517 = vbcast.lane.b32.xlu0 %v9995_v15, 264  ;;  %v11746_v15 = vld [vmem:[#allocation13_spill] sm:$0xff] }
0x13d7   : > { %4528 = vbcast.lane.b32.xlu1 %v10003_v24, 264  ;;  %v11747_v24 = vld [vmem:[#allocation55_spill] sm:$0xff] }
0x13d9   : > { %4235 = vbcast.lane.b32.xlu0 %v10007_v8, 264  ;;  %v11748_v8 = vld [vmem:[#allocation26_spill] sm:$0xff] }
0x13db   : > { %4539 = vbcast.lane.b32.xlu1 %v10011_v27, 264  ;;  %v4684_v27 = vsub.f32 %v11748_v8, %v11747_v24  ;;  %v11758_v8 = vld [vmem:[#allocation32_spill] sm:$0xff] }
0x13dd   : > { %4246 = vbcast.lane.b32.xlu0 %v10015_v4, 264  ;;  %v11749_v4 = vld [vmem:[#allocation14_spill] sm:$0xff] }
0x13df   : > { %4550 = vbcast.lane.b32.xlu1 %v10019_v29, 264  ;;  %v4412_v29 = vand.u32 2147483647, %v4380_v62  ;;  %v11757_v62 = vld [vmem:[#allocation31_spill] sm:$0xff] }
0x13e1   : > { %4257 = vbcast.lane.b32.xlu0 %v10023_v26, 264  ;;  %v11750_v26 = vld [vmem:[#allocation27_spill] sm:$0xff] }
0x13e3   : > { %4561 = vbcast.lane.b32.xlu1 %v10027_v31, 264  ;;  %v4384_v31 = vsub.f32 %v11750_v26, %v10227_v49 }
0x13e5   : > { %4268 = vbcast.lane.b32.xlu0 %v10031_v22, 264  ;;  %v11751_v22 = vld [vmem:[#allocation28_spill] sm:$0xff]  ;;  %v4416_v44 = vand.u32 2147483647, %v4384_v31 }
0x13e7   : > { %4572 = vbcast.lane.b32.xlu1 %v10035_v33, 264  ;;  %v4686_v33 = vsub.f32 %v11751_v22, %v11747_v24 }
0x13e9   : > { %4279 = vbcast.lane.b32.xlu0 %v10039_v32, 264  ;;  %v11752_v32 = vld [vmem:[#allocation15_spill] sm:$0xff]  ;;  %v4718_v12 = vand.u32 2147483647, %v4686_v33  ;;  %v11761_v33 = vld [vmem:[#allocation33_spill] sm:$0xff] }
0x13eb   : > { %4583 = vbcast.lane.b32.xlu1 %v10043_v34, 264  ;;  %v11753_v34 = vld [vmem:[#allocation30_spill] sm:$0xff] }
0x13ed   : > { %4290 = vbcast.lane.b32.xlu0 %v10052_v36, 264  ;;  %v4688_v36 = vsub.f32 %v11753_v34, %v11747_v24  ;;  %v11762_v34 = vld [vmem:[#allocation36_spill] sm:$0xff] }
0x13ef   : > { %4594 = vbcast.lane.b32.xlu1 %v10057_v23, 264  ;;  %v4446_v23 = vsub.f32 1.0, %v4414_v19  ;;  %v4720_v25 = vand.u32 2147483647, %v4688_v36  ;;  %v4694_v36 = vsub.f32 %v11762_v34, %v11747_v24  ;;  %v11767_v34 = vld [vmem:[#allocation37_spill] sm:$0xff] }
0x13f0   : > { %v4394_v40 = vsub.f32 %v11767_v34, %v10227_v49 }
0x13f1   : > { %4301 = vbcast.lane.b32.xlu0 %v10075_v54, 264  ;;  %v4716_v54 = vand.u32 2147483647, %v4684_v27  ;;  %v4478_v26 = vmax.f32 %v4446_v23, 0.0  ;;  %v11759_v27 = vld [vmem:[#allocation34_spill] sm:$0xff]  ;;  %v11764_v23 = vld [vmem:[#allocation48_spill] sm:$0xff] }
0x13f2   : > { %v4692_v22 = vsub.f32 %v11759_v27, %v11747_v24  ;;  %v4752_v27 = vsub.f32 1.0, %v4720_v25 }
0x13f3   : > { %4312 = vbcast.lane.b32.xlu1 %v10079_v46, 264  ;;  %v11754_v46 = vld [vmem:[#allocation16_spill] sm:$0xff]  ;;  %v4748_v19 = vsub.f32 1.0, %v4716_v54  ;;  %v4700_v54 = vsub.f32 %v11764_v23, %v11747_v24  ;;  %v4726_v23 = vand.u32 2147483647, %v4694_v36 }
0x13f4   : > { %v4724_v1 = vand.u32 2147483647, %v4692_v22  ;;  %v4784_v22 = vmax.f32 %v4752_v27, 0.0 }
0x13f5   : > { %4605 = vbcast.lane.b32.xlu0 %v10083_v55, 264  ;;  %v4444_v55 = vsub.f32 1.0, %v4412_v29  ;;  %v11760_v29 = vld [vmem:[#allocation18_spill] sm:$0xff]  ;;  %v4780_v21 = vmax.f32 %v4748_v19, 0.0  ;;  %v11771_v19 = vld [vmem:[#allocation21_spill] sm:$0xff] }
0x13f6   : > { %v4756_v6 = vsub.f32 1.0, %v4724_v1 }
0x13f7   : > { %4616 = vbcast.lane.b32.xlu1 %v11746_v15, 264  ;;  %v4388_v15 = vsub.f32 %v11757_v62, %v10227_v49  ;;  %v4476_v31 = vmax.f32 %v4444_v55, 0.0  ;;  %v4750_v62 = vsub.f32 1.0, %v4718_v12 }
0x13f9   : > { %4323 = vbcast.lane.b32.xlu0 %v11749_v4, 264  ;;  %v4690_v4 = vsub.f32 %v11758_v8, %v11747_v24  ;;  %v4418_v8 = vand.u32 2147483647, %v4386_v53  ;;  %v11769_v53 = vld [vmem:[#allocation20_spill] sm:$0xff] }
0x13fb   : > { %4627 = vbcast.lane.b32.xlu1 %v11752_v32, 264  ;;  %v4390_v32 = vsub.f32 %v11761_v33, %v10227_v49  ;;  %v4722_v55 = vand.u32 2147483647, %v4690_v4  ;;  %v4392_v33 = vsub.f32 %v11766_v11, %v10227_v49  ;;  %v4782_v4 = vmax.f32 %v4750_v62, 0.0  ;;  %v11773_v62 = vld [vmem:[#allocation47_spill] sm:$0xff] }
0x13fc   : > { %v4450_v5 = vsub.f32 1.0, %v4418_v8  ;;  %v4732_v11 = vand.u32 2147483647, %v4700_v54  ;;  %v4702_v8 = vsub.f32 %v11773_v62, %v11747_v24 }
0x13fd   : > { %4334 = vbcast.lane.b32.xlu0 %v11754_v46, 264  ;;  %v11763_v46 = vld [vmem:[#allocation38_spill] sm:$0xff]  ;;  %v4754_v34 = vsub.f32 1.0, %v4722_v55  ;;  %v4424_v51 = vand.u32 2147483647, %v4392_v33  ;;  %v4814_v27 = vmul.f32 %v4782_v4, %v4478_v26  ;;  %v11776_v26 = vld [vmem:[#allocation49_spill] sm:$0xff] }
0x13fe   : > { %v4696_v57 = vsub.f32 %v11763_v46, %v11747_v24  ;;  %v4422_v46 = vand.u32 2147483647, %v4390_v32  ;;  %v4812_v32 = vmul.f32 %v4780_v21, %v4476_v31  ;;  %v4764_v54 = vsub.f32 1.0, %v4732_v11 }
0x13ff   : > { %4638 = vbcast.lane.b32.xlu1 %v11756_v59, 264  ;;  %v4448_v59 = vsub.f32 1.0, %v4416_v44  ;;  %v11768_v44 = vld [vmem:[#allocation46_spill] sm:$0xff]  ;;  %v4786_v55 = vmax.f32 %v4754_v34, 0.0  ;;  %v4456_v1 = vsub.f32 1.0, %v4424_v51  ;;  %v11777_v51 = vld [vmem:[#allocation52_spill] sm:$0xff] }
0x1400   : > { %v4396_v12 = vsub.f32 %v11768_v44, %v10227_v49  ;;  %v4728_v48 = vand.u32 2147483647, %v4696_v57  ;;  %v4426_v44 = vand.u32 2147483647, %v4394_v40  ;;  %v4454_v36 = vsub.f32 1.0, %v4422_v46  ;;  %v11775_v40 = vld [vmem:[#allocation45_spill] sm:$0xff] }
0x1401   : > { %4345 = vbcast.lane.b32.xlu0 %v11760_v29, 264  ;;  %v4420_v29 = vand.u32 2147483647, %v4388_v15  ;;  %v4480_v15 = vmax.f32 %v4448_v59, 0.0  ;;  %v4758_v57 = vsub.f32 1.0, %v4726_v23  ;;  %v4482_v59 = vmax.f32 %v4450_v5, 0.0 }
0x1402   : > { %v4428_v58 = vand.u32 2147483647, %v4396_v12  ;;  %v4760_v18 = vsub.f32 1.0, %v4728_v48  ;;  %v4398_v33 = vsub.f32 %v11775_v40, %v10227_v49  ;;  %v4788_v12 = vmax.f32 %v4756_v6, 0.0 }
0x1403   : > { %4649 = vbcast.lane.b32.xlu1 %v11765_v20, 264  ;;  %v11770_v20 = vld [vmem:[#allocation40_spill] sm:$0xff]  ;;  %v4452_v43 = vsub.f32 1.0, %v4420_v29  ;;  %v4458_v21 = vsub.f32 1.0, %v4426_v44  ;;  %v4816_v48 = vmul.f32 %v4784_v22, %v4480_v15  ;;  %v4486_v5 = vmax.f32 %v4454_v36, 0.0  ;;  %v11779_v36 = vld [vmem:[#allocation54_spill] sm:$0xff] }
0x1404   : > { %v4698_v25 = vsub.f32 %v11770_v20, %v11747_v24  ;;  %v4460_v31 = vsub.f32 1.0, %v4428_v58  ;;  %v4790_v46 = vmax.f32 %v4758_v57, 0.0  ;;  %v4792_v23 = vmax.f32 %v4760_v18, 0.0 }
0x1405   : > { %4356 = vbcast.lane.b32.xlu0 %v11769_v53, 264  ;;  %v11772_v53 = vld [vmem:[#allocation22_spill] sm:$0xff]  ;;  %v4484_v29 = vmax.f32 %v4452_v43, 0.0  ;;  %v4734_v11 = vand.u32 2147483647, %v4702_v8  ;;  %v4400_v43 = vsub.f32 %v11776_v26, %v10227_v49  ;;  %v4704_v4 = vsub.f32 %v11777_v51, %v11747_v24 }
0x1406   : > { %v4730_v20 = vand.u32 2147483647, %v4698_v25  ;;  %v4488_v34 = vmax.f32 %v4456_v1, 0.0  ;;  %v4430_v58 = vand.u32 2147483647, %v4398_v33  ;;  %v10628_v22 = vmul.f32 %v4786_v55, %v4482_v59 }
0x1407   : > { %4660 = vbcast.lane.b32.xlu1 %v11771_v19, 264  ;;  %v11774_v19 = vld [vmem:[#allocation23_spill] sm:$0xff]  ;;  %v4490_v18 = vmax.f32 %v4458_v21, 0.0  ;;  %v4492_v44 = vmax.f32 %v4460_v31, 0.0  ;;  %v4706_v57 = vsub.f32 %v11779_v36, %v11747_v24  ;;  %v10633_v62 = vmul.f32 %v4788_v12, %v4484_v29 }
0x1408   : > { %v4762_v25 = vsub.f32 1.0, %v4730_v20  ;;  %v4766_v1 = vsub.f32 1.0, %v4734_v11  ;;  %v4432_v40 = vand.u32 2147483647, %v4400_v43  ;;  %v4736_v59 = vand.u32 2147483647, %v4704_v4 }
0x1409   : > { %4367 = vbcast.lane.b32.xlu0 %v11772_v53, 264  ;;  %v4796_v53 = vmax.f32 %v4764_v54, 0.0  ;;  %v10635_v54 = vmul.f32 %v4790_v46, %v4486_v5  ;;  %v4462_v21 = vsub.f32 1.0, %v4430_v58  ;;  %v4714_v29 = vsub.f32 %v10466_v47, %v11747_v24 }
0x140a   : > { %v4794_v8 = vmax.f32 %v4762_v25, 0.0  ;;  %v4798_v25 = vmax.f32 %v4766_v1, 0.0  ;;  %v4464_v11 = vsub.f32 1.0, %v4432_v40 }
0x140b   : > { %4671 = vbcast.lane.b32.xlu1 %v11774_v19, 264  ;;  %v10637_v19 = vmul.f32 %v4792_v23, %v4488_v34  ;;  %v4828_v55 = vmul.f32 %v4796_v53, %v4492_v44  ;;  %v4768_v53 = vsub.f32 1.0, %v4736_v59 }
0x140d   : > { %4853 = vbcast.lane.b32.xlu0 %v10493_v56, 264  ;;  %v11778_v56 = vld [vmem:[#allocation51_spill] sm:$0xff]  ;;  %v4800_v44 = vmax.f32 %v4768_v53, 0.0  ;;  %v11781_v53 = vld [vmem:[#allocation25_spill] sm:$0xff] }
0x140e   : > { %v4402_v15 = vsub.f32 %v11778_v56, %v10227_v49 }
0x140f   : > { %4864 = vbcast.lane.b32.xlu1 %v10489_v42, 264  ;;  %v4938_v6 = vpop.permute.xlu0 %4937 }
0x1410   : > { %v4434_v31 = vand.u32 2147483647, %v4402_v15 }
0x1411   : > { %v4861_v20 = vpop.permute.xlu1 %4860  ;;  %4875 = vbcast.lane.b32.xlu0 %v10497_v37, 264  ;;  %v4738_v37 = vand.u32 2147483647, %v4706_v57 }
0x1412   : > { %v5022_v42 = vmul.f32 %v4861_v20, %v4814_v27  ;;  %v10642_v27 = vmul.f32 %v4938_v6, %v4828_v55  ;;  %v4466_v6 = vsub.f32 1.0, %v4434_v31  ;;  %v10658_v55 = vmul.f32 %v4794_v8, %v4490_v18 }
0x1413   : > { %4886 = vbcast.lane.b32.xlu1 %v10501_v2, 264  ;;  %v4850_v33 = vpop.permute.xlu0 %4849 }
0x1414   : > { %v5720_v26 = vrot.slane %v5022_v42, 4  ;;  %v5020_v51 = vmul.f32 %v4850_v33, %v4812_v32  ;;  %v5081_v5 = vsel %vm5073_vm15, %v5022_v42, 0.0  ;;  %v4410_v32 = vsub.f32 %v10463_v63, %v10227_v49 }
0x1415   : > { %v4872_v12 = vpop.permute.xlu1 %4871  ;;  %4897 = vbcast.lane.b32.xlu0 %v10509_v16, 264  ;;  %v5130_v34 = vsel %vm5073_vm15, %v10642_v27, 0.0  ;;  %v4494_v49 = vmax.f32 %v4462_v21, 0.0  ;;  %v4770_v63 = vsub.f32 1.0, %v4738_v37  ;;  %v4496_v33 = vmax.f32 %v4464_v11, 0.0 }
0x1416   : > { %v5074_v46 = vsel %vm5073_vm15, %v5020_v51, 0.0  ;;  %v5719_v2 = vrot.slane %v5020_v51, 4  ;;  %v5024_v23 = vmul.f32 %v4872_v12, %v4816_v48  ;;  %v5758_v24 = vsel %vm5073_vm15, %v5720_v26, 0.0  ;;  %v11780_v26 = vld [vmem:[#allocation24_spill] sm:$0xff] }
0x1417   : > { %4908 = vbcast.lane.b32.xlu1 %v10505_v14, 264  ;;  %v4883_v47 = vpop.permute.xlu0 %4882  ;;  %v5075_v43 = vrot.slane %v5074_v46, 4  ;;  %v5082_v48 = vrot.slane %v5081_v5, 4  ;;  %v4746_v14 = vand.u32 2147483647, %v4714_v29  ;;  %v5759_v36 = vrot.slane %v5758_v24, 4 }
0x1418   : > { %v5751_v16 = vsel %vm5073_vm15, %v5719_v2, 0.0  ;;  %v5721_v4 = vrot.slane %v5024_v23, 4  ;;  %v5088_v58 = vsel %vm5073_vm15, %v5024_v23, 0.0  ;;  %v4442_v1 = vand.u32 2147483647, %v4410_v32 }
0x1419   : > { %v4905_v56 = vpop.permute.xlu1 %4904  ;;  %4919 = vbcast.lane.b32.xlu0 %v10513_v52, 264  ;;  %v5752_v15 = vrot.slane %v5751_v16, 4  ;;  %v5076_v57 = vadd.f32 %v5075_v43, %v5074_v46  ;;  %v5131_v40 = vrot.slane %v5130_v34, 4  ;;  %v5089_v59 = vrot.slane %v5088_v58, 4 }
0x141a   : > { %v5765_v20 = vsel %vm5073_vm15, %v5721_v4, 0.0  ;;  %v4498_v31 = vmax.f32 %v4466_v6, 0.0  ;;  %v5083_v52 = vadd.f32 %v5082_v48, %v5081_v5  ;;  %v10661_v51 = vmul.f32 %v4798_v25, %v4494_v49 }
0x141b   : > { %4930 = vbcast.lane.b32.xlu1 %v10517_v41, 264  ;;  %v4894_v42 = vpop.permute.xlu0 %4893  ;;  %v4802_v37 = vmax.f32 %v4770_v63, 0.0  ;;  %v4778_v29 = vsub.f32 1.0, %v4746_v14  ;;  %v5753_v12 = vadd.f32 %v5752_v15, %v5751_v16  ;;  %v5766_v46 = vrot.slane %v5765_v20, 4 }
0x141c   : > { %v5760_v2 = vadd.f32 %v5759_v36, %v5758_v24  ;;  %v5077_v41 = vrot.slane %v5076_v57, 2  ;;  %v5026_v23 = vmul.f32 %v4883_v47, %v10628_v22  ;;  %v10667_v8 = vmul.f32 %v4800_v44, %v4496_v33 }
0x141d   : > { %v4916_v21 = vpop.permute.xlu1 %4915  ;;  %4378 = vbcast.lane.b32.xlu0 %v11780_v26, 264  ;;  %v4474_v5 = vsub.f32 1.0, %v4442_v1  ;;  %v5132_v11 = vadd.f32 %v5131_v40, %v5130_v34  ;;  %v5727_v32 = vrot.slane %v10642_v27, 4  ;;  %v5090_v25 = vadd.f32 %v5089_v59, %v5088_v58 }
0x141e   : > { %v5084_v43 = vrot.slane %v5083_v52, 2  ;;  %v5095_v4 = vsel %vm5073_vm15, %v5026_v23, 0.0  ;;  %v5722_v16 = vrot.slane %v5026_v23, 4  ;;  %v5030_v24 = vmul.f32 %v4905_v56, %v10635_v54 }
0x141f   : > { %4682 = vbcast.lane.b32.xlu1 %v11781_v53, 264  ;;  %v10665_v18 = vpop.permute.xlu0 %4926  ;;  %v4810_v22 = vmax.f32 %v4778_v29, 0.0  ;;  %v5754_v47 = vrot.slane %v5753_v12, 2  ;;  %v5767_v48 = vadd.f32 %v5766_v46, %v5765_v20  ;;  %v10675_v49 = vmul.f32 %v4802_v37, %v4498_v31 }
0x1420   : > { %v5761_v63 = vrot.slane %v5760_v2, 2  ;;  %v5078_v34 = vadd.f32 %v5077_v41, %v5076_v57  ;;  %v5096_v14 = vrot.slane %v5095_v4, 4  ;;  %v5724_v27 = vrot.slane %v5030_v24, 4 }
0x1421   : > { %v10672_v6 = vpop.permute.xlu1 %4948  ;;  %4941 = vbcast.lane.b32.xlu0 %v10485_v7, 264  ;;  %v4506_v15 = vmax.f32 %v4474_v5, 0.0  ;;  %v10681_v54 = vsel %vm5073_vm15, %v5727_v32, 0.0  ;;  %v5091_v56 = vrot.slane %v5090_v25, 2  ;;  %v5772_v7 = vsel %vm5073_vm15, %v5722_v16, 0.0 }
0x1422   : > { %v5133_v44 = vrot.slane %v5132_v11, 2  ;;  %v5085_v36 = vadd.f32 %v5084_v43, %v5083_v52  ;;  %v5109_v20 = vsel %vm5073_vm15, %v5030_v24, 0.0  ;;  %v5786_v1 = vsel %vm5073_vm15, %v5724_v27, 0.0 }
0x1423   : > { %4952 = vbcast.lane.b32.xlu1 %v10521_v28, 264  ;;  %v10678_v58 = vpop.permute.xlu0 %5504  ;;  %v5755_v28 = vadd.f32 %v5754_v47, %v5753_v12  ;;  %v5768_v40 = vrot.slane %v5767_v48, 2  ;;  %v5097_v59 = vadd.f32 %v5096_v14, %v5095_v4  ;;  %v10689_v33 = vmul.f32 %v4810_v22, %v4506_v15 }
0x1424   : > { %v5762_v31 = vadd.f32 %v5761_v63, %v5760_v2  ;;  %v5079_v26 = vrot.slane %v5078_v34, 1  ;;  %v5773_v37 = vrot.slane %v5772_v7, 4  ;;  %v5028_v29 = vmul.f32 %v4894_v42, %v10633_v62 }
0x1425   : > { %v10686_v57 = vpop.permute.xlu1 %4959  ;;  %4963 = vbcast.lane.b32.xlu0 %v10527_v10, 264  ;;  %v5808_v46 = vrot.slane %v10681_v54, 4  ;;  %v5092_v41 = vadd.f32 %v5091_v56, %v5090_v25  ;;  %v5110_v23 = vrot.slane %v5109_v20, 4  ;;  %v5787_v53 = vrot.slane %v5786_v1, 4 }
0x1426   : > { %v10696_v10 = vadd.f32 %v5133_v44, %v5132_v11  ;;  %v5086_v12 = vrot.slane %v5085_v36, 1  ;;  %v5102_v5 = vsel %vm5073_vm15, %v5028_v29, 0.0  ;;  %v5032_v2 = vmul.f32 %v4916_v21, %v10637_v19 }
0x1427   : > { %4974 = vbcast.lane.b32.xlu1 %v10531_v50, 264  ;;  %v10693_v52 = vpop.permute.xlu0 %4970  ;;  %v5756_v62 = vrot.slane %v5755_v28, 1  ;;  %v5769_v50 = vadd.f32 %v5768_v40, %v5767_v48  ;;  %v5098_v42 = vrot.slane %v5097_v59, 2  ;;  %v5723_v43 = vrot.slane %v5028_v29, 4 }
0x1428   : > { %v5763_v4 = vrot.slane %v5762_v31, 1  ;;  %v5080_v16 = vadd.f32 %v5079_v26, %v5078_v34  ;;  %v5774_v25 = vadd.f32 %v5773_v37, %v5772_v7  ;;  %v5103_v24 = vrot.slane %v5102_v5, 4 }
0x1429   : > { %v10700_v32 = vpop.permute.xlu1 %5500  ;;  %4985 = vbcast.lane.b32.xlu0 %v10535_v39, 264  ;;  %v5093_v22 = vrot.slane %v5092_v41, 1  ;;  %v5111_v47 = vadd.f32 %v5110_v23, %v5109_v20  ;;  %v5788_v63 = vadd.f32 %v5787_v53, %v5786_v1  ;;  %v5779_v19 = vsel %vm5073_vm15, %v5723_v43, 0.0 }
0x142a   : > { %v5780_v21 = vrot.slane %v5779_v19, 4  ;;  %v5116_v39 = vsel %vm5073_vm15, %v5032_v2, 0.0  ;;  %v5725_v14 = vrot.slane %v5032_v2, 4  ;;  %v5034_v48 = vmul.f32 %v10665_v18, %v10658_v55 }
0x142b   : > { %4996 = vbcast.lane.b32.xlu1 %v10539_v35, 264  ;;  %v10704_v11 = vpop.permute.xlu0 %4981  ;;  %v5087_v34 = vadd.f32 %v5086_v12, %v5085_v36  ;;  %v5757_v35 = vadd.f32 %v5756_v62, %v5755_v28  ;;  %v5770_v15 = vrot.slane %v5769_v50, 1  ;;  %v5099_v56 = vadd.f32 %v5098_v42, %v5097_v59 }
0x142c   : > { %v5135_v7 = vrot.slane %v10696_v10, 1  ;;  %v5764_v44 = vadd.f32 %v5763_v4, %v5762_v31  ;;  %v5775_v20 = vrot.slane %v5774_v25, 2  ;;  %v5104_v1 = vadd.f32 %v5103_v24, %v5102_v5 }
0x142d   : > { %v10710_v27 = vpop.permute.xlu1 %4992  ;;  %5007 = vbcast.lane.b32.xlu0 %v10543_v60, 264  ;;  %v5534_v26 = vsel %vm3919_vm6, %v5087_v34, %v5080_v16  ;;  %v5112_v55 = vrot.slane %v5111_v47, 2  ;;  %v5789_v18 = vrot.slane %v5788_v63, 2  ;;  %v5117_v37 = vrot.slane %v5116_v39, 4 }
0x142e   : > { %v5094_v29 = vadd.f32 %v5093_v22, %v5092_v41  ;;  %v5781_v60 = vadd.f32 %v5780_v21, %v5779_v19  ;;  %v5793_v36 = vsel %vm5073_vm15, %v5725_v14, 0.0  ;;  %v5726_v28 = vrot.slane %v5034_v48, 4 }
0x142f   : > { %5018 = vbcast.lane.b32.xlu1 %v10547_v45, 264  ;;  %v10715_v40 = vpop.permute.xlu0 %5496  ;;  %v6065_v31 = vsel %vm3919_vm6, %v5764_v44, %v5757_v35  ;;  %v5771_v23 = vadd.f32 %v5770_v15, %v5769_v50  ;;  %v5100_v53 = vrot.slane %v5099_v56, 1  ;;  %v5123_v45 = vsel %vm5073_vm15, %v5034_v48, 0.0 }
0x1430   : > { %v5776_v12 = vadd.f32 %v5775_v20, %v5774_v25  ;;  %v5105_v5 = vrot.slane %v5104_v1, 2  ;;  %v5800_v2 = vsel %vm5073_vm15, %v5726_v28, 0.0  ;;  %v5038_v62 = vmul.f32 %v10672_v6, %v10661_v51 }
0x1431   : > { %v10719_v59 = vpop.permute.xlu1 %5003  ;;  %v5113_v42 = vadd.f32 %v5112_v55, %v5111_v47  ;;  %v5790_v43 = vadd.f32 %v5789_v18, %v5788_v63  ;;  %v5118_v4 = vadd.f32 %v5117_v37, %v5116_v39  ;;  %v5794_v16 = vrot.slane %v5793_v36, 4 }
0x1432   : > { %v10729_v24 = vadd.f32 %v5808_v46, %v10681_v54  ;;  %v5782_v50 = vrot.slane %v5781_v60, 2  ;;  %v5124_v22 = vrot.slane %v5123_v45, 4  ;;  %v5137_v19 = vsel %vm5073_vm15, %v5038_v62, 0.0  ;;  %v10741_v46 = vpop.f32.mrf.mxu1 }
0x1433   : > { %v10726_v41 = vpop.permute.xlu0 %5014  ;;  %v10735_v21 = vadd.f32 %v5135_v7, %v10696_v10  ;;  %v5535_v51 = vsel %vm3921_vm8, %v5094_v29, %v5534_v26  ;;  %v5101_v6 = vadd.f32 %v5100_v53, %v5099_v56  ;;  %v5801_v14 = vrot.slane %v5800_v2, 4 }
0x1434   : > { %v6066_v47 = vsel %vm3921_vm8, %v5771_v23, %v6065_v31  ;;  %v5777_v63 = vrot.slane %v5776_v12, 1  ;;  %v5106_v39 = vadd.f32 %v5105_v5, %v5104_v1  ;;  %v5138_v48 = vrot.slane %v5137_v19, 4  ;;  %v10756_v23 = vpop.f32.mrf.mxu1 }
0x1435   : > { %v10732_v25 = vpop.permute.xlu1 %5492  ;;  %v5114_v34 = vrot.slane %v5113_v42, 1  ;;  %v5791_v35 = vrot.slane %v5790_v43, 1  ;;  %v5119_v15 = vrot.slane %v5118_v4, 2  ;;  %v5795_v44 = vadd.f32 %v5794_v16, %v5793_v36 }
0x1436   : > { %v5783_v20 = vadd.f32 %v5782_v50, %v5781_v60  ;;  %v5125_v10 = vadd.f32 %v5124_v22, %v5123_v45  ;;  %v5139_v7 = vadd.f32 %v5138_v48, %v5137_v19  ;;  %v10745_v56 = vmul.f32 %v10686_v57, %v10667_v8 }
0x1437   : > { %v10739_v54 = vpop.permute.xlu0 %5488  ;;  %v5536_v1 = vsel %vm3923_vm7, %v5101_v6, %v5535_v51  ;;  %v5802_v55 = vadd.f32 %v5801_v14, %v5800_v2  ;;  %v5728_v18 = vrot.slane %v5038_v62, 4  ;;  %v5042_v37 = vmul.f32 %v10693_v52, %v10675_v49 }
0x1438   : > { %v5778_v29 = vadd.f32 %v5777_v63, %v5776_v12  ;;  %v5107_v28 = vrot.slane %v5106_v39, 1  ;;  %v5140_v31 = vrot.slane %v5139_v7, 2  ;;  %v5144_v60 = vsel %vm5073_vm15, %v10745_v56, 0.0 }
0x1439   : > { %v10747_v26 = vpop.permute.xlu1 %5484  ;;  %v5120_v8 = vadd.f32 %v5119_v15, %v5118_v4  ;;  %v5796_v57 = vrot.slane %v5795_v44, 2  ;;  %v5145_v53 = vrot.slane %v5144_v60, 4  ;;  %v5151_v45 = vsel %vm5073_vm15, %v5042_v37, 0.0 }
0x143a   : > { %11782 = vst [vmem:[#allocation13_spill] sm:$0xff] %v10747_v26  ;;  %v10759_v5 = vadd.f32 %v5114_v34, %v5113_v42  ;;  %v5784_v2 = vrot.slane %v5783_v20, 1  ;;  %v5126_v62 = vrot.slane %v5125_v10, 2  ;;  %v5152_v49 = vrot.slane %v5151_v45, 4  ;;  %v10769_v42 = vpop.f32.mrf.mxu1 }
0x143b   : > { %v10754_v36 = vpop.permute.xlu0 %5480  ;;  %v10763_v12 = vadd.f32 %v5791_v35, %v5790_v43  ;;  %v5803_v16 = vrot.slane %v5802_v55, 2  ;;  %v5814_v50 = vsel %vm5073_vm15, %v5728_v18, 0.0  ;;  %v5146_v22 = vadd.f32 %v5145_v53, %v5144_v60 }
0x143c   : > { %11783 = vst [vmem:[#allocation55_spill] sm:$0xff] %v10754_v36  ;;  %v6067_v19 = vsel %vm3923_vm7, %v5778_v29, %v6066_v47  ;;  %v5108_v4 = vadd.f32 %v5107_v28, %v5106_v39  ;;  %v5141_v51 = vadd.f32 %v5140_v31, %v5139_v7  ;;  %v5153_v6 = vadd.f32 %v5152_v49, %v5151_v45  ;;  %v11787_v29 = vld [vmem:[#allocation57_spill] sm:$0xff] }
0x143d   : > { %v10761_v52 = vpop.permute.xlu1 %5476  ;;  %v5121_v63 = vrot.slane %v5120_v8, 1  ;;  %v5797_v48 = vadd.f32 %v5796_v57, %v5795_v44  ;;  %v10773_v34 = vmul.f32 %v10678_v58, %v10430_v0  ;;  %v5147_v43 = vrot.slane %v5146_v22, 2  ;;  %v11788_v0 = vld [vmem:[#allocation58_spill] sm:$0xff] }
0x143e   : > { %11784 = vst [vmem:[#allocation26_spill] sm:$0xff] %v10761_v52  ;;  %v5785_v35 = vadd.f32 %v5784_v2, %v5783_v20  ;;  %v5127_v15 = vadd.f32 %v5126_v62, %v5125_v10  ;;  %v5815_v18 = vrot.slane %v5814_v50, 4  ;;  %v5154_v60 = vrot.slane %v5153_v6, 2  ;;  %v10785_v10 = vpop.f32.mrf.mxu1 }
0x143f   : > { %v10767_v14 = vpop.permute.xlu0 %5472  ;;  %v5804_v47 = vadd.f32 %v5803_v16, %v5802_v55  ;;  %v5148_v39 = vadd.f32 %v5147_v43, %v5146_v22  ;;  %v5729_v7 = vrot.slane %v10745_v56, 4  ;;  %v5044_v28 = vmul.f32 %v10704_v11, %v11787_v29 }
0x1440   : > { %11785 = vst [vmem:[#allocation14_spill] sm:$0xff] %v10767_v14  ;;  %v5537_v44 = vsel %vm3925_vm9, %v5108_v4, %v5536_v1  ;;  %v5142_v31 = vrot.slane %v5141_v51, 1  ;;  %v5730_v57 = vrot.slane %v5042_v37, 4  ;;  %v5046_v45 = vmul.f32 %v10710_v27, %v11788_v0 }
0x1441   : > { %v10775_v53 = vpop.permute.xlu1 %5468  ;;  %v5798_v2 = vrot.slane %v5797_v48, 1  ;;  %v5149_v62 = vrot.slane %v5148_v39, 1  ;;  %v5155_v55 = vadd.f32 %v5154_v60, %v5153_v6  ;;  %v5158_v49 = vsel %vm5073_vm15, %v5044_v28, 0.0 }
0x1442   : > { %11786 = vst [vmem:[#allocation27_spill] sm:$0xff] %v10775_v53  ;;  %v5122_v56 = vadd.f32 %v5121_v63, %v5120_v8  ;;  %v5128_v16 = vrot.slane %v5127_v15, 1  ;;  %v10788_v11 = vadd.f32 %v5815_v18, %v5814_v50  ;;  %v5159_v1 = vrot.slane %v5158_v49, 4  ;;  %v10798_v8 = vpop.f32.mrf.mxu1 }
0x1443   : > { %v10783_v20 = vpop.permute.xlu0 %4213  ;;  %v6068_v37 = vsel %vm3925_vm9, %v5785_v35, %v6067_v19  ;;  %v5805_v27 = vrot.slane %v5804_v47, 1  ;;  %v5821_v4 = vsel %vm5073_vm15, %v5729_v7, 0.0  ;;  %v5165_v43 = vsel %vm5073_vm15, %v5046_v45, 0.0 }
0x1444   : > { %v5143_v29 = vadd.f32 %v5142_v31, %v5141_v51  ;;  %v5828_v6 = vsel %vm5073_vm15, %v5730_v57, 0.0  ;;  %v5160_v60 = vadd.f32 %v5159_v1, %v5158_v49  ;;  %v5731_v0 = vrot.slane %v5044_v28, 4  ;;  %v11789_v1 = vld [vmem:[#allocation68_spill] sm:$0xff] }
0x1445   : > { %v10790_v22 = vpop.permute.xlu1 %4224  ;;  %v5799_v50 = vadd.f32 %v5798_v2, %v5797_v48  ;;  %v5150_v63 = vadd.f32 %v5149_v62, %v5148_v39  ;;  %v5156_v18 = vrot.slane %v5155_v55, 1  ;;  %v5166_v17 = vrot.slane %v5165_v43, 4  ;;  %v10810_v62 = vpop.f32.mrf.mxu1 }
0x1446   : > { %v5129_v38 = vadd.f32 %v5128_v16, %v5127_v15  ;;  %v5161_v35 = vrot.slane %v5160_v60, 2  ;;  %v5732_v7 = vrot.slane %v5046_v45, 4  ;;  %v5806_v51 = vadd.f32 %v5805_v27, %v5804_v47 }
0x1447   : > { %v10796_v3 = vpop.permute.xlu0 %4517  ;;  %v5822_v31 = vrot.slane %v5821_v4, 4  ;;  %v5829_v57 = vrot.slane %v5828_v6, 4  ;;  %v5167_v49 = vadd.f32 %v5166_v17, %v5165_v43  ;;  %v5622_v28 = vsel %vm3919_vm6, %v5143_v29, %v10735_v21  ;;  %v11790_v29 = vld [vmem:[#allocation59_spill] sm:$0xff] }
0x1448   : > { %v5524_v48 = vmul.f32 %v10700_v32, %v11789_v1  ;;  %v5162_v39 = vadd.f32 %v5161_v35, %v5160_v60  ;;  %v5835_v2 = vsel %vm5073_vm15, %v5731_v0, 0.0  ;;  %v5623_v45 = vsel %vm3921_vm8, %v5150_v63, %v5622_v28 }
0x1449   : > { %v10801_v9 = vpop.permute.xlu1 %4528  ;;  %v5157_v16 = vadd.f32 %v5156_v18, %v5155_v55  ;;  %v5168_v47 = vrot.slane %v5167_v49, 2  ;;  %v5538_v17 = vsel %vm3927_vm10, %v10759_v5, %v5537_v44  ;;  %v5842_v21 = vsel %vm5073_vm15, %v5732_v7, 0.0 }
0x144a   : > { %v5163_v27 = vrot.slane %v5162_v39, 1  ;;  %v5539_v43 = vsel %vm3929_vm11, %v5122_v56, %v5538_v17  ;;  %v5048_v60 = vmul.f32 %v10719_v59, %v11790_v29  ;;  %v5823_v35 = vadd.f32 %v5822_v31, %v5821_v4  ;;  %v10830_v59 = vpop.f32.mrf.mxu1 }
0x144b   : > { %v10808_v15 = vpop.permute.xlu0 %4235  ;;  %v10821_v1 = vadd.f32 %v5829_v57, %v5828_v6  ;;  %v5836_v19 = vrot.slane %v5835_v2, 4  ;;  %v5540_v55 = vsel %vm3931_vm12, %v5129_v38, %v5539_v43  ;;  %v6069_v56 = vsel %vm3927_vm10, %v10763_v12, %v6068_v37 }
0x144c   : > { %v5164_v63 = vadd.f32 %v5163_v27, %v5162_v39  ;;  %8971 = vmatmul.mubr.msk.f32.vlgmr.msra.gmra.mxu0 %vm5541_vm0, %v5540_v55  ;;  %v5172_v5 = vsel %vm5073_vm15, %v5048_v60, 0.0  ;;  %v5733_v44 = vrot.slane %v5048_v60, 4  ;;  %v5624_v4 = vsel %vm3923_vm7, %v5157_v16, %v5623_v45  ;;  %v11791_v39 = vld [vmem:[#allocation66_spill] sm:$0xff]  ;;  %v11793_v55 = vld [vmem:[#allocation67_spill] sm:$0xff] }
0x144d   : > { %v10819_v0 = vpop.permute.xlu1 %4539  ;;  %v5169_v6 = vadd.f32 %v5168_v47, %v5167_v49  ;;  %v5843_v7 = vrot.slane %v5842_v21, 4  ;;  %8974 = vmatpush3.msra.mxu0 %v10773_v34  ;;  %v5173_v38 = vrot.slane %v5172_v5, 4  ;;  %8993 = vmatprep.mubr.msk.f32.mxu0 %vm9399_vm2, %v11734_v13  ;;  %v6070_v12 = vsel %vm3929_vm11, %v5799_v50, %v6069_v56 }
0x144e   : > { %v10837_v31 = vsel %vm3925_vm9, %v5164_v63, %v5624_v4  ;;  %v5849_v57 = vsel %vm5073_vm15, %v5733_v44, 0.0  ;;  %8975 = vmatprep.subr.mxu0 %v11734_v13  ;;  %v5050_v37 = vmul.f32 %v10726_v41, %v10689_v33  ;;  %v5810_v34 = vrot.slane %v10729_v24, 2  ;;  %v10854_v33 = vpop.f32.mrf.mxu1 }
0x144f   : > { %v10828_v18 = vpop.permute.xlu0 %4246  ;;  %v5824_v28 = vrot.slane %v5823_v35, 2  ;;  %v5523_v45 = vmul.f32 %v10715_v40, %v11791_v39  ;;  %v5174_v16 = vadd.f32 %v5173_v38, %v5172_v5  ;;  %8976 = vmatpush3.msra.mxu0 %v5524_v48  ;;  %v5837_v47 = vadd.f32 %v5836_v19, %v5835_v2  ;;  %v11795_v5 = vld [vmem:[#allocation64_spill] sm:$0xff] }
0x1450   : > { %v5850_v17 = vrot.slane %v5849_v57, 4  ;;  %v6071_v27 = vsel %vm3931_vm12, %v5806_v51, %v6070_v12  ;;  %8977 = vmatprep.subr.mxu0 %v11734_v13  ;;  %v5179_v50 = vsel %vm5073_vm15, %v5050_v37, 0.0  ;;  %v5170_v41 = vrot.slane %v5169_v6, 1 }
0x1451   : > { %v10844_v49 = vpop.permute.xlu1 %4550  ;;  %v5175_v29 = vrot.slane %v5174_v16, 2  ;;  %9055 = vmatmul.mubr.msk.f32.vlgmr.msra.gmra.mxu1 %vm5541_vm0, %v6071_v27  ;;  %v5180_v60 = vrot.slane %v5179_v50, 4  ;;  %8978 = vmatpush3.msra.mxu0 %v5523_v45  ;;  %v5522_v19 = vmul.f32 %v10732_v25, %v11793_v55  ;;  %v11794_v51 = vrot.slane %v10788_v11, 2 }
0x1452   : > { %v5831_v2 = vrot.slane %v10821_v1, 2  ;;  %v5844_v63 = vadd.f32 %v5843_v7, %v5842_v21  ;;  %8979 = vmatprep.subr.mxu0 %v11734_v13  ;;  %v5521_v44 = vmul.f32 %v10739_v54, %v11795_v5  ;;  %v5811_v4 = vadd.f32 %v5810_v34, %v10729_v24  ;;  %v9033_v7 = vpop.f32.mrf.mxu1  ;;  %v11798_v24 = vld [vmem:[#allocation62_spill] sm:$0xff] }
0x1453   : > { %v10852_v43 = vpop.permute.xlu0 %4257  ;;  %v5818_v48 = vadd.f32 %v11794_v51, %v10788_v11  ;;  %v5176_v38 = vadd.f32 %v5175_v29, %v5174_v16  ;;  %v5851_v12 = vadd.f32 %v5850_v17, %v5849_v57  ;;  %v5181_v39 = vadd.f32 %v5180_v60, %v5179_v50  ;;  %8980 = vmatpush3.msra.mxu0 %v5522_v19  ;;  %v11796_v11 = vld [vmem:[#allocation65_spill] sm:$0xff]  ;;  %v11800_v29 = vld [vmem:[#allocation63_spill] sm:$0xff] }
0x1454   : > { %11792 = vst [vmem:[#allocation28_spill] sm:$0xff] %v10852_v43  ;;  %v5825_v45 = vadd.f32 %v5824_v28, %v5823_v35  ;;  %v5838_v27 = vrot.slane %v5837_v47, 2  ;;  %v5734_v55 = vrot.slane %v5050_v37, 4  ;;  %v5520_v51 = vmul.f32 %v10747_v26, %v11796_v11  ;;  %8981 = vmatprep.subr.mxu0 %v11734_v13 }
0x1455   : > { %v10866_v56 = vpop.permute.xlu1 %4561  ;;  %v5171_v5 = vadd.f32 %v5170_v41, %v5169_v6  ;;  %v5177_v30 = vrot.slane %v5176_v38, 1  ;;  %v5182_v43 = vrot.slane %v5181_v39, 2  ;;  %8982 = vmatpush3.msra.mxu0 %v5521_v44  ;;  %v5519_v57 = vmul.f32 %v10754_v36, %v11798_v24 }
0x1456   : > { %v5819_v34 = vrot.slane %v5818_v48, 1  ;;  %v5832_v35 = vadd.f32 %v5831_v2, %v10821_v1  ;;  %v5845_v28 = vrot.slane %v5844_v63, 2  ;;  %8983 = vmatprep.subr.mxu0 %v11734_v13  ;;  %v5852_v17 = vrot.slane %v5851_v12, 2 }
0x1457   : > { %v10872_v21 = vpop.permute.xlu0 %4268  ;;  %v5178_v16 = vadd.f32 %v5177_v30, %v5176_v38  ;;  %v5183_v50 = vadd.f32 %v5182_v43, %v5181_v39  ;;  %8984 = vmatpush3.msra.mxu0 %v5520_v51  ;;  %v5518_v6 = vmul.f32 %v10761_v52, %v11800_v29  ;;  %v6034_v41 = vadd.f32 %v9033_v7, %v10437_v61  ;;  %v11802_v30 = vld [vmem:[#allocation60_spill] sm:$0xff]  ;;  %v6028_v7 = vpop.f32.mrf.mxu1 }
0x1458   : > { %11797 = vst [vmem:[#allocation15_spill] sm:$0xff] %v10872_v21  ;;  %v5826_v60 = vrot.slane %v5825_v45, 1  ;;  %v5839_v19 = vadd.f32 %v5838_v27, %v5837_v47  ;;  %v5856_v44 = vsel %vm5073_vm15, %v5734_v55, 0.0  ;;  %8985 = vmatprep.subr.mxu0 %v11734_v13  ;;  %v5812_v2 = vrot.slane %v5811_v4, 1 }
0x1459   : > { %v10878_v37 = vpop.permute.xlu1 %4572  ;;  %v5184_v11 = vrot.slane %v5183_v50, 1  ;;  %8986 = vmatpush3.msra.mxu0 %v5519_v57  ;;  %v5517_v43 = vmul.f32 %v10767_v14, %v11802_v30  ;;  %v5626_v38 = vsel %vm3927_vm10, %v5171_v5, %v10837_v31  ;;  %v5820_v39 = vadd.f32 %v5819_v34, %v5818_v48  ;;  %v11803_v57 = vld [vmem:[#allocation61_spill] sm:$0xff] }
0x145a   : > { %11799 = vst [vmem:[#allocation30_spill] sm:$0xff] %v10878_v37  ;;  %v5833_v51 = vrot.slane %v5832_v35, 1  ;;  %v5846_v24 = vadd.f32 %v5845_v28, %v5844_v63  ;;  %8987 = vmatprep.subr.mxu0 %v11734_v13  ;;  %v5627_v47 = vsel %vm3929_vm11, %v5178_v16, %v5626_v38  ;;  %v5853_v55 = vadd.f32 %v5852_v17, %v5851_v12 }
0x145b   : > { %v10885_v1 = vpop.permute.xlu0 %4279  ;;  %v5185_v29 = vadd.f32 %v5184_v11, %v5183_v50  ;;  %8988 = vmatpush3.msra.mxu0 %v5518_v6  ;;  %v5516_v30 = vmul.f32 %v10775_v53, %v11803_v57  ;;  %v5827_v21 = vadd.f32 %v5826_v60, %v5825_v45  ;;  %v5840_v37 = vrot.slane %v5839_v19, 1 }
0x145c   : > { %11801 = vst [vmem:[#allocation16_spill] sm:$0xff] %v10885_v1  ;;  %v5857_v1 = vrot.slane %v5856_v44, 4  ;;  %8989 = vmatprep.subr.mxu0 %v11734_v13  ;;  %v5813_v48 = vadd.f32 %v5812_v2, %v5811_v4  ;;  %v6029_v63 = vadd.f32 %v6028_v7, %v10437_v61  ;;  %v6024_v12 = vadd.f32 %v10830_v59, %v10437_v61 }
0x145d   : > { %v10893_v27 = vpop.permute.xlu1 %4583  ;;  %8990 = vmatpush3.msra.mxu0 %v5517_v43  ;;  %v5628_v5 = vsel %vm3931_vm12, %v5185_v29, %v5627_v47  ;;  %v6056_v34 = vmul.f32 %v6034_v41, %v10678_v58  ;;  %v5847_v28 = vrot.slane %v5846_v24, 1  ;;  %v5834_v17 = vadd.f32 %v5833_v51, %v5832_v35 }
0x145e   : > { %8991 = vmatprep.subr.mxu0 %v11734_v13  ;;  %v6152_v16 = vsel %vm3919_vm6, %v5820_v39, %v5813_v48  ;;  %v5854_v50 = vrot.slane %v5853_v55, 1  ;;  %v5858_v4 = vadd.f32 %v5857_v1, %v5856_v44  ;;  %v5841_v60 = vadd.f32 %v5840_v37, %v5839_v19 }
0x145f   : > { %v10898_v31 = vpop.permute.xlu0 %4290  ;;  %8992 = vmatpush3.msra.mxu0 %v5516_v30  ;;  %v6153_v6 = vsel %vm3921_vm8, %v5827_v21, %v6152_v16  ;;  %v6019_v41 = vadd.f32 %v10854_v33, %v10437_v61  ;;  %v6055_v2 = vmul.f32 %v6029_v63, %v10700_v32  ;;  %v6014_v35 = vadd.f32 %v10798_v8, %v10437_v61 }
0x1460   : > { %8994 = vmatmul.mubr.msk.f32.vlgmr.msra.gmra.mxu0 %vm5541_vm0, %v5628_v5  ;;  %9057 = vmatprep.subr.mxu0 %v11734_v13  ;;  %v5848_v21 = vadd.f32 %v5847_v28, %v5846_v24  ;;  %v6154_v19 = vsel %vm3923_vm7, %v5834_v17, %v6153_v6  ;;  %v6054_v44 = vmul.f32 %v6024_v12, %v10715_v40  ;;  %v5859_v33 = vrot.slane %v5858_v4, 2 }
0x1461   : > { %v10906_v45 = vpop.permute.xlu1 %4594  ;;  %9058 = vmatpush3.msra.mxu0 %v6056_v34  ;;  %9077 = vmatprep.mubr.msk.f32.mxu0 %vm9399_vm2, %v11734_v13  ;;  %v5855_v1 = vadd.f32 %v5854_v50, %v5853_v55  ;;  %v6155_v11 = vsel %vm3925_vm9, %v5841_v60, %v6154_v19  ;;  %v6009_v8 = vadd.f32 %v10810_v62, %v10437_v61 }
0x1462   : > { %9059 = vmatprep.subr.mxu0 %v11734_v13  ;;  %v6053_v38 = vmul.f32 %v6019_v41, %v10732_v25  ;;  %v6156_v39 = vsel %vm3927_vm10, %v5848_v21, %v6155_v11  ;;  %v5860_v7 = vadd.f32 %v5859_v33, %v5858_v4  ;;  %v6052_v24 = vmul.f32 %v6014_v35, %v10739_v54  ;;  %v10989_v11 = vld [vmem:[%s11727_s20 + $0x8] sm:$0xff] }
0x1463   : > { %v10912_v59 = vpop.permute.xlu0 %4301  ;;  %9060 = vmatpush3.msra.mxu0 %v6055_v2  ;;  %v6157_v47 = vsel %vm3929_vm11, %v5855_v1, %v6156_v39  ;;  %v6004_v62 = vadd.f32 %v10769_v42, %v10437_v61  ;;  %v6051_v29 = vmul.f32 %v6009_v8, %v10747_v26  ;;  %v5999_v30 = vadd.f32 %v10785_v10, %v10437_v61  ;;  %v10983_v1 = vld [vmem:[%s11727_s20 + $0x18] sm:$0xff] }
0x1464   : > { %9061 = vmatprep.subr.mxu0 %v11734_v13  ;;  %v5861_v48 = vrot.slane %v5860_v7, 1  ;;  %v5994_v12 = vadd.f32 %v10741_v46, %v10437_v61  ;;  %v5989_v28 = vadd.f32 %v10756_v23, %v10437_v61 }
0x1465   : > { %v10922_v37 = vpop.permute.xlu1 %4312  ;;  %9062 = vmatpush3.msra.mxu0 %v6054_v44  ;;  %v6050_v63 = vmul.f32 %v6004_v62, %v10754_v36  ;;  %v6049_v42 = vmul.f32 %v5999_v30, %v10761_v52  ;;  %v8175_v62 = vld [vmem:[%s9497_s28 + $0x20] sm:$0xff] }
0x1466   : > { %9063 = vmatprep.subr.mxu0 %v11734_v13  ;;  %v5862_v10 = vadd.f32 %v5861_v48, %v5860_v7  ;;  %v6048_v16 = vmul.f32 %v5994_v12, %v10767_v14  ;;  %v6047_v50 = vmul.f32 %v5989_v28, %v10775_v53  ;;  %v4399_v7 = vsub.f32 %v10922_v37, %v10989_v11 }
0x1467   : > { %v4606_v43 = vpop.permute.xlu0 %4605  ;;  %9064 = vmatpush3.msra.mxu0 %v6053_v38  ;;  %v4397_v38 = vsub.f32 %v10912_v59, %v10989_v11  ;;  %9085 = vmatprep.subr.mxu1 %v8175_v62 }
0x1468   : > { %9065 = vmatprep.subr.mxu0 %v11734_v13  ;;  %v6158_v4 = vsel %vm3931_vm12, %v5862_v10, %v6157_v47  ;;  %v4701_v33 = vsub.f32 %v4606_v43, %v10983_v1  ;;  %9086 = vmatpush3.msra.mxu1 %v8175_v62 }
0x1469   : > { %v4617_v51 = vpop.permute.xlu1 %4616  ;;  %9066 = vmatpush3.msra.mxu0 %v6052_v24  ;;  %v4429_v30 = vand.u32 2147483647, %v4397_v38  ;;  %9128 = vmatprep.subr.mxu1 %v11734_v13 }
0x146a   : > { %9067 = vmatprep.subr.mxu0 %v11734_v13  ;;  %v4703_v8 = vsub.f32 %v4617_v51, %v10983_v1  ;;  %v4733_v47 = vand.u32 2147483647, %v4701_v33  ;;  %v4431_v51 = vand.u32 2147483647, %v4399_v7 }
0x146b   : > { %v10936_v55 = vpop.permute.xlu0 %4323  ;;  %9068 = vmatpush3.msra.mxu0 %v6051_v29 }
0x146c   : > { %9069 = vmatprep.subr.mxu0 %v11734_v13  ;;  %v4735_v43 = vand.u32 2147483647, %v4703_v8  ;;  %v4401_v59 = vsub.f32 %v10936_v55, %v10989_v11 }
0x146d   : > { %v4628_v57 = vpop.permute.xlu1 %4627  ;;  %9070 = vmatpush3.msra.mxu0 %v6050_v63  ;;  %v4765_v63 = vsub.f32 1.0, %v4733_v47 }
0x146e   : > { %9071 = vmatprep.subr.mxu0 %v11734_v13  ;;  %v4705_v29 = vsub.f32 %v4628_v57, %v10983_v1  ;;  %v4461_v57 = vsub.f32 1.0, %v4429_v30 }
0x146f   : > { %v4335_v5 = vpop.permute.xlu0 %4334  ;;  %9072 = vmatpush3.msra.mxu0 %v6049_v42  ;;  %v4767_v42 = vsub.f32 1.0, %v4735_v43 }
0x1470   : > { %9073 = vmatprep.subr.mxu0 %v11734_v13  ;;  %v4403_v37 = vsub.f32 %v4335_v5, %v10989_v11  ;;  %v4737_v28 = vand.u32 2147483647, %v4705_v29  ;;  %v4493_v5 = vmax.f32 %v4461_v57, 0.0 }
0x1471   : > { %v4639_v34 = vpop.permute.xlu1 %4638  ;;  %9074 = vmatpush3.msra.mxu0 %v6048_v16  ;;  %v4799_v55 = vmax.f32 %v4767_v42, 0.0 }
0x1472   : > { %9075 = vmatprep.subr.mxu0 %v11734_v13  ;;  %v4707_v48 = vsub.f32 %v4639_v34, %v10983_v1  ;;  %v4433_v34 = vand.u32 2147483647, %v4401_v59  ;;  %v4435_v33 = vand.u32 2147483647, %v4403_v37  ;;  %v4769_v38 = vsub.f32 1.0, %v4737_v28 }
0x1473   : > { %v10954_v17 = vpop.permute.xlu0 %4345  ;;  %9076 = vmatpush3.msra.mxu0 %v6047_v50  ;;  %v4463_v50 = vsub.f32 1.0, %v4431_v51 }
0x1474   : > { %9078 = vmatmul.mubr.msk.f32.vlgmr.msra.gmra.mxu0 %vm5541_vm0, %v6158_v4  ;;  %v4739_v16 = vand.u32 2147483647, %v4707_v48  ;;  %v4797_v4 = vmax.f32 %v4765_v63, 0.0  ;;  %v4405_v7 = vsub.f32 %v10954_v17, %v10989_v11  ;;  %v4465_v29 = vsub.f32 1.0, %v4433_v34 }
0x1475   : > { %v4650_v46 = vpop.permute.xlu1 %4649  ;;  %v4495_v43 = vmax.f32 %v4463_v50, 0.0  ;;  %v4467_v30 = vsub.f32 1.0, %v4435_v33  ;;  %v4801_v59 = vmax.f32 %v4769_v38, 0.0 }
0x1476   : > { %v4709_v8 = vsub.f32 %v4650_v46, %v10983_v1  ;;  %v4771_v47 = vsub.f32 1.0, %v4739_v16  ;;  %v4829_v51 = vmul.f32 %v4797_v4, %v4493_v5  ;;  %v4437_v63 = vand.u32 2147483647, %v4405_v7  ;;  %v8202_v16 = vld [vmem:[%s9497_s28 + $0x28] sm:$0xff] }
0x1477   : > { %v10960_v61 = vpop.permute.xlu0 %4356  ;;  %v4831_v37 = vmul.f32 %v4799_v55, %v4495_v43  ;;  %v4497_v17 = vmax.f32 %v4465_v29, 0.0  ;;  %v4499_v50 = vmax.f32 %v4467_v30, 0.0  ;;  %9080 = vmatprep.subr.mxu0 %v8202_v16 }
0x1478   : > { %v4741_v48 = vand.u32 2147483647, %v4709_v8  ;;  %v4803_v14 = vmax.f32 %v4771_v47, 0.0  ;;  %v4407_v28 = vsub.f32 %v10960_v61, %v10989_v11  ;;  %v4469_v8 = vsub.f32 1.0, %v4437_v63  ;;  %9081 = vmatpush3.msra.mxu0 %v8202_v16 }
0x1479   : > { %v10962_v23 = vpop.permute.xlu1 %4660  ;;  %v4833_v55 = vmul.f32 %v4801_v59, %v4497_v17 }
0x147a   : > { %v4711_v46 = vsub.f32 %v10962_v23, %v10983_v1  ;;  %v4773_v34 = vsub.f32 1.0, %v4741_v48  ;;  %v4835_v47 = vmul.f32 %v4803_v14, %v4499_v50  ;;  %v4439_v61 = vand.u32 2147483647, %v4407_v28 }
0x147b   : > { %v10964_v6 = vpop.permute.xlu0 %4367  ;;  %v4501_v63 = vmax.f32 %v4469_v8, 0.0 }
0x147c   : > { %v4743_v23 = vand.u32 2147483647, %v4711_v46  ;;  %v4805_v43 = vmax.f32 %v4773_v34, 0.0  ;;  %v4471_v17 = vsub.f32 1.0, %v4439_v61  ;;  %v4409_v14 = vsub.f32 %v10964_v6, %v10989_v11 }
0x147d   : > { %v10966_v60 = vpop.permute.xlu1 %4671 }
0x147e   : > { %v4713_v48 = vsub.f32 %v10966_v60, %v10983_v1  ;;  %v4837_v60 = vmul.f32 %v4805_v43, %v4501_v63 }
0x147f   : > { %v10968_v41 = vpop.permute.xlu0 %4853 }
0x1481   : > { %v10970_v2 = vpop.permute.xlu1 %4864 }
0x1483   : > { %v10972_v35 = vpop.permute.xlu0 %4875 }
0x1485   : > { %v10974_v21 = vpop.permute.xlu1 %4886 }
0x1487   : > { %v10976_v19 = vpop.permute.xlu0 %4897 }
0x1489   : > { %v10978_v44 = vpop.permute.xlu1 %4908 }
0x148b   : > { %v10994_v39 = vpop.permute.xlu0 %4919 }
0x148d   : > { %v10998_v24 = vpop.permute.xlu1 %4930 }
0x148f   : > { %v11007_v12 = vpop.permute.xlu0 %4378 }
0x1490   : > { %v4411_v8 = vsub.f32 %v11007_v12, %v10989_v11 }
0x1491   : > { %v11009_v10 = vpop.permute.xlu1 %4682 }
0x1492   : > { %v4715_v50 = vsub.f32 %v11009_v10, %v10983_v1 }
0x1493   : > { %v4942_v62 = vpop.permute.xlu0 %4941 }
0x1494   : > { %v11016_v42 = vmul.f32 %v4942_v62, %v4829_v51 }
0x1495   : > { %v4953_v53 = vpop.permute.xlu1 %4952 }
0x1496   : > { %v11020_v57 = vmul.f32 %v4953_v53, %v4831_v37  ;;  %v6984_v4 = vrot.slane %v11016_v42, 4  ;;  %v4775_v37 = vsub.f32 1.0, %v4743_v23 }
0x1497   : > { %v4964_v33 = vpop.permute.xlu0 %4963 }
0x1498   : > { %v7064_v7 = vsel %vm5073_vm15, %v6984_v4, 0.0  ;;  %v6985_v5 = vrot.slane %v11020_v57, 4  ;;  %v11026_v62 = vmul.f32 %v4964_v33, %v4833_v55  ;;  %v4745_v55 = vand.u32 2147483647, %v4713_v48 }
0x1499   : > { %v4975_v38 = vpop.permute.xlu1 %4974  ;;  %v7065_v53 = vrot.slane %v7064_v7, 4  ;;  %v4443_v48 = vand.u32 2147483647, %v4411_v8 }
0x149a   : > { %v7071_v29 = vsel %vm5073_vm15, %v6985_v5, 0.0  ;;  %v11029_v30 = vmul.f32 %v4975_v38, %v4835_v47  ;;  %v6986_v46 = vrot.slane %v11026_v62, 4  ;;  %v4441_v47 = vand.u32 2147483647, %v4409_v14 }
0x149b   : > { %v7066_v51 = vadd.f32 %v7065_v53, %v7064_v7  ;;  %v7072_v59 = vrot.slane %v7071_v29, 4  ;;  %v4986_v33 = vpop.permute.xlu0 %4985  ;;  %v4807_v7 = vmax.f32 %v4775_v37, 0.0  ;;  %v4777_v63 = vsub.f32 1.0, %v4745_v55 }
0x149c   : > { %v7078_v34 = vsel %vm5073_vm15, %v6986_v46, 0.0  ;;  %v6987_v4 = vrot.slane %v11029_v30, 4  ;;  %v11043_v10 = vmul.f32 %v4986_v33, %v4837_v60 }
0x149d   : > { %v7067_v28 = vrot.slane %v7066_v51, 2  ;;  %v7073_v16 = vadd.f32 %v7072_v59, %v7071_v29  ;;  %v7079_v5 = vrot.slane %v7078_v34, 4  ;;  %v4503_v29 = vmax.f32 %v4471_v17, 0.0  ;;  %v4997_v36 = vpop.permute.xlu1 %4996 }
0x149e   : > { %v7085_v6 = vsel %vm5073_vm15, %v6987_v4, 0.0  ;;  %v4747_v59 = vand.u32 2147483647, %v4715_v50  ;;  %v6988_v14 = vrot.slane %v11043_v10, 4  ;;  %v4809_v50 = vmax.f32 %v4777_v63, 0.0 }
0x149f   : > { %v7068_v38 = vadd.f32 %v7067_v28, %v7066_v51  ;;  %v7074_v23 = vrot.slane %v7073_v16, 2  ;;  %v7080_v46 = vadd.f32 %v7079_v5, %v7078_v34  ;;  %v7086_v43 = vrot.slane %v7085_v6, 4 }
0x14a0   : > { %v4839_v37 = vmul.f32 %v4807_v7, %v4503_v29  ;;  %v4473_v28 = vsub.f32 1.0, %v4441_v47  ;;  %v4475_v34 = vsub.f32 1.0, %v4443_v48  ;;  %v7092_v8 = vsel %vm5073_vm15, %v6988_v14, 0.0  ;;  %v5008_v29 = vpop.permute.xlu0 %5007 }
0x14a1   : > { %v7069_v61 = vrot.slane %v7068_v38, 1  ;;  %v7075_v53 = vadd.f32 %v7074_v23, %v7073_v16  ;;  %v7081_v12 = vrot.slane %v7080_v46, 2  ;;  %v7087_v51 = vadd.f32 %v7086_v43, %v7085_v6  ;;  %v11051_v23 = vld [vmem:[%s9492_s25 + $0x1d8] sm:$0xff] }
0x14a2   : > { %v4779_v16 = vsub.f32 1.0, %v4747_v59  ;;  %v11046_v17 = vmul.f32 %v4997_v36, %v4839_v37  ;;  %v7093_v6 = vrot.slane %v7092_v8, 4  ;;  %9090 = vmatprep.subr.mxu0 %v11051_v23  ;;  %v4507_v59 = vmax.f32 %v4475_v34, 0.0  ;;  %v5019_v37 = vpop.permute.xlu1 %5018 }
0x14a3   : > { %v7076_v52 = vrot.slane %v7075_v53, 1  ;;  %v7070_v26 = vadd.f32 %v7069_v61, %v7068_v38  ;;  %v7082_v60 = vadd.f32 %v7081_v12, %v7080_v46  ;;  %v7088_v33 = vrot.slane %v7087_v51, 2 }
0x14a4   : > { %v6989_v38 = vrot.slane %v11046_v17, 4  ;;  %v4811_v47 = vmax.f32 %v4779_v16, 0.0 }
0x14a5   : > { %v7077_v4 = vadd.f32 %v7076_v52, %v7075_v53  ;;  %v7083_v5 = vrot.slane %v7082_v60, 1  ;;  %v7089_v7 = vadd.f32 %v7088_v33, %v7087_v51  ;;  %v4505_v52 = vmax.f32 %v4473_v28, 0.0 }
0x14a6   : > { %v7094_v53 = vadd.f32 %v7093_v6, %v7092_v8  ;;  %v4843_v16 = vmul.f32 %v4811_v47, %v4507_v59 }
0x14a7   : > { %v7409_v55 = vsel %vm3919_vm6, %v7077_v4, %v7070_v26  ;;  %v7084_v61 = vadd.f32 %v7083_v5, %v7082_v60  ;;  %v7090_v36 = vrot.slane %v7089_v7, 1  ;;  %v7099_v26 = vsel %vm5073_vm15, %v6989_v38, 0.0 }
0x14a8   : > { %v4841_v46 = vmul.f32 %v4809_v50, %v4505_v52  ;;  %v7095_v48 = vrot.slane %v7094_v53, 2  ;;  %v7100_v12 = vrot.slane %v7099_v26, 4  ;;  %v11061_v8 = vmul.f32 %v5019_v37, %v4843_v16 }
0x14a9   : > { %v7410_v43 = vsel %vm3921_vm8, %v7084_v61, %v7409_v55  ;;  %v7091_v63 = vadd.f32 %v7090_v36, %v7089_v7 }
0x14aa   : > { %v11057_v51 = vmul.f32 %v5008_v29, %v4841_v46  ;;  %v7096_v4 = vadd.f32 %v7095_v48, %v7094_v53  ;;  %v7101_v14 = vadd.f32 %v7100_v12, %v7099_v26  ;;  %v6991_v6 = vrot.slane %v11061_v8, 4 }
0x14ab   : > { %v7411_v28 = vsel %vm3923_vm7, %v7091_v63, %v7410_v43 }
0x14ac   : > { %v6990_v60 = vrot.slane %v11057_v51, 4  ;;  %v7097_v33 = vrot.slane %v7096_v4, 1  ;;  %v7102_v34 = vrot.slane %v7101_v14, 2  ;;  %v7113_v61 = vsel %vm5073_vm15, %v6991_v6, 0.0 }
0x14ad   : > { %v7114_v29 = vrot.slane %v7113_v61, 4 }
0x14ae   : > { %v7106_v50 = vsel %vm5073_vm15, %v6990_v60, 0.0  ;;  %v7098_v55 = vadd.f32 %v7097_v33, %v7096_v4  ;;  %v7103_v5 = vadd.f32 %v7102_v34, %v7101_v14 }
0x14af   : > { %v7107_v7 = vrot.slane %v7106_v50, 4  ;;  %v7115_v26 = vadd.f32 %v7114_v29, %v7113_v61  ;;  %v8207_v61 = vld [vmem:[%s9492_s25 + $0x1c0] sm:$0xff]  ;;  %v8237_v29 = vld [vmem:[%s9492_s25 + $0x1e8] sm:$0xff] }
0x14b0   : > { %v7104_v52 = vrot.slane %v7103_v5, 1  ;;  %v7412_v36 = vsel %vm3925_vm9, %v7098_v55, %v7411_v28 }
0x14b1   : > { %v7108_v38 = vadd.f32 %v7107_v7, %v7106_v50  ;;  %v7116_v63 = vrot.slane %v7115_v26, 2  ;;  %v8209_v7 = vld [vmem:[%s9492_s25 + $0x1d0] sm:$0xff] }
0x14b2   : > { %v7105_v47 = vadd.f32 %v7104_v52, %v7103_v5  ;;  %v8208_v52 = vld [vmem:[%s9492_s25 + $0x1c8] sm:$0xff] }
0x14b3   : > { %v7109_v53 = vrot.slane %v7108_v38, 2  ;;  %v7117_v12 = vadd.f32 %v7116_v63, %v7115_v26  ;;  %v9372_v26 = vld [vmem:[%s11733_s27 + $0x18] sm:$0xff]  ;;  %v9375_v63 = vld [vmem:[%s11733_s27 + $0x30] sm:$0xff] }
0x14b4   : > { %v7413_v46 = vsel %vm3927_vm10, %v7105_v47, %v7412_v36  ;;  %v8239_v36 = vld [vmem:[%s9492_s25 + $0x1f8] sm:$0xff]  ;;  %v8238_v47 = vld [vmem:[%s9492_s25 + $0x1f0] sm:$0xff] }
0x14b5   : > { %v7110_v59 = vadd.f32 %v7109_v53, %v7108_v38  ;;  %v7118_v4 = vrot.slane %v7117_v12, 1  ;;  %v9369_v38 = vld [vmem:[%s11733_s27] sm:$0xff]  ;;  %v9371_v53 = vld [vmem:[%s11733_s27 + $0x10] sm:$0xff] }
0x14b7   : > { %v7111_v43 = vrot.slane %v7110_v59, 1  ;;  %v7119_v14 = vadd.f32 %v7118_v4, %v7117_v12  ;;  %v9377_v12 = vld [vmem:[%s11733_s27 + $0x40] sm:$0xff]  ;;  %v9379_v4 = vld [vmem:[%s11733_s27 + $0x50] sm:$0xff] }
0x14b9   : > { %v7112_v48 = vadd.f32 %v7111_v43, %v7110_v59  ;;  %v8236_v59 = vld [vmem:[%s9492_s25 + $0x1e0] sm:$0xff]  ;;  %v9374_v43 = vld [vmem:[%s11733_s27 + $0x28] sm:$0xff] }
0x14bb   : > { %v7414_v37 = vsel %vm3929_vm11, %v7112_v48, %v7413_v46  ;;  %v9373_v46 = vld [vmem:[%s11733_s27 + $0x20] sm:$0xff]  ;;  %v9376_v48 = vld [vmem:[%s11733_s27 + $0x38] sm:$0xff] }
0x14bc   : > { %v11070_v16 = vsel %vm3931_vm12, %v7119_v14, %v7414_v37  ;;  %v9378_v37 = vld [vmem:[%s11733_s27 + $0x48] sm:$0xff]  ;;  %v9380_v14 = vld [vmem:[%s11733_s27 + $0x58] sm:$0xff] }
0x14bd   : > { %11804 = vst [vmem:[#allocation29_spill] sm:$0xff] %v11070_v16 }
0x150c   : > { %v5610_v28 = vpop.f32.mrf.mxu0 }
0x150d   : > { %9087 = vmatprep.mubr.msk.f32.mxu1 %vm879_vm3, %v5610_v28  ;;  %v9381_v28 = vld [vmem:[%s11733_s27 + $0x60] sm:$0xff] }
0x150e   : > { %v8972_v60 = vpop.f32.mrf.mxu0 }
0x150f   : > { %v9382_v60 = vld [vmem:[%s11733_s27 + $0x68] sm:$0xff] }
0x1511   : > { %v6140_v33 = vpop.f32.mrf.mxu1 }
0x1512   : > { %9082 = vmatprep.mubr.msk.f32.mxu0 %vm879_vm3, %v6140_v33  ;;  %v9383_v33 = vld [vmem:[%s11733_s27 + $0x70] sm:$0xff] }
0x1513   : > { %v9056_v34 = vpop.f32.mrf.mxu1 }
0x1514   : > { %v9384_v34 = vld [vmem:[%s11733_s27 + $0x78] sm:$0xff] }
0x1520   : > { %v5697_v50 = vpop.f32.mrf.mxu0 }
0x1521   : > { %9088 = vmatmul.mubr.msk.f32.vlgmr.msra.gmra.mxu1 %vm879_vm3, %v5697_v50  ;;  %v9385_v50 = vld [vmem:[%s11733_s27 + $0x80] sm:$0xff] }
0x1522   : > { %v8995_v55 = vpop.f32.mrf.mxu0  ;;  %9148 = vmatprep.mubr.msk.f32.mxu1 %vm9399_vm2, %v11734_v13 }
0x1523   : > { %v9386_v55 = vld [vmem:[%s11733_s27 + $0x88] sm:$0xff] }
0x1534   : > { %v6227_v5 = vpop.f32.mrf.mxu0 }
0x1535   : > { %9083 = vmatmul.mubr.msk.f32.vlgmr.msra.gmra.mxu0 %vm879_vm3, %v6227_v5  ;;  %v9387_v5 = vld [vmem:[%s11733_s27 + $0x90] sm:$0xff] }
0x1536   : > { %9091 = vmatpush3.msra.mxu0 %v11051_v23  ;;  %v9079_v6 = vpop.f32.mrf.mxu0  ;;  %9098 = vmatprep.mubr.msk.f32.mxu0 %vm623_vm1, %v9369_v38  ;;  %v9370_v23 = vld [vmem:[%s11733_s27 + $0x8] sm:$0xff] }
0x1537   : > { %9092 = vmatprep.subr.mxu0 %v8209_v7  ;;  %v4687_v6 = vsub.f32 %v10801_v9, %v10983_v1  ;;  %v4691_v9 = vsub.f32 %v10844_v49, %v10983_v1 }
0x1538   : > { %9093 = vmatpush3.msra.mxu0 %v8209_v7  ;;  %v9388_v7 = vld [vmem:[%s11733_s27 + $0x98] sm:$0xff] }
0x1539   : > { %9094 = vmatprep.subr.mxu0 %v8208_v52 }
0x153a   : > { %9095 = vmatpush3.msra.mxu0 %v8208_v52  ;;  %v4383_v52 = vsub.f32 %v10790_v22, %v10989_v11 }
0x153b   : > { %9096 = vmatprep.subr.mxu0 %v8207_v61 }
0x153c   : > { %9097 = vmatpush3.msra.mxu0 %v8207_v61  ;;  %v4689_v61 = vsub.f32 %v10819_v0, %v10983_v1  ;;  %v4693_v0 = vsub.f32 %v10866_v56, %v10983_v1 }
0x153d   : > { %9099 = vmatmul.mubr.msk.f32.vlgmr.msra.gmra.mxu0 %vm623_vm1, %v9370_v23  ;;  %9179 = vmatprep.subr.mxu0 %v8239_v36 }
0x153e   : > { %9101 = vmatprep.mubr.msk.f32.mxu0 %vm623_vm1, %v9371_v53  ;;  %9180 = vmatpush3.msra.mxu0 %v8239_v36  ;;  %v4381_v36 = vsub.f32 %v10783_v20, %v10989_v11 }
0x153f   : > { %9181 = vmatprep.subr.mxu0 %v8238_v47 }
0x1540   : > { %9182 = vmatpush3.msra.mxu0 %v8238_v47  ;;  %v4719_v47 = vand.u32 2147483647, %v4687_v6  ;;  %v4413_v22 = vand.u32 2147483647, %v4381_v36 }
0x1541   : > { %9102 = vmatmul.mubr.msk.f32.gmra.mxu0 %vm623_vm1, %v9372_v26  ;;  %9183 = vmatprep.subr.mxu0 %v8237_v29 }
0x1542   : > { %9104 = vmatprep.mubr.msk.f32.mxu0 %vm623_vm1, %v9373_v46  ;;  %9184 = vmatpush3.msra.mxu0 %v8237_v29 }
0x1543   : > { %9185 = vmatprep.subr.mxu0 %v8236_v59 }
0x1544   : > { %9186 = vmatpush3.msra.mxu0 %v8236_v59  ;;  %v4721_v59 = vand.u32 2147483647, %v4689_v61 }
0x1545   : > { %9105 = vmatmul.mubr.msk.f32.gmra.mxu0 %vm623_vm1, %v9374_v43  ;;  %9217 = vmatprep.subr.mxu0 %v11734_v13 }
0x1546   : > { %9107 = vmatprep.mubr.msk.f32.mxu0 %vm623_vm1, %v9375_v63 }
0x1549   : > { %9108 = vmatmul.mubr.msk.f32.gmra.mxu0 %vm623_vm1, %v9376_v48 }
0x154a   : > { %9110 = vmatprep.mubr.msk.f32.mxu0 %vm623_vm1, %v9377_v12 }
0x154d   : > { %9111 = vmatmul.mubr.msk.f32.gmra.mxu0 %vm623_vm1, %v9378_v37 }
0x154e   : > { %9113 = vmatprep.mubr.msk.f32.mxu0 %vm623_vm1, %v9379_v4 }
0x1551   : > { %9114 = vmatmul.mubr.msk.f32.gmra.mxu0 %vm623_vm1, %v9380_v14 }
0x1552   : > { %9116 = vmatprep.mubr.msk.f32.mxu0 %vm623_vm1, %v9381_v28 }
0x1555   : > { %9117 = vmatmul.mubr.msk.f32.gmra.mxu0 %vm623_vm1, %v9382_v60 }
0x1556   : > { %9119 = vmatprep.mubr.msk.f32.mxu0 %vm623_vm1, %v9383_v33 }
0x1559   : > { %9120 = vmatmul.mubr.msk.f32.gmra.mxu0 %vm623_vm1, %v9384_v34 }
0x155a   : > { %9122 = vmatprep.mubr.msk.f32.mxu0 %vm623_vm1, %v9385_v50 }
0x155d   : > { %9123 = vmatmul.mubr.msk.f32.gmra.mxu0 %vm623_vm1, %v9386_v55 }
0x155e   : > { %9125 = vmatprep.mubr.msk.f32.mxu0 %vm623_vm1, %v9387_v5 }
0x1561   : > { %9126 = vmatmul.mubr.msk.f32.gmra.mxu0 %vm623_vm1, %v9388_v7 }
0x1562   : > { %9187 = vmatprep.mubr.msk.f32.mxu0 %vm623_vm1, %v9369_v38  ;;  %v4685_v38 = vsub.f32 %v10796_v3, %v10983_v1  ;;  %v4387_v3 = vsub.f32 %v10828_v18, %v10989_v11  ;;  %v11806_v18 = vld [vmem:[#allocation30_spill] sm:$0xff] }
0x1564   : > { %v4717_v29 = vand.u32 2147483647, %v4685_v38  ;;  %v4419_v49 = vand.u32 2147483647, %v4387_v3  ;;  %v4697_v38 = vsub.f32 %v10893_v27, %v10983_v1 }
0x1565   : > { %9188 = vmatmul.mubr.msk.f32.vlgmr.msra.gmra.mxu0 %vm623_vm1, %v9370_v23  ;;  %v4385_v23 = vsub.f32 %v10808_v15, %v10989_v11  ;;  %v11805_v15 = vld [vmem:[#allocation28_spill] sm:$0xff] }
0x1566   : > { %9190 = vmatprep.mubr.msk.f32.mxu0 %vm623_vm1, %v9371_v53  ;;  %v4415_v53 = vand.u32 2147483647, %v4383_v52  ;;  %v4451_v36 = vsub.f32 1.0, %v4419_v49 }
0x1568   : > { %v4447_v20 = vsub.f32 1.0, %v4415_v53 }
0x1569   : > { %9191 = vmatmul.mubr.msk.f32.gmra.mxu0 %vm623_vm1, %v9372_v26  ;;  %v4751_v26 = vsub.f32 1.0, %v4719_v47 }
0x156a   : > { %9193 = vmatprep.mubr.msk.f32.mxu0 %vm623_vm1, %v9373_v46  ;;  %v4417_v46 = vand.u32 2147483647, %v4385_v23  ;;  %v11808_v23 = vld [vmem:[#allocation16_spill] sm:$0xff] }
0x156b   : > { %v4393_v53 = vsub.f32 %v11808_v23, %v10989_v11 }
0x156d   : > { %9194 = vmatmul.mubr.msk.f32.gmra.mxu0 %vm623_vm1, %v9374_v43  ;;  %v4749_v43 = vsub.f32 1.0, %v4717_v29 }
0x156e   : > { %9196 = vmatprep.mubr.msk.f32.mxu0 %vm623_vm1, %v9375_v63  ;;  %v4753_v63 = vsub.f32 1.0, %v4721_v59 }
0x1571   : > { %9197 = vmatmul.mubr.msk.f32.gmra.mxu0 %vm623_vm1, %v9376_v48  ;;  %v4723_v48 = vand.u32 2147483647, %v4691_v9 }
0x1572   : > { %9199 = vmatprep.mubr.msk.f32.mxu0 %vm623_vm1, %v9377_v12  ;;  %v4389_v12 = vsub.f32 %v11805_v15, %v10989_v11 }
0x1574   : > { %v4421_v56 = vand.u32 2147483647, %v4389_v12  ;;  %v4425_v12 = vand.u32 2147483647, %v4393_v53 }
0x1575   : > { %9200 = vmatmul.mubr.msk.f32.gmra.mxu0 %vm623_vm1, %v9378_v37  ;;  %v4445_v37 = vsub.f32 1.0, %v4413_v22 }
0x1576   : > { %9202 = vmatprep.mubr.msk.f32.mxu0 %vm623_vm1, %v9379_v4  ;;  %v4783_v4 = vmax.f32 %v4751_v26, 0.0 }
0x1577   : > { %v4477_v6 = vmax.f32 %v4445_v37, 0.0 }
0x1579   : > { %9203 = vmatmul.mubr.msk.f32.gmra.mxu0 %vm623_vm1, %v9380_v14  ;;  %v4449_v14 = vsub.f32 1.0, %v4417_v46  ;;  %v4453_v46 = vsub.f32 1.0, %v4421_v56 }
0x157a   : > { %9205 = vmatprep.mubr.msk.f32.mxu0 %vm623_vm1, %v9381_v28  ;;  %v4725_v28 = vand.u32 2147483647, %v4693_v0  ;;  %v4699_v0 = vsub.f32 %v10906_v45, %v10983_v1 }
0x157b   : > { %v4481_v52 = vmax.f32 %v4449_v14, 0.0 }
0x157c   : > { %v4757_v47 = vsub.f32 1.0, %v4725_v28  ;;  %v4731_v49 = vand.u32 2147483647, %v4699_v0 }
0x157d   : > { %9206 = vmatmul.mubr.msk.f32.gmra.mxu0 %vm623_vm1, %v9382_v60  ;;  %v4479_v60 = vmax.f32 %v4447_v20, 0.0  ;;  %v4729_v20 = vand.u32 2147483647, %v4697_v38 }
0x157e   : > { %9208 = vmatprep.mubr.msk.f32.mxu0 %vm623_vm1, %v9383_v33  ;;  %v4781_v33 = vmax.f32 %v4749_v43, 0.0  ;;  %v4789_v15 = vmax.f32 %v4757_v47, 0.0  ;;  %v4763_v56 = vsub.f32 1.0, %v4731_v49 }
0x157f   : > { %v4815_v61 = vmul.f32 %v4783_v4, %v4479_v60  ;;  %v4485_v4 = vmax.f32 %v4453_v46, 0.0 }
0x1580   : > { %v4813_v59 = vmul.f32 %v4781_v33, %v4477_v6 }
0x1581   : > { %9209 = vmatmul.mubr.msk.f32.gmra.mxu0 %vm623_vm1, %v9384_v34  ;;  %v4785_v34 = vmax.f32 %v4753_v63, 0.0  ;;  %v11218_v9 = vmul.f32 %v10970_v2, %v4815_v61  ;;  %v4483_v63 = vmax.f32 %v4451_v36, 0.0 }
0x1582   : > { %9211 = vmatprep.mubr.msk.f32.mxu0 %vm623_vm1, %v9385_v50  ;;  %v4695_v50 = vsub.f32 %v11806_v18, %v10983_v1  ;;  %v5021_v27 = vmul.f32 %v10968_v41, %v4813_v59  ;;  %v4761_v41 = vsub.f32 1.0, %v4729_v20 }
0x1583   : > { %v4817_v22 = vmul.f32 %v4785_v34, %v4481_v52  ;;  %v6402_v37 = vsel %vm5073_vm15, %v11218_v9, 0.0 }
0x1584   : > { %v4727_v29 = vand.u32 2147483647, %v4695_v50  ;;  %v4457_v50 = vsub.f32 1.0, %v4425_v12  ;;  %v4793_v52 = vmax.f32 %v4761_v41, 0.0 }
0x1585   : > { %9212 = vmatmul.mubr.msk.f32.gmra.mxu0 %vm623_vm1, %v9386_v55  ;;  %v4755_v55 = vsub.f32 1.0, %v4723_v48  ;;  %v11224_v43 = vmul.f32 %v10972_v35, %v4817_v22  ;;  %v4395_v48 = vsub.f32 %v10898_v31, %v10989_v11  ;;  %v6395_v35 = vsel %vm5073_vm15, %v5021_v27, 0.0 }
0x1586   : > { %9214 = vmatprep.mubr.msk.f32.mxu0 %vm623_vm1, %v9387_v5  ;;  %v11807_v5 = vld [vmem:[#allocation15_spill] sm:$0xff]  ;;  %v4759_v2 = vsub.f32 1.0, %v4727_v29  ;;  %v4795_v29 = vmax.f32 %v4763_v56, 0.0 }
0x1587   : > { %v4787_v26 = vmax.f32 %v4755_v55, 0.0  ;;  %v6409_v60 = vsel %vm5073_vm15, %v11224_v43, 0.0  ;;  %v4427_v31 = vand.u32 2147483647, %v4395_v48  ;;  %v4821_v55 = vmul.f32 %v4789_v15, %v4485_v4 }
0x1588   : > { %v4791_v18 = vmax.f32 %v4759_v2, 0.0  ;;  %v6976_v15 = vrot.slane %v5021_v27, 4 }
0x1589   : > { %9215 = vmatmul.mubr.msk.f32.gmra.mxu0 %vm623_vm1, %v9388_v7  ;;  %v4391_v7 = vsub.f32 %v11807_v5, %v10989_v11  ;;  %v4819_v45 = vmul.f32 %v4787_v26, %v4483_v63  ;;  %v6403_v11 = vrot.slane %v6402_v37, 4  ;;  %v6396_v5 = vrot.slane %v6395_v35, 4 }
0x158a   : > { %9237 = vmatprep.mubr.msk.f32.mxu0 %vm9399_vm2, %v11734_v13  ;;  %v11239_v38 = vmul.f32 %v10976_v19, %v4821_v55  ;;  %v4459_v61 = vsub.f32 1.0, %v4427_v31  ;;  %v7008_v27 = vsel %vm5073_vm15, %v6976_v15, 0.0 }
0x158b   : > { %v4423_v3 = vand.u32 2147483647, %v4391_v7  ;;  %v11236_v34 = vmul.f32 %v10974_v21, %v4819_v45  ;;  %v6410_v7 = vrot.slane %v6409_v60, 4  ;;  %v6404_v36 = vadd.f32 %v6403_v11, %v6402_v37 }
0x158c   : > { %v4489_v21 = vmax.f32 %v4457_v50, 0.0  ;;  %v6397_v59 = vadd.f32 %v6396_v5, %v6395_v35  ;;  %v4491_v20 = vmax.f32 %v4459_v61, 0.0 }
0x158d   : > { %v4455_v14 = vsub.f32 1.0, %v4423_v3  ;;  %v6416_v47 = vsel %vm5073_vm15, %v11236_v34, 0.0  ;;  %v6411_v22 = vadd.f32 %v6410_v7, %v6409_v60  ;;  %v6423_v3 = vsel %vm5073_vm15, %v11239_v38, 0.0 }
0x158e   : > { %v6417_v46 = vrot.slane %v6416_v47, 4  ;;  %v4825_v0 = vmul.f32 %v4793_v52, %v4489_v21  ;;  %v6405_v63 = vrot.slane %v6404_v36, 2  ;;  %v6398_v12 = vrot.slane %v6397_v59, 2 }
0x158f   : > { %v4487_v6 = vmax.f32 %v4455_v14, 0.0  ;;  %v6412_v37 = vrot.slane %v6411_v22, 2  ;;  %v6424_v4 = vrot.slane %v6423_v3, 4  ;;  %v4827_v14 = vmul.f32 %v4795_v29, %v4491_v20 }
0x1590   : > { %v11255_v2 = vmul.f32 %v10994_v39, %v4825_v0  ;;  %v6418_v45 = vadd.f32 %v6417_v46, %v6416_v47  ;;  %v6399_v35 = vadd.f32 %v6398_v12, %v6397_v59  ;;  %v7009_v7 = vrot.slane %v7008_v27, 4  ;;  %v11811_v46 = vld [vmem:[#allocation6_spill] sm:$0xff] }
0x1591   : > { %v4823_v53 = vmul.f32 %v4791_v18, %v4487_v6  ;;  %v6413_v60 = vadd.f32 %v6412_v37, %v6411_v22  ;;  %v6425_v31 = vadd.f32 %v6424_v4, %v6423_v3  ;;  %v6977_v6 = vrot.slane %v11218_v9, 4  ;;  %v11277_v22 = vld [vmem:[%s9517_s9 + $0x10] sm:$0xff] }
0x1592   : > { %v6437_v39 = vsel %vm5073_vm15, %v11255_v2, 0.0  ;;  %v6419_v50 = vrot.slane %v6418_v45, 2  ;;  %v6458_v52 = vsel %vm5073_vm15, %v11020_v57, 0.0  ;;  %v6400_v61 = vrot.slane %v6399_v35, 1 }
0x1593   : > { %v11250_v19 = vmul.f32 %v10978_v44, %v4823_v53  ;;  %v6438_v56 = vrot.slane %v6437_v39, 4  ;;  %v6426_v47 = vrot.slane %v6425_v31, 2  ;;  %v11281_v3 = vrot.slane %v11277_v22, %v11811_v46 }
0x1594   : > { %v6420_v29 = vadd.f32 %v6419_v50, %v6418_v45  ;;  %v11283_v15 = vadd.f32 %v7009_v7, %v7008_v27  ;;  %v11286_v57 = vsel %vm5073_vm15, %v6977_v6, 0.0  ;;  %v6978_v12 = vrot.slane %v11224_v43, 4 }
0x1595   : > { %v6430_v44 = vsel %vm5073_vm15, %v11250_v19, 0.0  ;;  %v6439_v20 = vadd.f32 %v6438_v56, %v6437_v39  ;;  %v6451_v37 = vsel %vm5073_vm15, %v11016_v42, 0.0  ;;  %v6401_v4 = vadd.f32 %v6400_v61, %v6399_v35 }
0x1596   : > { %v6431_v11 = vrot.slane %v6430_v44, 4  ;;  %v6427_v45 = vadd.f32 %v6426_v47, %v6425_v31  ;;  %v6421_v50 = vrot.slane %v6420_v29, 1  ;;  %v6465_v39 = vsel %vm5073_vm15, %v11026_v62, 0.0 }
0x1597   : > { %v6440_v56 = vrot.slane %v6439_v20, 2  ;;  %v6452_v7 = vrot.slane %v6451_v37, 4  ;;  %v6472_v42 = vsel %vm5073_vm15, %v11029_v30, 0.0  ;;  %v6466_v47 = vrot.slane %v6465_v39, 4 }
0x1598   : > { %v6432_v21 = vadd.f32 %v6431_v11, %v6430_v44  ;;  %v6428_v62 = vrot.slane %v6427_v45, 1  ;;  %v6473_v46 = vrot.slane %v6472_v42, 4 }
0x159a   : > { %v6433_v44 = vrot.slane %v6432_v21, 2 }
0x15e1   : > { %v9089_v1 = vpop.f32.mrf.mxu1 }
0x15f5   : > { %v9084_v28 = vpop.f32.mrf.mxu0 }
0x15f6   : > { %v11233_v33 = vadd.f32 %v9089_v1, %v9084_v28  ;;  %v6406_v1 = vadd.f32 %v6405_v63, %v6404_v36  ;;  %v11262_v28 = vmul.f32 %v10998_v24, %v4827_v14  ;;  %v6414_v36 = vrot.slane %v6413_v60, 1 }
0x15f7   : > { %v11243_v23 = vpop.f32.mrf.mxu0  ;;  %v6459_v63 = vrot.slane %v6458_v52, 4 }
0x15f8   : > { %11809 = vst [vmem:[#allocation17_spill] sm:$0xff] %v11233_v33  ;;  %11810 = vst [vmem:[#allocation31_spill] sm:$0xff] %v11243_v23  ;;  %v6407_v55 = vrot.slane %v6406_v1, 1  ;;  %v6444_v24 = vsel %vm5073_vm15, %v11262_v28, 0.0  ;;  %v6415_v14 = vadd.f32 %v6414_v36, %v6413_v60  ;;  %v11812_v60 = vld [vmem:[#allocation39_spill] sm:$0xff]  ;;  %v6434_v36 = vadd.f32 %v6433_v44, %v6432_v21 }
0x15f9   : > { %v6445_v59 = vrot.slane %v6444_v24, 4  ;;  %v6460_v43 = vadd.f32 %v6459_v63, %v6458_v52  ;;  %v11813_v63 = vld [vmem:[#allocation42_spill] sm:$0xff]  ;;  %v6479_v44 = vsel %vm5073_vm15, %v11043_v10, 0.0 }
0x15fa   : > { %v6408_v0 = vadd.f32 %v6407_v55, %v6406_v1 }
0x15fb   : > { %v6446_v1 = vadd.f32 %v6445_v59, %v6444_v24  ;;  %v6461_v21 = vrot.slane %v6460_v43, 2 }
0x15fc   : > { %v6709_v55 = vsel %vm3919_vm6, %v6408_v0, %v6401_v4  ;;  %v6422_v0 = vadd.f32 %v6421_v50, %v6420_v29  ;;  %v11814_v50 = vld [vmem:[#allocation41_spill] sm:$0xff] }
0x15fd   : > { %v11245_v26 = vpop.f32.mrf.mxu0  ;;  %v6447_v4 = vrot.slane %v6446_v1, 2  ;;  %v6710_v30 = vsel %vm3921_vm8, %v6415_v14, %v6709_v55  ;;  %v6429_v14 = vadd.f32 %v6428_v62, %v6427_v45  ;;  %v6486_v45 = vsel %vm5073_vm15, %v11046_v17, 0.0 }
0x15fe   : > { %v6487_v17 = vrot.slane %v6486_v45, 4  ;;  %v6588_v61 = vadd.f32 %v11245_v26, %v11281_v3  ;;  %v11819_v26 = vld [vmem:[#allocation56_spill] sm:$0xff] }
0x15ff   : > { %v11252_v48 = vpop.f32.mrf.mxu0 }
0x1601   : > { %v11257_v49 = vpop.f32.mrf.mxu0 }
0x1603   : > { %v11264_v41 = vpop.f32.mrf.mxu0 }
0x1605   : > { %v9106_v18 = vpop.f32.mrf.mxu0 }
0x1606   : > { %v6608_v29 = vadd.f32 %v9106_v18, %v11281_v3  ;;  %v11815_v18 = vld [vmem:[#allocation44_spill] sm:$0xff] }
0x1607   : > { %v11271_v5 = vpop.f32.mrf.mxu0 }
0x1608   : > { %v6603_v10 = vadd.f32 %v11271_v5, %v11281_v3 }
0x1609   : > { %v9109_v53 = vpop.f32.mrf.mxu0 }
0x160a   : > { %v6618_v35 = vadd.f32 %v9109_v53, %v11281_v3  ;;  %v6441_v53 = vadd.f32 %v6440_v56, %v6439_v20  ;;  %v6435_v20 = vrot.slane %v6434_v36, 1  ;;  %v6711_v56 = vsel %vm3923_vm7, %v6422_v0, %v6710_v30  ;;  %v11816_v0 = vld [vmem:[#allocation43_spill] sm:$0xff] }
0x160b   : > { %v6612_v9 = vpop.f32.mrf.mxu0  ;;  %v6686_v5 = vmul.f32 %v6608_v29, %v11816_v0 }
0x160c   : > { %v6613_v52 = vadd.f32 %v6612_v9, %v11281_v3  ;;  %v6688_v9 = vmul.f32 %v6618_v35, %v11814_v50  ;;  %v6442_v62 = vrot.slane %v6441_v53, 1 }
0x160d   : > { %v9112_v11 = vpop.f32.mrf.mxu0 }
0x160e   : > { %v6628_v27 = vadd.f32 %v9112_v11, %v11281_v3 }
0x160f   : > { %v6622_v6 = vpop.f32.mrf.mxu0 }
0x1610   : > { %v6690_v31 = vmul.f32 %v6628_v27, %v11812_v60  ;;  %v6623_v24 = vadd.f32 %v6622_v6, %v11281_v3  ;;  %v6453_v27 = vadd.f32 %v6452_v7, %v6451_v37  ;;  %v6467_v37 = vadd.f32 %v6466_v47, %v6465_v39 }
0x1611   : > { %v11301_v59 = vpop.f32.mrf.mxu0  ;;  %v6448_v7 = vadd.f32 %v6447_v4, %v6446_v1  ;;  %v6462_v47 = vadd.f32 %v6461_v21, %v6460_v43  ;;  %v6598_v1 = vadd.f32 %v11257_v49, %v11281_v3  ;;  %v6979_v4 = vrot.slane %v11236_v34, 4  ;;  %v11817_v21 = vld [vmem:[#allocation50_spill] sm:$0xff] }
0x1612   : > { %v6689_v11 = vmul.f32 %v6623_v24, %v11813_v63  ;;  %9129 = vmatpush3.msra.mxu1 %v6690_v31  ;;  %v11314_v31 = vsel %vm5073_vm15, %v6978_v12, 0.0  ;;  %v6687_v24 = vmul.f32 %v6613_v52, %v11815_v18  ;;  %v6454_v35 = vrot.slane %v6453_v27, 2 }
0x1613   : > { %v11306_v6 = vpop.f32.mrf.mxu0  ;;  %9130 = vmatprep.subr.mxu1 %v11734_v13  ;;  %v6480_v12 = vrot.slane %v6479_v44, 4  ;;  %v6468_v52 = vrot.slane %v6467_v37, 2  ;;  %v6493_v43 = vsel %vm5073_vm15, %v11057_v51, 0.0  ;;  %v6593_v49 = vadd.f32 %v11264_v41, %v11281_v3  ;;  %v11818_v51 = vld [vmem:[#allocation53_spill] sm:$0xff] }
0x1614   : > { %9131 = vmatpush3.msra.mxu1 %v6689_v11  ;;  %v6474_v11 = vadd.f32 %v6473_v46, %v6472_v42  ;;  %v6712_v46 = vsel %vm3925_vm9, %v6429_v14, %v6711_v56  ;;  %v6436_v42 = vadd.f32 %v6435_v20, %v6434_v36  ;;  %v6685_v29 = vmul.f32 %v6603_v10, %v11817_v21 }
0x1615   : > { %v11316_v55 = vpop.f32.mrf.mxu0  ;;  %9132 = vmatprep.subr.mxu1 %v11734_v13  ;;  %v6455_v34 = vadd.f32 %v6454_v35, %v6453_v27  ;;  %v6481_v14 = vadd.f32 %v6480_v12, %v6479_v44  ;;  %v6443_v20 = vadd.f32 %v6442_v62, %v6441_v53  ;;  %v6463_v56 = vrot.slane %v6462_v47, 1 }
0x1616   : > { %9133 = vmatpush3.msra.mxu1 %v6688_v9  ;;  %v6449_v9 = vrot.slane %v6448_v7, 1  ;;  %v6684_v33 = vmul.f32 %v6598_v1, %v11818_v51  ;;  %v6469_v41 = vadd.f32 %v6468_v52, %v6467_v37  ;;  %v6494_v23 = vrot.slane %v6493_v43, 4 }
0x1617   : > { %v11325_v39 = vpop.f32.mrf.mxu0  ;;  %9134 = vmatprep.subr.mxu1 %v11734_v13  ;;  %v6500_v10 = vsel %vm5073_vm15, %v11061_v8, 0.0  ;;  %v6713_v44 = vsel %vm3927_vm10, %v6436_v42, %v6712_v46  ;;  %v7023_v35 = vrot.slane %v11314_v31, 4  ;;  %v6488_v53 = vadd.f32 %v6487_v17, %v6486_v45  ;;  %v11821_v45 = vld [vmem:[#allocation69_spill] sm:$0xff] }
0x1618   : > { %9135 = vmatpush3.msra.mxu1 %v6687_v24  ;;  %v6475_v24 = vrot.slane %v6474_v11, 2  ;;  %v6583_v12 = vadd.f32 %v11252_v48, %v11281_v3  ;;  %v6683_v62 = vmul.f32 %v6593_v49, %v11819_v26  ;;  %v6450_v1 = vadd.f32 %v6449_v9, %v6448_v7  ;;  %v11822_v26 = vld [vmem:[#allocation70_spill] sm:$0xff] }
0x1619   : > { %v11333_v30 = vpop.f32.mrf.mxu0  ;;  %9136 = vmatprep.subr.mxu1 %v11734_v13  ;;  %v6456_v37 = vrot.slane %v6455_v34, 1  ;;  %v6482_v52 = vrot.slane %v6481_v14, 2  ;;  %v11820_v8 = vrot.slane %v11286_v57, 4  ;;  %v6501_v42 = vrot.slane %v6500_v10, 4 }
0x161a   : > { %9137 = vmatpush3.msra.mxu1 %v6686_v5  ;;  %v6476_v5 = vadd.f32 %v6475_v24, %v6474_v11  ;;  %v6682_v17 = vmul.f32 %v6588_v61, %v11821_v45  ;;  %v6714_v48 = vsel %vm3929_vm11, %v6443_v20, %v6713_v44  ;;  %v6464_v7 = vadd.f32 %v6463_v56, %v6462_v47 }
0x161b   : > { %v11341_v36 = vpop.f32.mrf.mxu0  ;;  %9138 = vmatprep.subr.mxu1 %v11734_v13  ;;  %v11359_v46 = vadd.f32 %v11820_v8, %v11286_v57  ;;  %v6470_v49 = vrot.slane %v6469_v41, 1  ;;  %v6495_v11 = vadd.f32 %v6494_v23, %v6493_v43  ;;  %v6980_v24 = vrot.slane %v11239_v38, 4 }
0x161c   : > { %9139 = vmatpush3.msra.mxu1 %v6685_v29  ;;  %v6489_v16 = vrot.slane %v6488_v53, 2  ;;  %v6681_v57 = vmul.f32 %v6583_v12, %v11822_v26  ;;  %v6457_v61 = vadd.f32 %v6456_v37, %v6455_v34  ;;  %v6483_v45 = vadd.f32 %v6482_v52, %v6481_v14 }
0x161d   : > { %v9124_v27 = vpop.f32.mrf.mxu0  ;;  %9140 = vmatprep.subr.mxu1 %v11734_v13  ;;  %v6715_v47 = vsel %vm3931_vm12, %v6450_v1, %v6714_v48  ;;  %v6502_v23 = vadd.f32 %v6501_v42, %v6500_v10  ;;  %v6981_v56 = vrot.slane %v11250_v19, 4  ;;  %v6471_v34 = vadd.f32 %v6470_v49, %v6469_v41 }
0x161e   : > { %9141 = vmatpush3.msra.mxu1 %v6684_v33  ;;  %v7029_v33 = vsel %vm5073_vm15, %v6979_v4, 0.0  ;;  %v6668_v4 = vadd.f32 %v9124_v27, %v11281_v3  ;;  %v6796_v44 = vsel %vm3919_vm6, %v6464_v7, %v6457_v61  ;;  %v6496_v12 = vrot.slane %v6495_v11, 2 }
0x161f   : > { %v6662_v29 = vpop.f32.mrf.mxu0  ;;  %9142 = vmatprep.subr.mxu1 %v11734_v13  ;;  %v7011_v10 = vrot.slane %v11283_v15, 2  ;;  %v6490_v27 = vadd.f32 %v6489_v16, %v6488_v53  ;;  %v7024_v19 = vadd.f32 %v7023_v35, %v11314_v31  ;;  %v7030_v41 = vrot.slane %v7029_v33, 4 }
0x1620   : > { %9143 = vmatpush3.msra.mxu1 %v6683_v62  ;;  %v6477_v62 = vrot.slane %v6476_v5, 1  ;;  %v6663_v1 = vadd.f32 %v6662_v29, %v11281_v3  ;;  %v7036_v52 = vsel %vm5073_vm15, %v6980_v24, 0.0  ;;  %v6484_v42 = vrot.slane %v6483_v45, 1 }
0x1621   : > { %v9127_v9 = vpop.f32.mrf.mxu0  ;;  %9144 = vmatprep.subr.mxu1 %v11734_v13  ;;  %v6503_v16 = vrot.slane %v6502_v23, 2  ;;  %v6658_v53 = vadd.f32 %v11333_v30, %v11281_v3  ;;  %v6698_v29 = vmul.f32 %v6668_v4, %v10715_v40  ;;  %v7018_v7 = vrot.slane %v11359_v46, 2 }
0x1622   : > { %v6678_v8 = vadd.f32 %v9127_v9, %v11281_v3  ;;  %9145 = vmatpush3.msra.mxu1 %v6682_v17  ;;  %v6478_v48 = vadd.f32 %v6477_v62, %v6476_v5  ;;  %v7043_v31 = vsel %vm5073_vm15, %v6981_v56, 0.0  ;;  %v6797_v35 = vsel %vm3921_vm8, %v6471_v34, %v6796_v44  ;;  %v11823_v34 = vld [vmem:[#allocation13_spill] sm:$0xff] }
0x1623   : > { %v6672_v20 = vpop.f32.mrf.mxu0  ;;  %9146 = vmatprep.subr.mxu1 %v11734_v13  ;;  %v6497_v49 = vadd.f32 %v6496_v12, %v6495_v11  ;;  %v6982_v5 = vrot.slane %v11255_v2, 4  ;;  %v6491_v24 = vrot.slane %v6490_v27, 1  ;;  %v6653_v30 = vadd.f32 %v11341_v36, %v11281_v3 }
0x1624   : > { %v6700_v43 = vmul.f32 %v6678_v8, %v10678_v58  ;;  %v6673_v38 = vadd.f32 %v6672_v20, %v11281_v3  ;;  %9147 = vmatpush3.msra.mxu1 %v6681_v57  ;;  %v6697_v57 = vmul.f32 %v6663_v1, %v10732_v25  ;;  %v7031_v8 = vadd.f32 %v7030_v41, %v7029_v33 }
0x1625   : > { %9149 = vmatmul.mubr.msk.f32.vlgmr.msra.gmra.mxu1 %vm5541_vm0, %v6715_v47  ;;  %9151 = vmatprep.subr.mxu1 %v11734_v13  ;;  %v11377_v14 = vpop.f32.mrf.mxu0  ;;  %v7037_v61 = vrot.slane %v7036_v52, 4  ;;  %v6983_v62 = vrot.slane %v11262_v28, 4  ;;  %v6485_v20 = vadd.f32 %v6484_v42, %v6483_v45  ;;  %v6798_v47 = vsel %vm3923_vm7, %v6478_v48, %v6797_v35 }
0x1626   : > { %v6699_v37 = vmul.f32 %v6673_v38, %v10700_v32  ;;  %9152 = vmatpush3.msra.mxu1 %v6700_v43  ;;  %9171 = vmatprep.mubr.msk.f32.mxu1 %vm9399_vm2, %v11734_v13  ;;  %v6504_v4 = vadd.f32 %v6503_v16, %v6502_v23  ;;  %v6648_v2 = vadd.f32 %v11316_v55, %v11281_v3  ;;  %v7025_v33 = vrot.slane %v7024_v19, 2 }
0x1627   : > { %9153 = vmatprep.subr.mxu1 %v11734_v13  ;;  %v11387_v17 = vpop.f32.mrf.mxu0  ;;  %v6696_v36 = vmul.f32 %v6658_v53, %v10739_v54  ;;  %v7019_v43 = vadd.f32 %v7018_v7, %v11359_v46  ;;  %v7044_v38 = vrot.slane %v7043_v31, 4  ;;  %v6498_v56 = vrot.slane %v6497_v49, 1 }
0x1628   : > { %9154 = vmatpush3.msra.mxu1 %v6699_v37  ;;  %v7050_v45 = vsel %vm5073_vm15, %v6982_v5, 0.0  ;;  %v6492_v44 = vadd.f32 %v6491_v24, %v6490_v27  ;;  %v6643_v23 = vadd.f32 %v11325_v39, %v11281_v3  ;;  %v6695_v55 = vmul.f32 %v6653_v30, %v11823_v34  ;;  %v11824_v39 = vld [vmem:[#allocation55_spill] sm:$0xff]  ;;  %v11825_v5 = vld [vmem:[#allocation26_spill] sm:$0xff] }
0x1629   : > { %9155 = vmatprep.subr.mxu1 %v11734_v13  ;;  %v11396_v9 = vpop.f32.mrf.mxu0  ;;  %v7012_v12 = vadd.f32 %v7011_v10, %v11283_v15  ;;  %v7032_v1 = vrot.slane %v7031_v8, 2  ;;  %v7038_v46 = vadd.f32 %v7037_v61, %v7036_v52  ;;  %v6799_v37 = vsel %vm3925_vm9, %v6485_v20, %v6798_v47  ;;  %v11827_v47 = vld [vmem:[#allocation14_spill] sm:$0xff] }
0x162a   : > { %9156 = vmatpush3.msra.mxu1 %v6698_v29  ;;  %v7057_v42 = vsel %vm5073_vm15, %v6983_v62, 0.0  ;;  %v6505_v48 = vrot.slane %v6504_v4, 1  ;;  %v6638_v27 = vadd.f32 %v11301_v59, %v11281_v3  ;;  %v6694_v16 = vmul.f32 %v6648_v2, %v11824_v39 }
0x162b   : > { %9157 = vmatprep.subr.mxu1 %v11734_v13  ;;  %v11404_v11 = vpop.f32.mrf.mxu0  ;;  %v7020_v53 = vrot.slane %v7019_v43, 1  ;;  %v7026_v29 = vadd.f32 %v7025_v33, %v7024_v19  ;;  %v7051_v15 = vrot.slane %v7050_v45, 4  ;;  %v6499_v10 = vadd.f32 %v6498_v56, %v6497_v49  ;;  %v11826_v49 = vld [vmem:[#allocation8_spill] sm:$0xff]  ;;  %v11828_v56 = vld [vmem:[#allocation27_spill] sm:$0xff] }
0x162c   : > { %9158 = vmatpush3.msra.mxu1 %v6697_v57  ;;  %v7045_v7 = vadd.f32 %v7044_v38, %v7043_v31  ;;  %v6633_v35 = vadd.f32 %v11306_v6, %v11281_v3  ;;  %v6693_v24 = vmul.f32 %v6643_v23, %v11825_v5  ;;  %v6800_v30 = vsel %vm3927_vm10, %v6492_v44, %v6799_v37 }
0x162d   : > { %9159 = vmatprep.subr.mxu1 %v11734_v13  ;;  %v11412_v28 = vpop.f32.mrf.mxu0  ;;  %v7013_v59 = vrot.slane %v7012_v12, 1  ;;  %v7033_v57 = vadd.f32 %v7032_v1, %v7031_v8  ;;  %v7039_v61 = vrot.slane %v7038_v46, 2  ;;  %v7058_v62 = vrot.slane %v7057_v42, 4 }
0x162e   : > { %9160 = vmatpush3.msra.mxu1 %v6696_v36  ;;  %v11435_v20 = vrot.slane %v11277_v22, %v11826_v49  ;;  %v6506_v31 = vadd.f32 %v6505_v48, %v6504_v4  ;;  %v6692_v2 = vmul.f32 %v6638_v27, %v11827_v47  ;;  %v7027_v3 = vrot.slane %v7026_v29, 1 }
0x162f   : > { %9161 = vmatprep.subr.mxu1 %v11734_v13  ;;  %v11421_v41 = vpop.f32.mrf.mxu0  ;;  %v7052_v6 = vadd.f32 %v7051_v15, %v7050_v45  ;;  %v6801_v8 = vsel %vm3929_vm11, %v6499_v10, %v6800_v30  ;;  %v7021_v33 = vadd.f32 %v7020_v53, %v7019_v43  ;;  %v7046_v38 = vrot.slane %v7045_v7, 2 }
0x1630   : > { %9162 = vmatpush3.msra.mxu1 %v6695_v55  ;;  %v6691_v44 = vmul.f32 %v6633_v35, %v11828_v56  ;;  %v7014_v55 = vadd.f32 %v7013_v59, %v7012_v12  ;;  %v7034_v1 = vrot.slane %v7033_v57, 1  ;;  %v7040_v4 = vadd.f32 %v7039_v61, %v7038_v46 }
0x1631   : > { %9163 = vmatprep.subr.mxu1 %v11734_v13  ;;  %v9198_v52 = vpop.f32.mrf.mxu0  ;;  %v7059_v37 = vadd.f32 %v7058_v62, %v7057_v42  ;;  %v6802_v43 = vsel %vm3931_vm12, %v6506_v31, %v6801_v8  ;;  %v7028_v53 = vadd.f32 %v7027_v3, %v7026_v29  ;;  %v7053_v15 = vrot.slane %v7052_v6, 2  ;;  %v11829_v8 = vld [vmem:[#allocation56_spill] sm:$0xff] }
0x1632   : > { %9164 = vmatpush3.msra.mxu1 %v6694_v16  ;;  %v7231_v45 = vadd.f32 %v9198_v52, %v11435_v20  ;;  %v7322_v12 = vsel %vm3919_vm6, %v7021_v33, %v7014_v55  ;;  %v7047_v46 = vadd.f32 %v7046_v38, %v7045_v7  ;;  %v7041_v52 = vrot.slane %v7040_v4, 1  ;;  %v8233_v55 = vld [vmem:[%s9497_s28 + $0x30] sm:$0xff] }
0x1633   : > { %9165 = vmatprep.subr.mxu1 %v11734_v13  ;;  %v7225_v19 = vpop.f32.mrf.mxu0  ;;  %v7060_v35 = vrot.slane %v7059_v37, 2  ;;  %v7323_v30 = vsel %vm3921_vm8, %v7028_v53, %v7322_v12  ;;  %v7054_v59 = vadd.f32 %v7053_v15, %v7052_v6 }
0x1634   : > { %9166 = vmatpush3.msra.mxu1 %v6693_v24  ;;  %v7226_v42 = vadd.f32 %v7225_v19, %v11435_v20  ;;  %v7221_v24 = vadd.f32 %v11412_v28, %v11435_v20  ;;  %v7301_v29 = vmul.f32 %v7231_v45, %v11814_v50  ;;  %v7048_v7 = vrot.slane %v7047_v46, 1 }
0x1635   : > { %9167 = vmatprep.subr.mxu1 %v11734_v13  ;;  %v9201_v36 = vpop.f32.mrf.mxu0  ;;  %v7061_v62 = vadd.f32 %v7060_v35, %v7059_v37  ;;  %v7211_v50 = vadd.f32 %v11396_v9, %v11435_v20  ;;  %v7055_v31 = vrot.slane %v7054_v59, 1  ;;  %v7201_v9 = vadd.f32 %v11377_v14, %v11435_v20 }
0x1636   : > { %v7241_v23 = vadd.f32 %v9201_v36, %v11435_v20  ;;  %9168 = vmatpush3.msra.mxu1 %v6692_v2  ;;  %v7300_v61 = vmul.f32 %v7226_v42, %v11815_v18  ;;  %v7299_v19 = vmul.f32 %v7221_v24, %v11816_v0  ;;  %v7049_v2 = vadd.f32 %v7048_v7, %v7047_v46 }
0x1637   : > { %9169 = vmatprep.subr.mxu1 %v11734_v13  ;;  %v7235_v48 = vpop.f32.mrf.mxu0  ;;  %v7206_v18 = vadd.f32 %v11404_v11, %v11435_v20  ;;  %v7062_v6 = vrot.slane %v7061_v62, 1  ;;  %v7297_v0 = vmul.f32 %v7211_v50, %v11818_v51  ;;  %v7056_v36 = vadd.f32 %v7055_v31, %v7054_v59  ;;  %v11832_v31 = vld [vmem:[#allocation31_spill] sm:$0xff] }
0x1638   : > { %v7303_v27 = vmul.f32 %v7241_v23, %v11812_v60  ;;  %v7236_v16 = vadd.f32 %v7235_v48, %v11435_v20  ;;  %9170 = vmatpush3.msra.mxu1 %v6691_v44  ;;  %v7035_v60 = vadd.f32 %v7034_v1, %v7033_v57  ;;  %v7042_v57 = vadd.f32 %v7041_v52, %v7040_v4  ;;  %v11830_v44 = vld [vmem:[#allocation69_spill] sm:$0xff] }
0x1639   : > { %9172 = vmatmul.mubr.msk.f32.vlgmr.msra.gmra.mxu1 %vm5541_vm0, %v6802_v43  ;;  %v7196_v11 = vadd.f32 %v11387_v17, %v11435_v20  ;;  %v7063_v38 = vadd.f32 %v7062_v6, %v7061_v62  ;;  %v7295_v14 = vmul.f32 %v7201_v9, %v11830_v44  ;;  %9174 = vmatprep.subr.mxu1 %v8233_v55  ;;  %v9204_v1 = vpop.f32.mrf.mxu0  ;;  %v11834_v9 = vld [vmem:[#allocation7_spill] sm:$0xff] }
0x163a   : > { %v7302_v10 = vmul.f32 %v7236_v16, %v11813_v63  ;;  %9218 = vmatpush3.msra.mxu0 %v7303_v27  ;;  %v7216_v63 = vadd.f32 %v11421_v41, %v11435_v20  ;;  %v7324_v28 = vsel %vm3923_vm7, %v7035_v60, %v7323_v30  ;;  %9175 = vmatpush3.msra.mxu1 %v8233_v55  ;;  %v6386_v27 = vpop.f32.mrf.mxu1  ;;  %v11835_v44 = vld [vmem:[#allocation11_spill] sm:$0xff] }
0x163b   : > { %9219 = vmatprep.subr.mxu0 %v11734_v13  ;;  %v7325_v3 = vsel %vm3925_vm9, %v7042_v57, %v7324_v28  ;;  %v7294_v23 = vmul.f32 %v7196_v11, %v11822_v26  ;;  %9240 = vmatprep.subr.mxu1 %v11734_v13  ;;  %v7245_v4 = vpop.f32.mrf.mxu0  ;;  %v7251_v28 = vadd.f32 %v9204_v1, %v11435_v20 }
0x163c   : > { %9220 = vmatpush3.msra.mxu0 %v7302_v10  ;;  %v7298_v41 = vmul.f32 %v7216_v63, %v11817_v21  ;;  %v7296_v21 = vmul.f32 %v7206_v18, %v11829_v8  ;;  %v7326_v33 = vsel %vm3927_vm10, %v7049_v2, %v7325_v3  ;;  %v6387_v2 = vadd.f32 %v6386_v27, %v11832_v31  ;;  %v11833_v18 = vld [vmem:[#allocation17_spill] sm:$0xff]  ;;  %v11839_v31 = vld [vmem:[#allocation6_spill] sm:$0xff] }
0x163d   : > { %9221 = vmatprep.subr.mxu0 %v11734_v13  ;;  %v7327_v51 = vsel %vm3929_vm11, %v7056_v36, %v7326_v33  ;;  %v9207_v37 = vpop.f32.mrf.mxu0 }
0x163e   : > { %9222 = vmatpush3.msra.mxu0 %v7301_v29  ;;  %v7328_v17 = vsel %vm3931_vm12, %v7063_v38, %v7327_v51 }
0x163f   : > { %9223 = vmatprep.subr.mxu0 %v11734_v13  ;;  %v7255_v48 = vpop.f32.mrf.mxu0 }
0x1640   : > { %9224 = vmatpush3.msra.mxu0 %v7300_v61  ;;  %v7256_v57 = vadd.f32 %v7255_v48, %v11435_v20 }
0x1641   : > { %9225 = vmatprep.subr.mxu0 %v11734_v13  ;;  %v9210_v45 = vpop.f32.mrf.mxu0 }
0x1642   : > { %9226 = vmatpush3.msra.mxu0 %v7299_v19  ;;  %v7271_v59 = vadd.f32 %v9210_v45, %v11435_v20  ;;  %v7306_v62 = vmul.f32 %v7256_v57, %v11825_v5  ;;  %v11831_v19 = vld [vmem:[#allocation29_spill] sm:$0xff] }
0x1643   : > { %9227 = vmatprep.subr.mxu0 %v11734_v13  ;;  %v7265_v26 = vpop.f32.mrf.mxu0 }
0x1644   : > { %9228 = vmatpush3.msra.mxu0 %v7298_v41  ;;  %v7309_v61 = vmul.f32 %v7271_v59, %v10739_v54  ;;  %v7246_v54 = vadd.f32 %v7245_v4, %v11435_v20 }
0x1645   : > { %9229 = vmatprep.subr.mxu0 %v11734_v13  ;;  %v9213_v53 = vpop.f32.mrf.mxu0 }
0x1646   : > { %9230 = vmatpush3.msra.mxu0 %v7297_v0  ;;  %v7281_v52 = vadd.f32 %v9213_v53, %v11435_v20  ;;  %v7304_v50 = vmul.f32 %v7246_v54, %v11828_v56  ;;  %v7576_v0 = vrot.slane %v11277_v22, %v11834_v9 }
0x1647   : > { %9231 = vmatprep.subr.mxu0 %v11734_v13  ;;  %v7275_v15 = vpop.f32.mrf.mxu0 }
0x1648   : > { %9232 = vmatpush3.msra.mxu0 %v7296_v21  ;;  %v7276_v24 = vadd.f32 %v7275_v15, %v11435_v20  ;;  %v7311_v7 = vmul.f32 %v7281_v52, %v10715_v40  ;;  %v7622_v15 = vld [vmem:[%s9502_s18 + $0x18] sm:$0xff]  ;;  %v7716_v52 = vld [vmem:[%s9507_s6 + $0x30] sm:$0xff] }
0x1649   : > { %9233 = vmatprep.subr.mxu0 %v11734_v13  ;;  %v9216_v12 = vpop.f32.mrf.mxu0 }
0x164a   : > { %9234 = vmatpush3.msra.mxu0 %v7295_v14  ;;  %v7291_v42 = vadd.f32 %v9216_v12, %v11435_v20  ;;  %v7310_v63 = vmul.f32 %v7276_v24, %v10732_v25  ;;  %v7621_v12 = vld [vmem:[%s9502_s18 + $0x10] sm:$0xff] }
0x164b   : > { %9235 = vmatprep.subr.mxu0 %v11734_v13  ;;  %v7285_v46 = vpop.f32.mrf.mxu0 }
0x164c   : > { %9236 = vmatpush3.msra.mxu0 %v7294_v23  ;;  %v7286_v10 = vadd.f32 %v7285_v46, %v11435_v20  ;;  %v7313_v60 = vmul.f32 %v7291_v42, %v10678_v58  ;;  %v7266_v58 = vadd.f32 %v7265_v26, %v11435_v20  ;;  %v11836_v23 = vld [vmem:[#allocation12_spill] sm:$0xff]  ;;  %v7620_v46 = vld [vmem:[%s9502_s18 + $0x8] sm:$0xff]  ;;  %v7619_v42 = vld [vmem:[%s9502_s18] sm:$0xff]  ;;  %s11842_s18 = sld [smem:[#allocation74_spill]] }
0x164d   : > { %9238 = vmatmul.mubr.msk.f32.vlgmr.msra.gmra.mxu0 %vm5541_vm0, %v7328_v17 }
0x164e   : > { %v7312_v29 = vmul.f32 %v7286_v10, %v10700_v32  ;;  %v7261_v32 = vadd.f32 %v9207_v37, %v11435_v20  ;;  %v7308_v40 = vmul.f32 %v7266_v58, %v11823_v34  ;;  %v7305_v34 = vmul.f32 %v7251_v28, %v11827_v47  ;;  %v8262_v20 = vld [vmem:[%s9497_s28 + $0x38] sm:$0xff] }
0x164f   : > { %9263 = vmatprep.subr.mxu0 %v8262_v20  ;;  %v7717_v10 = vld [vmem:[%s9507_s6 + $0x38] sm:$0xff] }
0x1650   : > { %v7307_v25 = vmul.f32 %v7261_v32, %v11824_v39  ;;  %9264 = vmatpush3.msra.mxu0 %v8262_v20  ;;  %v11837_v32 = vld [vmem:[#allocation9_spill] sm:$0xff]  ;;  %v7711_v20 = vld [vmem:[%s9507_s6 + $0x8] sm:$0xff] }
0x1651   : > { %9279 = vmatprep.subr.mxu0 %v7717_v10  ;;  %v11838_v28 = vld [vmem:[#allocation5_spill] sm:$0xff] }
0x16e5   : > { %v6784_v16 = vpop.f32.mrf.mxu1 }
0x16e6   : > { %9176 = vmatprep.mubr.msk.f32.mxu1 %vm879_vm3, %v6784_v16 }
0x16e7   : > { %v9150_v43 = vpop.f32.mrf.mxu1 }
0x16f9   : > { %v6871_v35 = vpop.f32.mrf.mxu1 }
0x16fa   : > { %9177 = vmatmul.mubr.msk.f32.vlgmr.msra.gmra.mxu1 %vm879_vm3, %v6871_v35  ;;  %v7714_v35 = vld [vmem:[%s9507_s6 + $0x20] sm:$0xff] }
0x16fb   : > { %9241 = vmatpush3.msra.mxu1 %v7313_v60  ;;  %v9173_v30 = vpop.f32.mrf.mxu1  ;;  %9260 = vmatprep.mubr.msk.f32.mxu1 %vm9399_vm2, %v11734_v13  ;;  %v7715_v60 = vld [vmem:[%s9507_s6 + $0x28] sm:$0xff]  ;;  %vm7722_vm2 = vcmask 523264  }
0x16fc   : > { %9242 = vmatprep.subr.mxu1 %v11734_v13 }
0x16fd   : > { %9243 = vmatpush3.msra.mxu1 %v7312_v29 }
0x16fe   : > { %9244 = vmatprep.subr.mxu1 %v11734_v13 }
0x16ff   : > { %9245 = vmatpush3.msra.mxu1 %v7311_v7 }
0x1700   : > { %9246 = vmatprep.subr.mxu1 %v11734_v13 }
0x1701   : > { %9247 = vmatpush3.msra.mxu1 %v7310_v63  ;;  %v11546_v63 = vld [vmem:[%s9517_s9 + $0x18] sm:$0xff] }
0x1702   : > { %9248 = vmatprep.subr.mxu1 %v11734_v13  ;;  %v7721_v9 = vrot.slane %v11546_v63, %v11826_v49 }
0x1703   : > { %9249 = vmatpush3.msra.mxu1 %v7309_v61  ;;  %v7610_v61 = vrot.slane %v11277_v22, %v11837_v32  ;;  %v7712_v22 = vld [vmem:[%s9507_s6 + $0x10] sm:$0xff] }
0x1704   : > { %9250 = vmatprep.subr.mxu1 %v11734_v13 }
0x1705   : > { %9251 = vmatpush3.msra.mxu1 %v7308_v40 }
0x1706   : > { %9252 = vmatprep.subr.mxu1 %v11734_v13 }
0x1707   : > { %9253 = vmatpush3.msra.mxu1 %v7307_v25  ;;  %v7616_v25 = vrot.slane %v11546_v63, %v11838_v28 }
0x1708   : > { %9254 = vmatprep.subr.mxu1 %v11734_v13 }
0x1709   : > { %9255 = vmatpush3.msra.mxu1 %v7306_v62 }
0x170a   : > { %9256 = vmatprep.subr.mxu1 %v11734_v13 }
0x170b   : > { %9257 = vmatpush3.msra.mxu1 %v7305_v34 }
0x170c   : > { %9258 = vmatprep.subr.mxu1 %v11734_v13 }
0x170d   : > { %9259 = vmatpush3.msra.mxu1 %v7304_v50  ;;  %v7397_v39 = vpop.f32.mrf.mxu0 }
0x170e   : > { %9261 = vmatmul.mubr.msk.f32.vlgmr.msra.gmra.mxu1 %vm5541_vm0, %v11831_v19  ;;  %9265 = vmatprep.mubr.msk.f32.mxu0 %vm879_vm3, %v7397_v39 }
0x170f   : > { %v9239_v5 = vpop.f32.mrf.mxu0  ;;  %9268 = vmatprep.subr.mxu1 %v7622_v15 }
0x1710   : > { %9269 = vmatpush3.msra.mxu1 %v7622_v15  ;;  %v7713_v5 = vld [vmem:[%s9507_s6 + $0x18] sm:$0xff]  ;;  %v11840_v15 = vld [vmem:[#allocation10_spill] sm:$0xff] }
0x1711   : > { %9270 = vmatprep.subr.mxu1 %v7621_v12 }
0x1712   : > { %9271 = vmatpush3.msra.mxu1 %v7621_v12  ;;  %v7835_v12 = vrot.slane %v11546_v63, %v11840_v15 }
0x1713   : > { %9272 = vmatprep.subr.mxu1 %v7620_v46 }
0x1714   : > { %9273 = vmatpush3.msra.mxu1 %v7620_v46 }
0x1715   : > { %9274 = vmatprep.subr.mxu1 %v7619_v42 }
0x1716   : > { %9275 = vmatpush3.msra.mxu1 %v7619_v42 }
0x17ba   : > { %v9178_v47 = vpop.f32.mrf.mxu1 }
0x17bb   : > { %v6959_v41 = vadd.f32 %v9178_v47, %v11833_v18  ;;  %v7710_v47 = vld [vmem:[%s9507_s6] sm:$0xff] }
0x17bc   : > { %v6949_v56 = vpop.f32.mrf.mxu1 }
0x17bd   : > { %v6958_v3 = vadd.f32 %v6949_v56, %v6387_v2  ;;  %v7626_v2 = vrot.slane %v11546_v63, %v11839_v31 }
0x17ce   : > { %v7484_v6 = vpop.f32.mrf.mxu1 }
0x17cf   : > { %9266 = vmatmul.mubr.msk.f32.vlgmr.msra.gmra.mxu0 %vm879_vm3, %v7484_v6 }
0x17d0   : > { %v9262_v13 = vpop.f32.mrf.mxu1  ;;  %9280 = vmatpush3.msra.mxu0 %v7717_v10  ;;  %v11841_v10 = vld [vmem:[#allocation4_spill] sm:$0xff] }
0x17d1   : > { %9281 = vmatprep.subr.mxu0 %v7716_v52 }
0x17d2   : > { %9282 = vmatpush3.msra.mxu0 %v7716_v52  ;;  %v7841_v52 = vrot.slane %v11546_v63, %v11841_v10 }
0x17d3   : > { %9283 = vmatprep.subr.mxu0 %v7715_v60 }
0x17d4   : > { %9284 = vmatpush3.msra.mxu0 %v7715_v60 }
0x17d5   : > { %9285 = vmatprep.subr.mxu0 %v7714_v35 }
0x17d6   : > { %9286 = vmatpush3.msra.mxu0 %v7714_v35 }
0x17d7   : > { %9287 = vmatprep.subr.mxu0 %v7713_v5 }
0x17d8   : > { %9288 = vmatpush3.msra.mxu0 %v7713_v5 }
0x17d9   : > { %9289 = vmatprep.subr.mxu0 %v7712_v22 }
0x17da   : > { %9290 = vmatpush3.msra.mxu0 %v7712_v22 }
0x17db   : > { %9291 = vmatprep.subr.mxu0 %v7711_v20 }
0x17dc   : > { %9292 = vmatpush3.msra.mxu0 %v7711_v20 }
0x17dd   : > { %9293 = vmatprep.subr.mxu0 %v7710_v47 }
0x17de   : > { %9294 = vmatpush3.msra.mxu0 %v7710_v47 }
0x188f   : > { %v9267_v36 = vpop.f32.mrf.mxu0 }
0x1890   : > { %v7572_v11 = vadd.f32 %v9267_v36, %v6959_v41 }
0x1891   : > { %v7562_v8 = vpop.f32.mrf.mxu0 }
0x1892   : > { %v7578_v21 = vadd.f32 %v7576_v0, %v7572_v11  ;;  %v7571_v33 = vadd.f32 %v7562_v8, %v6958_v3 }
0x1894   : > { %v7577_v38 = vadd.f32 %v7576_v0, %v7571_v33  ;;  %v7580_v14 = vadd.f32 %v7578_v21, %v11835_v44 }
0x1896   : > { %v7584_v51 = vsel %vm623_vm1, %v7580_v14, 0.0  ;;  %v7579_v17 = vadd.f32 %v7577_v38, %v11836_v23 }
0x1897   : > { %7585 = vadd.xlane.f32.xlu1 %v7584_v51 }
0x1898   : > { %v7581_v55 = vsel %vm623_vm1, %v7579_v17, 0.0 }
0x1899   : > { %7582 = vadd.xlane.f32.xlu0 %v7581_v55 }
0x1920   : > { %v7586_v1 = vpop.xlane.xlu1 %7585 }
0x1921   : > { %v7588_v4 = vmul.f32 0.03125, %v7586_v1 }
0x1922   : > { %v7583_v37 = vpop.xlane.xlu0 %7582 }
0x1923   : > { %v7587_v48 = vmul.f32 0.03125, %v7583_v37  ;;  %v7590_v45 = vsub.f32 %v7580_v14, %v7588_v4 }
0x1925   : > { %v7589_v27 = vsub.f32 %v7579_v17, %v7587_v48  ;;  %v7592_v43 = vmul.f32 %v7590_v45, %v7590_v45 }
0x1927   : > { %v7591_v26 = vmul.f32 %v7589_v27, %v7589_v27  ;;  %v7596_v53 = vsel %vm623_vm1, %v7592_v43, 0.0 }
0x1929   : > { %v7593_v16 = vsel %vm623_vm1, %v7591_v26, 0.0 }
0x192a   : > { %7594 = vadd.xlane.f32.xlu0 %v7593_v16 }
0x192e   : > { %7597 = vadd.xlane.f32.xlu0 %v7596_v53 }
0x19b3   : > { %v7595_v24 = vpop.xlane.xlu0 %7594 }
0x19b4   : > { %v7599_v29 = vmul.f32 0.03125, %v7595_v24 }
0x19b6   : > { %v7601_v30 = vadd.f32 1e-05, %v7599_v29 }
0x19b7   : > { %v7598_v59 = vpop.xlane.xlu0 %7597 }
0x19b8   : > { %9354 = vrsqrt.f32 %v7601_v30  ;;  %v7600_v7 = vmul.f32 0.03125, %v7598_v59 }
0x19ba   : > { %v7602_v58 = vadd.f32 1e-05, %v7600_v7 }
0x19bc   : > { %9356 = vrsqrt.f32 %v7602_v58 }
0x19c5   : > { %v9355_v57 = vpop.eup %9354 }
0x19c6   : > { %v7605_v40 = vmul.f32 %v9355_v57, %v7589_v27 }
0x19c8   : > { %v7611_v54 = vmul.f32 %v7610_v61, %v7605_v40 }
0x19c9   : > { %v9357_v62 = vpop.eup %9356 }
0x19ca   : > { %v7606_v34 = vmul.f32 %v9357_v62, %v7590_v45  ;;  %v7617_v50 = vadd.f32 %v7616_v25, %v7611_v54 }
0x19cc   : > { %v7612_v39 = vmul.f32 %v7610_v61, %v7606_v34  ;;  %9276 = vmatprep.mubr.msk.f32.mxu1 %vm623_vm1, %v7617_v50 }
0x19ce   : > { %v7618_v19 = vadd.f32 %v7616_v25, %v7612_v39 }
0x19d0   : > { %9277 = vmatmul.mubr.msk.f32.vlgmr.msra.gmra.mxu1 %vm623_vm1, %v7618_v19 }
0x1a90   : > { %v9278_v18 = vpop.f32.mrf.mxu1 }
0x1a91   : > { %v7705_v41 = vadd.f32 %v9278_v18, %v7626_v2 }
0x1a92   : > { %v7699_v56 = vpop.f32.mrf.mxu1 }
0x1a93   : > { %v7700_v3 = vadd.f32 %v7699_v56, %v7626_v2  ;;  %v7709_v13 = vmax.f32 %v7705_v41, 0.0  ;;  %v7846_v2 = vld [vmem:[%s11842_s18] sm:$0x3] }
0x1a94   : > { %v7876_v18 = vrot.slane %v7846_v2, %v11838_v28  ;;  %v7882_v56 = vrot.slane %v7846_v2, %v11839_v31 }
0x1a95   : > { %v7708_v6 = vmax.f32 %v7700_v3, 0.0 }
0x1a97   : > { %9295 = vmatprep.mubr.msk.f32.mxu0 %vm7722_vm2, %v7708_v6 }
0x1a98   : > { %9296 = vmatmul.mubr.msk.f32.vlgmr.msra.gmra.mxu0 %vm7722_vm2, %v7709_v13 }
0x1b58   : > { %v9297_v0 = vpop.f32.mrf.mxu0 }
0x1b59   : > { %v7801_v36 = vadd.f32 %v9297_v0, %v7721_v9 }
0x1b5a   : > { %v7795_v11 = vpop.f32.mrf.mxu0 }
0x1b5b   : > { %v7805_v8 = vadd.f32 %v7801_v36, %v7618_v19  ;;  %v7796_v21 = vadd.f32 %v7795_v11, %v7721_v9 }
0x1b5d   : > { %v7804_v33 = vadd.f32 %v7796_v21, %v7617_v50  ;;  %v7809_v38 = vsel %vm623_vm1, %v7805_v8, 0.0 }
0x1b5e   : > { %7810 = vadd.xlane.f32.xlu1 %v7809_v38 }
0x1b5f   : > { %v7806_v44 = vsel %vm623_vm1, %v7804_v33, 0.0 }
0x1b60   : > { %7807 = vadd.xlane.f32.xlu0 %v7806_v44 }
0x1be7   : > { %v7811_v14 = vpop.xlane.xlu1 %7810 }
0x1be8   : > { %v7813_v51 = vmul.f32 0.03125, %v7811_v14 }
0x1be9   : > { %v7808_v23 = vpop.xlane.xlu0 %7807 }
0x1bea   : > { %v7815_v17 = vsub.f32 %v7805_v8, %v7813_v51  ;;  %v7812_v55 = vmul.f32 0.03125, %v7808_v23 }
0x1bec   : > { %v7814_v1 = vsub.f32 %v7804_v33, %v7812_v55  ;;  %v7817_v4 = vmul.f32 %v7815_v17, %v7815_v17 }
0x1bee   : > { %v7821_v49 = vsel %vm623_vm1, %v7817_v4, 0.0  ;;  %v7816_v37 = vmul.f32 %v7814_v1, %v7814_v1 }
0x1bef   : > { %7822 = vadd.xlane.f32.xlu1 %v7821_v49 }
0x1bf0   : > { %v7818_v48 = vsel %vm623_vm1, %v7816_v37, 0.0 }
0x1bf1   : > { %7819 = vadd.xlane.f32.xlu0 %v7818_v48 }
0x1c78   : > { %v7823_v45 = vpop.xlane.xlu1 %7822 }
0x1c79   : > { %v7825_v27 = vmul.f32 0.03125, %v7823_v45 }
0x1c7a   : > { %v7820_v26 = vpop.xlane.xlu0 %7819 }
0x1c7b   : > { %v7827_v16 = vadd.f32 1e-05, %v7825_v27  ;;  %v7824_v43 = vmul.f32 0.03125, %v7820_v26 }
0x1c7d   : > { %9358 = vrsqrt.f32 %v7827_v16  ;;  %v7826_v53 = vadd.f32 1e-05, %v7824_v43 }
0x1c7f   : > { %9360 = vrsqrt.f32 %v7826_v53 }
0x1c8a   : > { %v9359_v46 = vpop.eup %9358 }
0x1c8b   : > { %v7831_v42 = vmul.f32 %v9359_v46, %v7815_v17 }
0x1c8c   : > { %v9361_v60 = vpop.eup %9360 }
0x1c8d   : > { %v7837_v35 = vmul.f32 %v7835_v12, %v7831_v42  ;;  %v7830_v24 = vmul.f32 %v9361_v60, %v7814_v1 }
0x1c8f   : > { %v7843_v29 = vadd.f32 %v7841_v52, %v7837_v35  ;;  %v7836_v30 = vmul.f32 %v7835_v12, %v7830_v24 }
0x1c91   : > { %v7850_v59 = vsel %vm623_vm1, %v7843_v29, 0.0  ;;  %7845 = vst.msk [vmem:[#allocation2 + $0x8] sm:$0xff] %vm623_vm1, %v7843_v29  ;;  %v7842_v7 = vadd.f32 %v7841_v52, %v7836_v30 }
0x1c92   : > { %7851 = vadd.xlane.f32.xlu1 %v7850_v59 }
0x1c93   : > { %v7847_v58 = vsel %vm623_vm1, %v7842_v7, 0.0  ;;  %7844 = vst.msk [vmem:[#allocation2] sm:$0xff] %vm623_vm1, %v7842_v7 }
0x1c94   : > { %7848 = vadd.xlane.f32.xlu0 %v7847_v58 }
0x1d1b   : > { %v7852_v32 = vpop.xlane.xlu1 %7851 }
0x1d1c   : > { %v7854_v61 = vmul.f32 0.03125, %v7852_v32 }
0x1d1d   : > { %v7849_v57 = vpop.xlane.xlu0 %7848 }
0x1d1e   : > { %v7856_v63 = vsub.f32 %v7843_v29, %v7854_v61  ;;  %v7853_v40 = vmul.f32 0.03125, %v7849_v57 }
0x1d20   : > { %v7855_v25 = vsub.f32 %v7842_v7, %v7853_v40  ;;  %v7858_v54 = vmul.f32 %v7856_v63, %v7856_v63 }
0x1d22   : > { %v7862_v62 = vsel %vm623_vm1, %v7858_v54, 0.0  ;;  %v7857_v34 = vmul.f32 %v7855_v25, %v7855_v25 }
0x1d23   : > { %7863 = vadd.xlane.f32.xlu1 %v7862_v62 }
0x1d24   : > { %v7859_v50 = vsel %vm623_vm1, %v7857_v34, 0.0 }
0x1d25   : > { %7860 = vadd.xlane.f32.xlu0 %v7859_v50 }
0x1dac   : > { %v7864_v39 = vpop.xlane.xlu1 %7863 }
0x1dad   : > { %v7866_v19 = vmul.f32 0.03125, %v7864_v39 }
0x1dae   : > { %v7861_v5 = vpop.xlane.xlu0 %7860 }
0x1daf   : > { %v7868_v22 = vadd.f32 1e-05, %v7866_v19  ;;  %v7865_v20 = vmul.f32 0.03125, %v7861_v5 }
0x1db1   : > { %9362 = vrsqrt.f32 %v7868_v22  ;;  %v7867_v47 = vadd.f32 1e-05, %v7865_v20 }
0x1db3   : > { %9364 = vrsqrt.f32 %v7867_v47 }
0x1dbe   : > { %v9363_v41 = vpop.eup %9362 }
0x1dbf   : > { %v7872_v3 = vmul.f32 %v9363_v41, %v7856_v63 }
0x1dc0   : > { %v9365_v6 = vpop.eup %9364 }
0x1dc1   : > { %v7878_v13 = vmul.f32 %v7876_v18, %v7872_v3  ;;  %v7871_v9 = vmul.f32 %v9365_v6, %v7855_v25 }
0x1dc3   : > { %v7884_v0 = vadd.f32 %v7882_v56, %v7878_v13  ;;  %v7877_v36 = vmul.f32 %v7876_v18, %v7871_v9 }
0x1dc5   : > { %7886 = vst.msk [vmem:[%s9522_s17 + $0x8] sm:$0xff] %vm623_vm1, %v7884_v0  ;;  %v7883_v11 = vadd.f32 %v7882_v56, %v7877_v36 }
0x1dc7   : > { %7885 = vst.msk [vmem:[%s9522_s17] sm:$0xff] %vm623_vm1, %v7883_v11 }
0x1dc8 PF: > { %s11843_s28 = sld [smem:[#allocation3_spill]] }
0x1dce   : > { %s25_s18 = sadd.s32 1, %s11843_s28  }
0x1dcf   : > { %p22_p5 = scmp.ge.s32.totalorder %s25_s18, 4  }
0x1dd1   :  { %24 = sbr.rel (!%p22_p5) target bundleno = 7 (0x7), region = 154 }

</bundles_post_ra>
